<compile_context>
chip_gen: v7x
topology: tpu7x:2x2x1
jax: 0.10.0
libtpu: 0.0.40
codegen_flags: <defaults>
</compile_context>

<pallas_src>
import functools

import jax
import jax.numpy as jnp
from jax import lax
from jax.experimental import pallas as pl
from jax.experimental.pallas import tpu as pltpu


def decoder_block_kernel(x_ref, w1_ref, w2_ref, b2_ref, o_ref,
                         xp1_ref, xp2_ref, *, compute_dtype):
    # x_ref  : (1, H, W, Cin)        one image, NHWC
    # w1_ref : (9*Cin, Cmid)         conv3x3 taps flattened (kh, kw, ci)
    # w2_ref : (9*Cmid, 4*Cout)      combined polyphase deconv weight (oh, ow, cm)
    # b2_ref : (1, 4*Cout)           deconv bias tiled over the 4 phases
    # o_ref  : (1, H, W, 4*Cout)     4 deconv phases packed along channels
    # xp1_ref: (H+2, W+2, Cin)       VMEM scratch, zero-padded input tile
    # xp2_ref: (H+2, W+2, Cmid)      VMEM scratch, zero-padded ConvRelu output
    _, H, W, Cin = x_ref.shape
    Cmid = xp2_ref.shape[-1]
    Cout4 = o_ref.shape[-1]

    # ---- stage 1: Conv2d 3x3 (pad 1, bias=False) + ReLU ---------------------
    xp1_ref[...] = jnp.zeros_like(xp1_ref)
    xp1_ref[1:H + 1, 1:W + 1, :] = x_ref[0]

    taps1 = [xp1_ref[kh:kh + H, kw:kw + W, :]
             for kh in range(3) for kw in range(3)]            # 9 x (H, W, Cin)
    p1 = jnp.concatenate(taps1, axis=-1)                       # (H, W, 9*Cin)
    p1 = p1.reshape(H * W, 9 * Cin).astype(compute_dtype)
    y1 = jnp.dot(p1, w1_ref[...],
                 preferred_element_type=jnp.float32)           # (H*W, Cmid) f32
    y1 = jnp.maximum(y1, 0.0)                                  # fused ReLU

    # ---- stage 2: ConvTranspose2d(k=4, s=2, p=1) + bias + ReLU --------------
    # Intermediate stays in VMEM: write it straight into the padded scratch.
    xp2_ref[...] = jnp.zeros_like(xp2_ref)
    xp2_ref[1:H + 1, 1:W + 1, :] = y1.reshape(H, W, Cmid).astype(xp2_ref.dtype)

    taps2 = [xp2_ref[oh:oh + H, ow:ow + W, :]
             for oh in range(3) for ow in range(3)]            # 9 x (H, W, Cmid)
    p2 = jnp.concatenate(taps2, axis=-1)                       # (H, W, 9*Cmid)
    p2 = p2.reshape(H * W, 9 * Cmid).astype(compute_dtype)
    acc = jnp.dot(p2, w2_ref[...],
                  preferred_element_type=jnp.float32)          # (H*W, 4*Cout) f32
    y2 = jnp.maximum(acc + b2_ref[...].astype(jnp.float32), 0.0)

    # Single lane-dense full-block store (all 4 phases packed along channels).
    o_ref[0] = y2.reshape(H, W, Cout4).astype(o_ref.dtype)


# Per output-row parity r: padded-offset oh -> ConvTranspose2d kernel tap kh.
#   r == 0 uses {oh=1 -> kh=1, oh=0 -> kh=3}
#   r == 1 uses {oh=2 -> kh=0, oh=1 -> kh=2}
_OFF_TO_TAP = ({1: 1, 0: 3}, {2: 0, 1: 2})


def _pack_deconv_weight(w_iohw):
    """PyTorch ConvTranspose2d weight (Cmid, Cout, 4, 4) -> (9*Cmid, 4*Cout).

    Rows are indexed (oh, ow, cmid) over the zero-padded 3x3 neighbourhood of
    the deconv input; columns are (phase = rh*2 + rw, cout).  Taps a phase does
    not use get zero weight, so all four polyphase outputs come from a single
    MXU matmul that shares stage 1's im2col pattern.
    """
    Cmid, Cout = w_iohw.shape[0], w_iohw.shape[1]
    w = jnp.zeros((3, 3, Cmid, 4, Cout), dtype=w_iohw.dtype)
    for rh in (0, 1):
        for rw in (0, 1):
            p = rh * 2 + rw
            for oh, kh in _OFF_TO_TAP[rh].items():
                for ow, kw in _OFF_TO_TAP[rw].items():
                    w = w.at[oh, ow, :, p, :].set(w_iohw[:, :, kh, kw])
    return w.reshape(9 * Cmid, 4 * Cout)


def decoder_block_v2(x_nchw, conv_w_oihw, deconv_w_iohw, deconv_b,
                     *, compute_dtype=jnp.bfloat16):
    """Forward pass of DecoderBlockV2 (is_deconv=True). PyTorch NCHW/OIHW layouts."""
    N, Cin, H, W = x_nchw.shape
    Cmid = conv_w_oihw.shape[0]
    Cout = deconv_w_iohw.shape[1]
    KH, KW = conv_w_oihw.shape[2], conv_w_oihw.shape[3]

    x_nhwc = jnp.transpose(x_nchw, (0, 2, 3, 1)).astype(jnp.float32)
    # (Cmid, Cin, 3, 3) -> (KH, KW, Cin, Cmid) -> (9*Cin, Cmid), rows = (kh, kw, ci)
    w1_2d = jnp.transpose(conv_w_oihw, (2, 3, 1, 0)).reshape(KH * KW * Cin, Cmid)
    w1_2d = w1_2d.astype(compute_dtype)
    w2_2d = _pack_deconv_weight(deconv_w_iohw).astype(compute_dtype)
    # Bias tiled over the 4 phases to match the packed (phase, cout) columns.
    b2_2d = jnp.tile(deconv_b.reshape(1, Cout), (1, 4)).astype(jnp.float32)

    out = pl.pallas_call(
        functools.partial(decoder_block_kernel, compute_dtype=compute_dtype),
        out_shape=jax.ShapeDtypeStruct((N, H, W, 4 * Cout), jnp.float32),
        grid=(N,),
        in_specs=[
            pl.BlockSpec((1, H, W, Cin), lambda n: (n, 0, 0, 0)),
            pl.BlockSpec((KH * KW * Cin, Cmid), lambda n: (0, 0)),
            pl.BlockSpec((9 * Cmid, 4 * Cout), lambda n: (0, 0)),
            pl.BlockSpec((1, 4 * Cout), lambda n: (0, 0)),
        ],
        out_specs=pl.BlockSpec((1, H, W, 4 * Cout), lambda n: (n, 0, 0, 0)),
        scratch_shapes=[
            pltpu.VMEM((H + 2, W + 2, Cin), jnp.float32),
            pltpu.VMEM((H + 2, W + 2, Cmid), jnp.float32),
        ],
        compiler_params=pltpu.CompilerParams(
            dimension_semantics=("parallel",),
            vmem_limit_bytes=32 * 1024 * 1024),
    )(x_nhwc, w1_2d, w2_2d, b2_2d)

    # Interleave the 4 output phases: (N,H,W,2,2,C) -> (N,2H,2W,C) -> NCHW.
    out = out.reshape(N, H, W, 2, 2, Cout)
    out = jnp.transpose(out, (0, 1, 3, 2, 4, 5)).reshape(N, 2 * H, 2 * W, Cout)
    return jnp.transpose(out, (0, 3, 1, 2)).astype(x_nchw.dtype)


def _reference(x, conv_w, deconv_w, deconv_b):
    y = lax.conv_general_dilated(
        x, conv_w, window_strides=(1, 1), padding=((1, 1), (1, 1)),
        dimension_numbers=("NCHW", "OIHW", "NCHW"))
    y = jnp.maximum(y, 0.0)
    # ConvTranspose2d(k=4, s=2, p=1) == conv over the 2x lhs-dilated input with
    # the spatially-flipped, channel-swapped kernel and padding k-1-p = 2.
    w_conv = jnp.transpose(deconv_w, (1, 0, 2, 3))[:, :, ::-1, ::-1]
    z = lax.conv_general_dilated(
        y, w_conv, window_strides=(1, 1), padding=((2, 2), (2, 2)),
        lhs_dilation=(2, 2),
        dimension_numbers=("NCHW", "OIHW", "NCHW"))
    z = z + deconv_b.reshape(1, -1, 1, 1)
    return jnp.maximum(z, 0.0)


if __name__ == "__main__":
    key = jax.random.PRNGKey(0)
    k_x, k_w1, k_w2, k_b = jax.random.split(key, 4)

    N, Cin, H, W = 2, 4, 16, 16          # batch=2, in_channels=4, spatial=16
    Cmid, Cout = 8, 4                    # middle_channels=8, out_channels=4

    x = jax.random.normal(k_x, (N, Cin, H, W), dtype=jnp.float32)
    conv_w = 0.1 * jax.random.normal(k_w1, (Cmid, Cin, 3, 3), dtype=jnp.float32)
    deconv_w = 0.1 * jax.random.normal(k_w2, (Cmid, Cout, 4, 4), dtype=jnp.float32)
    deconv_b = 0.1 * jax.random.normal(k_b, (Cout,), dtype=jnp.float32)

    out = decoder_block_v2(x, conv_w, deconv_w, deconv_b)
    out = jax.block_until_ready(out)

    ref = _reference(x, conv_w, deconv_w, deconv_b)
    assert out.shape == (N, Cout, 2 * H, 2 * W), out.shape
    # bf16 MXU operands (f32 accumulation) -> bf16-level comparison tolerance.
    assert jnp.allclose(out, ref, atol=3e-2, rtol=3e-2), \
        float(jnp.max(jnp.abs(out - ref)))

    print("KERNEL_OK")
</pallas_src>

<mosaic_0001>
module attributes {stable_mosaic.version = 11 : i64} {
  func.func @decoder_block_kernel(%arg0: i32, %arg1: memref<1x16x16x4xf32, #tpu.memory_space<vmem>>, %arg2: memref<36x8xbf16, #tpu.memory_space<vmem>>, %arg3: memref<72x16xbf16, #tpu.memory_space<vmem>>, %arg4: memref<1x16xf32, #tpu.memory_space<vmem>>, %arg5: memref<1x16x16x16xf32, #tpu.memory_space<vmem>>, %arg6: memref<18x18x4xf32, #tpu.memory_space<vmem>>, %arg7: memref<18x18x8xf32, #tpu.memory_space<vmem>>) attributes {dimension_semantics = [#tpu.dimension_semantics<parallel>], iteration_bounds = array<i64: 2>, scalar_prefetch = 0 : i64, scratch_operands = 2 : i64, tpu.core_type = #tpu.core_type<tc>, window_params = [{transform_indices = @transform_0, window_bounds = array<i64: 1, 16, 16, 4>}, {pipeline_mode = #tpu.pipeline_mode<synchronous>, transform_indices = @transform_1, window_bounds = array<i64: 36, 8>}, {pipeline_mode = #tpu.pipeline_mode<synchronous>, transform_indices = @transform_2, window_bounds = array<i64: 72, 16>}, {pipeline_mode = #tpu.pipeline_mode<synchronous>, transform_indices = @transform_3, window_bounds = array<i64: 1, 16>}, {transform_indices = @transform_4, window_bounds = array<i64: 1, 16, 16, 16>}]} {
    %cst = arith.constant 0.000000e+00 : f32
    %0 = vector.broadcast %cst : f32 to vector<18x18x4xf32>
    %c0 = arith.constant 0 : index
    %c0_0 = arith.constant 0 : index
    %c0_1 = arith.constant 0 : index
    %1 = vector.load %arg6[%c0, %c0_0, %c0_1] : memref<18x18x4xf32, #tpu.memory_space<vmem>>, vector<18x18x4xf32>
    tpu.vector_store %arg6[%c0, %c0_0, %c0_1], %0 {strides = array<i32>} : memref<18x18x4xf32, #tpu.memory_space<vmem>>, vector<18x18x4xf32>,
    %c0_2 = arith.constant 0 : index
    %c0_3 = arith.constant 0 : index
    %c0_4 = arith.constant 0 : index
    %c0_5 = arith.constant 0 : index
    %2 = vector.load %arg1[%c0_2, %c0_3, %c0_4, %c0_5] : memref<1x16x16x4xf32, #tpu.memory_space<vmem>>, vector<1x16x16x4xf32>
    %3 = vector.shape_cast %2 : vector<1x16x16x4xf32> to vector<16x16x4xf32>
    %c1 = arith.constant 1 : index
    %c1_6 = arith.constant 1 : index
    %c0_7 = arith.constant 0 : index
    %4 = vector.load %arg6[%c1, %c1_6, %c0_7] : memref<18x18x4xf32, #tpu.memory_space<vmem>>, vector<16x16x4xf32>
    tpu.vector_store %arg6[%c1, %c1_6, %c0_7], %3 {strides = array<i32>} : memref<18x18x4xf32, #tpu.memory_space<vmem>>, vector<16x16x4xf32>,
    %c0_8 = arith.constant 0 : index
    %c0_9 = arith.constant 0 : index
    %c0_10 = arith.constant 0 : index
    %5 = vector.load %arg6[%c0_8, %c0_9, %c0_10] : memref<18x18x4xf32, #tpu.memory_space<vmem>>, vector<16x16x4xf32>
    %c0_11 = arith.constant 0 : index
    %c1_12 = arith.constant 1 : index
    %c0_13 = arith.constant 0 : index
    %6 = vector.load %arg6[%c0_11, %c1_12, %c0_13] : memref<18x18x4xf32, #tpu.memory_space<vmem>>, vector<16x16x4xf32>
    %c0_14 = arith.constant 0 : index
    %c2 = arith.constant 2 : index
    %c0_15 = arith.constant 0 : index
    %7 = vector.load %arg6[%c0_14, %c2, %c0_15] : memref<18x18x4xf32, #tpu.memory_space<vmem>>, vector<16x16x4xf32>
    %c1_16 = arith.constant 1 : index
    %c0_17 = arith.constant 0 : index
    %c0_18 = arith.constant 0 : index
    %8 = vector.load %arg6[%c1_16, %c0_17, %c0_18] : memref<18x18x4xf32, #tpu.memory_space<vmem>>, vector<16x16x4xf32>
    %c1_19 = arith.constant 1 : index
    %c1_20 = arith.constant 1 : index
    %c0_21 = arith.constant 0 : index
    %9 = vector.load %arg6[%c1_19, %c1_20, %c0_21] : memref<18x18x4xf32, #tpu.memory_space<vmem>>, vector<16x16x4xf32>
    %c1_22 = arith.constant 1 : index
    %c2_23 = arith.constant 2 : index
    %c0_24 = arith.constant 0 : index
    %10 = vector.load %arg6[%c1_22, %c2_23, %c0_24] : memref<18x18x4xf32, #tpu.memory_space<vmem>>, vector<16x16x4xf32>
    %c2_25 = arith.constant 2 : index
    %c0_26 = arith.constant 0 : index
    %c0_27 = arith.constant 0 : index
    %11 = vector.load %arg6[%c2_25, %c0_26, %c0_27] : memref<18x18x4xf32, #tpu.memory_space<vmem>>, vector<16x16x4xf32>
    %c2_28 = arith.constant 2 : index
    %c1_29 = arith.constant 1 : index
    %c0_30 = arith.constant 0 : index
    %12 = vector.load %arg6[%c2_28, %c1_29, %c0_30] : memref<18x18x4xf32, #tpu.memory_space<vmem>>, vector<16x16x4xf32>
    %c2_31 = arith.constant 2 : index
    %c2_32 = arith.constant 2 : index
    %c0_33 = arith.constant 0 : index
    %13 = vector.load %arg6[%c2_31, %c2_32, %c0_33] : memref<18x18x4xf32, #tpu.memory_space<vmem>>, vector<16x16x4xf32>
    %14 = tpu.concatenate %5, %6, %7, %8, %9, %10, %11, %12, %13 in 2 : vector<16x16x4xf32>, vector<16x16x4xf32>, vector<16x16x4xf32>, vector<16x16x4xf32>, vector<16x16x4xf32>, vector<16x16x4xf32>, vector<16x16x4xf32>, vector<16x16x4xf32>, vector<16x16x4xf32> -> vector<16x16x36xf32>
    %15 = vector.shape_cast %14 : vector<16x16x36xf32> to vector<256x36xf32>
    %16 = arith.truncf %15 : vector<256x36xf32> to vector<256x36xbf16>
    %c0_34 = arith.constant 0 : index
    %c0_35 = arith.constant 0 : index
    %17 = vector.load %arg2[%c0_34, %c0_35] : memref<36x8xbf16, #tpu.memory_space<vmem>>, vector<36x8xbf16>
    %cst_36 = arith.constant dense<0.000000e+00> : vector<256x8xf32>
    %18 = tpu.matmul %16, %17, %cst_36 {dimension_numbers = #tpu.dot_dimension_numbers<[1], [0], [0], [1], [0, 0, 1, 1], [], []>} : vector<256x36xbf16>, vector<36x8xbf16>, vector<256x8xf32> -> vector<256x8xf32>
    %cst_37 = arith.constant 0.000000e+00 : f32
    %19 = vector.broadcast %cst_37 : f32 to vector<256x8xf32>
    %20 = arith.maximumf %18, %19 : vector<256x8xf32>
    %cst_38 = arith.constant 0.000000e+00 : f32
    %21 = vector.broadcast %cst_38 : f32 to vector<18x18x8xf32>
    %c0_39 = arith.constant 0 : index
    %c0_40 = arith.constant 0 : index
    %c0_41 = arith.constant 0 : index
    %22 = vector.load %arg7[%c0_39, %c0_40, %c0_41] : memref<18x18x8xf32, #tpu.memory_space<vmem>>, vector<18x18x8xf32>
    tpu.vector_store %arg7[%c0_39, %c0_40, %c0_41], %21 {strides = array<i32>} : memref<18x18x8xf32, #tpu.memory_space<vmem>>, vector<18x18x8xf32>,
    %23 = vector.shape_cast %20 : vector<256x8xf32> to vector<16x16x8xf32>
    %c1_42 = arith.constant 1 : index
    %c1_43 = arith.constant 1 : index
    %c0_44 = arith.constant 0 : index
    %24 = vector.load %arg7[%c1_42, %c1_43, %c0_44] : memref<18x18x8xf32, #tpu.memory_space<vmem>>, vector<16x16x8xf32>
    tpu.vector_store %arg7[%c1_42, %c1_43, %c0_44], %23 {strides = array<i32>} : memref<18x18x8xf32, #tpu.memory_space<vmem>>, vector<16x16x8xf32>,
    %c0_45 = arith.constant 0 : index
    %c0_46 = arith.constant 0 : index
    %c0_47 = arith.constant 0 : index
    %25 = vector.load %arg7[%c0_45, %c0_46, %c0_47] : memref<18x18x8xf32, #tpu.memory_space<vmem>>, vector<16x16x8xf32>
    %c0_48 = arith.constant 0 : index
    %c1_49 = arith.constant 1 : index
    %c0_50 = arith.constant 0 : index
    %26 = vector.load %arg7[%c0_48, %c1_49, %c0_50] : memref<18x18x8xf32, #tpu.memory_space<vmem>>, vector<16x16x8xf32>
    %c0_51 = arith.constant 0 : index
    %c2_52 = arith.constant 2 : index
    %c0_53 = arith.constant 0 : index
    %27 = vector.load %arg7[%c0_51, %c2_52, %c0_53] : memref<18x18x8xf32, #tpu.memory_space<vmem>>, vector<16x16x8xf32>
    %c1_54 = arith.constant 1 : index
    %c0_55 = arith.constant 0 : index
    %c0_56 = arith.constant 0 : index
    %28 = vector.load %arg7[%c1_54, %c0_55, %c0_56] : memref<18x18x8xf32, #tpu.memory_space<vmem>>, vector<16x16x8xf32>
    %c1_57 = arith.constant 1 : index
    %c1_58 = arith.constant 1 : index
    %c0_59 = arith.constant 0 : index
    %29 = vector.load %arg7[%c1_57, %c1_58, %c0_59] : memref<18x18x8xf32, #tpu.memory_space<vmem>>, vector<16x16x8xf32>
    %c1_60 = arith.constant 1 : index
    %c2_61 = arith.constant 2 : index
    %c0_62 = arith.constant 0 : index
    %30 = vector.load %arg7[%c1_60, %c2_61, %c0_62] : memref<18x18x8xf32, #tpu.memory_space<vmem>>, vector<16x16x8xf32>
    %c2_63 = arith.constant 2 : index
    %c0_64 = arith.constant 0 : index
    %c0_65 = arith.constant 0 : index
    %31 = vector.load %arg7[%c2_63, %c0_64, %c0_65] : memref<18x18x8xf32, #tpu.memory_space<vmem>>, vector<16x16x8xf32>
    %c2_66 = arith.constant 2 : index
    %c1_67 = arith.constant 1 : index
    %c0_68 = arith.constant 0 : index
    %32 = vector.load %arg7[%c2_66, %c1_67, %c0_68] : memref<18x18x8xf32, #tpu.memory_space<vmem>>, vector<16x16x8xf32>
    %c2_69 = arith.constant 2 : index
    %c2_70 = arith.constant 2 : index
    %c0_71 = arith.constant 0 : index
    %33 = vector.load %arg7[%c2_69, %c2_70, %c0_71] : memref<18x18x8xf32, #tpu.memory_space<vmem>>, vector<16x16x8xf32>
    %34 = tpu.concatenate %25, %26, %27, %28, %29, %30, %31, %32, %33 in 2 : vector<16x16x8xf32>, vector<16x16x8xf32>, vector<16x16x8xf32>, vector<16x16x8xf32>, vector<16x16x8xf32>, vector<16x16x8xf32>, vector<16x16x8xf32>, vector<16x16x8xf32>, vector<16x16x8xf32> -> vector<16x16x72xf32>
    %35 = vector.shape_cast %34 : vector<16x16x72xf32> to vector<256x72xf32>
    %36 = arith.truncf %35 : vector<256x72xf32> to vector<256x72xbf16>
    %c0_72 = arith.constant 0 : index
    %c0_73 = arith.constant 0 : index
    %37 = vector.load %arg3[%c0_72, %c0_73] : memref<72x16xbf16, #tpu.memory_space<vmem>>, vector<72x16xbf16>
    %cst_74 = arith.constant dense<0.000000e+00> : vector<256x16xf32>
    %38 = tpu.matmul %36, %37, %cst_74 {dimension_numbers = #tpu.dot_dimension_numbers<[1], [0], [0], [1], [0, 0, 1, 1], [], []>} : vector<256x72xbf16>, vector<72x16xbf16>, vector<256x16xf32> -> vector<256x16xf32>
    %c0_75 = arith.constant 0 : index
    %c0_76 = arith.constant 0 : index
    %39 = vector.load %arg4[%c0_75, %c0_76] : memref<1x16xf32, #tpu.memory_space<vmem>>, vector<1x16xf32>
    %40 = vector.broadcast %39 : vector<1x16xf32> to vector<256x16xf32>
    %41 = arith.addf %38, %40 : vector<256x16xf32>
    %cst_77 = arith.constant 0.000000e+00 : f32
    %42 = vector.broadcast %cst_77 : f32 to vector<256x16xf32>
    %43 = arith.maximumf %41, %42 : vector<256x16xf32>
    %44 = vector.shape_cast %43 : vector<256x16xf32> to vector<16x16x16xf32>
    %c0_78 = arith.constant 0 : index
    %c0_79 = arith.constant 0 : index
    %c0_80 = arith.constant 0 : index
    %c0_81 = arith.constant 0 : index
    %45 = vector.load %arg5[%c0_78, %c0_79, %c0_80, %c0_81] : memref<1x16x16x16xf32, #tpu.memory_space<vmem>>, vector<1x16x16x16xf32>
    %46 = vector.shape_cast %45 : vector<1x16x16x16xf32> to vector<16x16x16xf32>
    %47 = vector.shape_cast %44 : vector<16x16x16xf32> to vector<1x16x16x16xf32>
    tpu.vector_store %arg5[%c0_78, %c0_79, %c0_80, %c0_81], %47 {strides = array<i32>} : memref<1x16x16x16xf32, #tpu.memory_space<vmem>>, vector<1x16x16x16xf32>,
    return
  }
  func.func @transform_0(%arg0: i32) -> (i32, i32, i32, i32) {
    %c0_i32 = arith.constant 0 : i32
    %c0_i32_0 = arith.constant 0 : i32
    %c0_i32_1 = arith.constant 0 : i32
    %c0_i32_2 = arith.constant 0 : i32
    return %arg0, %c0_i32, %c0_i32_0, %c0_i32_1 : i32, i32, i32, i32
  }
  func.func @transform_1(%arg0: i32) -> (i32, i32) {
    %c0_i32 = arith.constant 0 : i32
    %c0_i32_0 = arith.constant 0 : i32
    %c0_i32_1 = arith.constant 0 : i32
    return %c0_i32, %c0_i32_0 : i32, i32
  }
  func.func @transform_2(%arg0: i32) -> (i32, i32) {
    %c0_i32 = arith.constant 0 : i32
    %c0_i32_0 = arith.constant 0 : i32
    %c0_i32_1 = arith.constant 0 : i32
    return %c0_i32, %c0_i32_0 : i32, i32
  }
  func.func @transform_3(%arg0: i32) -> (i32, i32) {
    %c0_i32 = arith.constant 0 : i32
    %c0_i32_0 = arith.constant 0 : i32
    %c0_i32_1 = arith.constant 0 : i32
    return %c0_i32, %c0_i32_0 : i32, i32
  }
  func.func @transform_4(%arg0: i32) -> (i32, i32, i32, i32) {
    %c0_i32 = arith.constant 0 : i32
    %c0_i32_0 = arith.constant 0 : i32
    %c0_i32_1 = arith.constant 0 : i32
    %c0_i32_2 = arith.constant 0 : i32
    return %arg0, %c0_i32, %c0_i32_0, %c0_i32_1 : i32, i32, i32, i32
  }
}

</mosaic_0001>

<bundles_post_ra>
// kernel: tpu_custom_call.1
= control target key start
LH: loop header
LB: loop body
LE: loop exit
PB: predicated region body
PF: predicated region fallthrough
CT: control target
= control target key end

     0   :  { %9 = vsyncpa [#allocation5], 0  ;;  %s8725_s0 = inlined_call_operand.vmem [shape: f32[2,16,16,4], index: 0, kind: input, shape index: {}]   ;;  %s8726_s1 = inlined_call_operand.vmem [shape: bf16[36,8], index: 1, kind: input, shape index: {}]   ;;  %s8727_s2 = inlined_call_operand.vmem [shape: bf16[72,16], index: 2, kind: input, shape index: {}]   ;;  %s8728_s3 = inlined_call_operand.vmem [shape: f32[1,16], index: 3, kind: input, shape index: {}]   ;;  %s8729_s4 = inlined_call_operand.hbm [shape: f32[2,16,16,16], index: 4, kind: output, shape index: {}]  }
   0x1   :  { %11 = vsyncpa [#allocation5 + $0x1], 0  ;;  %s5872_s15 = smov 0   ;;  %s5874_s16 = smov 0  }
   0x2   :  { %s5876_s17 = smov 0   ;;  %s5878_s18 = smov 0  }
   0x3 LB: > { %s5893_s19 = sadd.s32 4294967295, %s5830_s18   ;;  %s4250_s20 = sadd.s32 4294967294, %s5830_s18   ;;  %s5830_s18 = sphi %s5878_s18, %s8952_s18   ;;  %s5826_s17 = sphi %s5876_s17, %s8951_s17   ;;  %s5822_s16 = sphi %s5874_s16, %s8950_s16   ;;  %s5818_s15 = sphi %s5872_s15, %s8949_s15  }
   0x4   : > { %s5897_s21 = sadd.s32 1, %s5830_s18   ;;  %s113_s22 = sadd.s32 1, %s5826_s17 }
   0x5   : > { %s110_s23 = ssub.s32 %s5830_s18, %s5897_s21  ;;  %p123_p0 = scmp.ne.s32.totalorder %s5826_s17, %s5822_s16 }
   0x6   : > { %p111_p1 = scmp.eq.s32.totalorder %s110_s23, 0  ;;  %p124_p2 = scmp.eq.s32.totalorder %s5893_s19, 1 }
   0x7   : > { %p129_p3 = scmp.ne.s32.totalorder %s5822_s16, %s5818_s15  ;;  %p130_p4 = scmp.eq.s32.totalorder %s4250_s20, 1 }
   0x8   : > { %s5908_s24 = scalar_select %p111_p1, %s5826_s17, %s113_s22  }
   0x9   : > { %p5910_p5 = por %p124_p2, %p123_p0  ;;  %p5914_p6 = por %p130_p4, %p129_p3 }
   0xa   : > { %p4253_p7 = scmp.ge.s32.totalorder %s5830_s18, 1  ;;  %p165_p8 = scmp.lt.s32.totalorder %s5830_s18, 3 }
   0xc   : > { %p166_p9 = pnand %p4253_p7, %p165_p8 }
   0xe   : > { %169 = sbr.rel (%p166_p9) target bundleno = 1207 (0x4b7), region = 36 }
  0x15   : > { %vm197_vm0 = vcmask 31744   ;;  %vm200_vm1 = vcmask 25600   ;;  %p191_p10 = scmp.lt.s32.totalorder %s5893_s19, 1  ;;  %v8730_v0 = vmov 0.0   ;;  %s5833_s6 = smov 4   ;;  %vm1663_vm2 = vcmask 64512  }
  0x16   : > { %198 = vst.msk [vmem:[#allocation2] sm:$0xff] %vm197_vm0, %v8730_v0  ;;  %199 = vst.msk [vmem:[#allocation2 + $0x8] sm:$0xff] %vm197_vm0, %v8730_v0  ;;  %s5834_s7 = smov 8   ;;  %s5835_s8 = smov 12   ;;  %vm1979_vm3 = vcmask 1041408   ;;  %vm1696_vm4 = vcmask 97280  }
  0x17   : > { %201 = vst.msk [vmem:[#allocation2 + $0x10] sm:$0x3] %vm200_vm1, %v8730_v0  ;;  %204 = vst.msk [vmem:[#allocation2 + $0x28] sm:$0x3] %vm200_vm1, %v8730_v0  ;;  %s192_s27 = scalar_select %p191_p10, %s5893_s19, 1  ;;  %vm1729_vm5 = vcmask 130048  }
  0x18   : > { %202 = vst.msk [vmem:[#allocation2 + $0x18] sm:$0xff] %vm197_vm0, %v8730_v0  ;;  %203 = vst.msk [vmem:[#allocation2 + $0x20] sm:$0xff] %vm197_vm0, %v8730_v0  ;;  %s5836_s9 = smov 16   ;;  %s5837_s10 = smov 20   ;;  %vm1762_vm6 = vcmask 162816   ;;  %vm1795_vm7 = vcmask 195584  }
  0x19   : > { %205 = vst.msk [vmem:[#allocation2 + $0x30] sm:$0xff] %vm197_vm0, %v8730_v0  ;;  %206 = vst.msk [vmem:[#allocation2 + $0x38] sm:$0xff] %vm197_vm0, %v8730_v0  ;;  %s4303_s28 = sshll.u32 %s192_s27, 8  ;;  %s5838_s11 = smov 24   ;;  %vm1828_vm8 = vcmask 228352   ;;  %vm1861_vm9 = vcmask 261120  }
  0x1a   : > { %207 = vst.msk [vmem:[#allocation2 + $0x40] sm:$0x3] %vm200_vm1, %v8730_v0  ;;  %210 = vst.msk [vmem:[#allocation2 + $0x58] sm:$0x3] %vm200_vm1, %v8730_v0  ;;  %s6035_s5 = scalar_lea.vmem %s8725_s0, %s4303_s28  ;;  %s5839_s27 = smov 28   ;;  %vm1930_vm10 = vcmask 293888  }
  0x1b   : > { %208 = vst.msk [vmem:[#allocation2 + $0x48] sm:$0xff] %vm197_vm0, %v8730_v0  ;;  %209 = vst.msk [vmem:[#allocation2 + $0x50] sm:$0xff] %vm197_vm0, %v8730_v0  ;;  %v255_v1 = vld [vmem:[%s6035_s5 + $0x10] sm:$0xff]  ;;  %v256_v2 = vld [vmem:[%s6035_s5 + $0x18] sm:$0xff]  ;;  %s5840_s28 = smov 32   ;;  %vm2178_vm11 = vcmask 58368  }
  0x1c   : > { %211 = vst.msk [vmem:[#allocation2 + $0x60] sm:$0xff] %vm197_vm0, %v8730_v0  ;;  %212 = vst.msk [vmem:[#allocation2 + $0x68] sm:$0xff] %vm197_vm0, %v8730_v0  ;;  %v253_v3 = vld [vmem:[%s6035_s5] sm:$0xff]  ;;  %v254_v4 = vld [vmem:[%s6035_s5 + $0x8] sm:$0xff]  ;;  %s5841_s29 = smov 48   ;;  %s5842_s30 = smov 56  }
  0x1d   : > { %213 = vst.msk [vmem:[#allocation2 + $0x70] sm:$0x3] %vm200_vm1, %v8730_v0  ;;  %216 = vst.msk [vmem:[#allocation2 + $0x88] sm:$0x3] %vm200_vm1, %v8730_v0  ;;  %v257_v5 = vld [vmem:[%s6035_s5 + $0x20] sm:$0xff]  ;;  %v258_v6 = vld [vmem:[%s6035_s5 + $0x28] sm:$0xff] }
  0x1e   : > { %214 = vst.msk [vmem:[#allocation2 + $0x78] sm:$0xff] %vm197_vm0, %v8730_v0  ;;  %215 = vst.msk [vmem:[#allocation2 + $0x80] sm:$0xff] %vm197_vm0, %v8730_v0  ;;  %v350_v7 = vld [vmem:[#allocation2 + $0x1] sm:$0xff]  ;;  %v351_v8 = vld [vmem:[#allocation2 + $0x9] sm:$0xff]  ;;  %vm3945_vm12 = vcmask 1043456   ;;  %vm3705_vm13 = vcmask 326656  }
  0x1f   : > { %217 = vst.msk [vmem:[#allocation2 + $0x90] sm:$0xff] %vm197_vm0, %v8730_v0  ;;  %218 = vst.msk [vmem:[#allocation2 + $0x98] sm:$0xff] %vm197_vm0, %v8730_v0  ;;  %v259_v9 = vld [vmem:[%s6035_s5 + $0x30] sm:$0xff]  ;;  %v4480_v10 = vpack.i.bf16 %v351_v8, %v350_v7  ;;  %v260_v11 = vld [vmem:[%s6035_s5 + $0x38] sm:$0xff]  ;;  %vm3738_vm14 = vcmask 392192   ;;  %vm3771_vm15 = vcmask 457728  }
  0x20   : > { %219 = vst.msk [vmem:[#allocation2 + $0xa0] sm:$0x3] %vm200_vm1, %v8730_v0  ;;  %222 = vst.msk [vmem:[#allocation2 + $0xb8] sm:$0x3] %vm200_vm1, %v8730_v0  ;;  %v261_v12 = vld [vmem:[%s6035_s5 + $0x40] sm:$0xff]  ;;  %v262_v13 = vld [vmem:[%s6035_s5 + $0x48] sm:$0xff] }
  0x21   : > { %220 = vst.msk [vmem:[#allocation2 + $0xa8] sm:$0xff] %vm197_vm0, %v8730_v0  ;;  %221 = vst.msk [vmem:[#allocation2 + $0xb0] sm:$0xff] %vm197_vm0, %v8730_v0  ;;  %v263_v14 = vld [vmem:[%s6035_s5 + $0x50] sm:$0xff]  ;;  %v264_v15 = vld [vmem:[%s6035_s5 + $0x58] sm:$0xff]  ;;  %4481 = vrot.lane.b32.xlu0 %v4480_v10, %s5833_s6  ;;  %s5845_s20 = smov [#allocation4]  }
  0x22   : > { %223 = vst.msk [vmem:[#allocation2 + $0xc0] sm:$0xff] %vm197_vm0, %v8730_v0  ;;  %224 = vst.msk [vmem:[#allocation2 + $0xc8] sm:$0xff] %vm197_vm0, %v8730_v0  ;;  %v265_v16 = vld [vmem:[%s6035_s5 + $0x60] sm:$0xff]  ;;  %v266_v17 = vld [vmem:[%s6035_s5 + $0x68] sm:$0xff]  ;;  %s5772_s22 = sshll.u32 %s5845_s20, 4  ;;  %s5773_s22 = int_to_ptr.vmem [resolvable:$false] %s5772_s22 }
  0x23   : > { %225 = vst.msk [vmem:[#allocation2 + $0xd0] sm:$0x3] %vm200_vm1, %v8730_v0  ;;  %228 = vst.msk [vmem:[#allocation2 + $0xe8] sm:$0x3] %vm200_vm1, %v8730_v0  ;;  %v267_v18 = vld [vmem:[%s6035_s5 + $0x70] sm:$0xff]  ;;  %v268_v19 = vld [vmem:[%s6035_s5 + $0x78] sm:$0xff] }
  0x24   : > { %226 = vst.msk [vmem:[#allocation2 + $0xd8] sm:$0xff] %vm197_vm0, %v8730_v0  ;;  %227 = vst.msk [vmem:[#allocation2 + $0xe0] sm:$0xff] %vm197_vm0, %v8730_v0  ;;  %v269_v20 = vld [vmem:[%s6035_s5 + $0x80] sm:$0xff]  ;;  %v270_v21 = vld [vmem:[%s6035_s5 + $0x88] sm:$0xff]  ;;  %s5774_s23 = scalar_lea.vmem %s5773_s22, 8192 }
  0x25   : > { %229 = vst.msk [vmem:[#allocation2 + $0xf0] sm:$0xff] %vm197_vm0, %v8730_v0  ;;  %230 = vst.msk [vmem:[#allocation2 + $0xf8] sm:$0xff] %vm197_vm0, %v8730_v0  ;;  %v271_v22 = vld [vmem:[%s6035_s5 + $0x90] sm:$0xff]  ;;  %v272_v23 = vld [vmem:[%s6035_s5 + $0x98] sm:$0xff] }
  0x26   : > { %231 = vst.msk [vmem:[#allocation2 + $0x100] sm:$0x3] %vm200_vm1, %v8730_v0  ;;  %234 = vst.msk [vmem:[#allocation2 + $0x118] sm:$0x3] %vm200_vm1, %v8730_v0  ;;  %v273_v24 = vld [vmem:[%s6035_s5 + $0xa0] sm:$0xff]  ;;  %v274_v25 = vld [vmem:[%s6035_s5 + $0xa8] sm:$0xff] }
  0x27   : > { %232 = vst.msk [vmem:[#allocation2 + $0x108] sm:$0xff] %vm197_vm0, %v8730_v0  ;;  %233 = vst.msk [vmem:[#allocation2 + $0x110] sm:$0xff] %vm197_vm0, %v8730_v0  ;;  %v275_v35 = vld [vmem:[%s6035_s5 + $0xb0] sm:$0xff]  ;;  %v276_v36 = vld [vmem:[%s6035_s5 + $0xb8] sm:$0xff] }
  0x28   : > { %235 = vst.msk [vmem:[#allocation2 + $0x120] sm:$0xff] %vm197_vm0, %v8730_v0  ;;  %236 = vst.msk [vmem:[#allocation2 + $0x128] sm:$0xff] %vm197_vm0, %v8730_v0  ;;  %v277_v50 = vld [vmem:[%s6035_s5 + $0xc0] sm:$0xff]  ;;  %v278_v51 = vld [vmem:[%s6035_s5 + $0xc8] sm:$0xff] }
  0x29   : > { %237 = vst.msk [vmem:[#allocation2 + $0x130] sm:$0x3] %vm200_vm1, %v8730_v0  ;;  %240 = vst.msk [vmem:[#allocation2 + $0x148] sm:$0x3] %vm200_vm1, %v8730_v0  ;;  %v279_v52 = vld [vmem:[%s6035_s5 + $0xd0] sm:$0xff]  ;;  %v280_v53 = vld [vmem:[%s6035_s5 + $0xd8] sm:$0xff] }
  0x2a   : > { %238 = vst.msk [vmem:[#allocation2 + $0x138] sm:$0xff] %vm197_vm0, %v8730_v0  ;;  %239 = vst.msk [vmem:[#allocation2 + $0x140] sm:$0xff] %vm197_vm0, %v8730_v0  ;;  %v281_v54 = vld [vmem:[%s6035_s5 + $0xe0] sm:$0xff]  ;;  %v282_v55 = vld [vmem:[%s6035_s5 + $0xe8] sm:$0xff] }
  0x2b   : > { %241 = vst.msk [vmem:[#allocation2 + $0x150] sm:$0xff] %vm197_vm0, %v8730_v0  ;;  %242 = vst.msk [vmem:[#allocation2 + $0x158] sm:$0xff] %vm197_vm0, %v8730_v0 }
  0x2c   : > { %243 = vst.msk [vmem:[#allocation2 + $0x160] sm:$0x3] %vm200_vm1, %v8730_v0  ;;  %246 = vst.msk [vmem:[#allocation2 + $0x178] sm:$0x3] %vm200_vm1, %v8730_v0 }
  0x2d   : > { %244 = vst.msk [vmem:[#allocation2 + $0x168] sm:$0xff] %vm197_vm0, %v8730_v0  ;;  %245 = vst.msk [vmem:[#allocation2 + $0x170] sm:$0xff] %vm197_vm0, %v8730_v0 }
  0x2e   : > { %247 = vst.msk [vmem:[#allocation2 + $0x180] sm:$0xff] %vm197_vm0, %v8730_v0  ;;  %248 = vst.msk [vmem:[#allocation2 + $0x188] sm:$0xff] %vm197_vm0, %v8730_v0 }
  0x2f   : > { %249 = vst.msk [vmem:[#allocation2 + $0x190] sm:$0x3] %vm200_vm1, %v8730_v0  ;;  %252 = vst.msk [vmem:[#allocation2 + $0x1a8] sm:$0x3] %vm200_vm1, %v8730_v0  ;;  %vm3896_vm1 = vcmask 588800  }
  0x30   : > { %250 = vst.msk [vmem:[#allocation2 + $0x198] sm:$0xff] %vm197_vm0, %v8730_v0  ;;  %251 = vst.msk [vmem:[#allocation2 + $0x1a0] sm:$0xff] %vm197_vm0, %v8730_v0 }
  0x31   : > { %288 = vst.msk [vmem:[#allocation2 + $0x31] sm:$0xff] %vm197_vm0, %v255_v1  ;;  %289 = vst.msk [vmem:[#allocation2 + $0x39] sm:$0xff] %vm197_vm0, %v256_v2 }
  0x32   : > { %286 = vst.msk [vmem:[#allocation2 + $0x19] sm:$0xff] %vm197_vm0, %v253_v3  ;;  %287 = vst.msk [vmem:[#allocation2 + $0x21] sm:$0xff] %vm197_vm0, %v254_v4 }
  0x33   : > { %290 = vst.msk [vmem:[#allocation2 + $0x49] sm:$0xff] %vm197_vm0, %v257_v5  ;;  %291 = vst.msk [vmem:[#allocation2 + $0x51] sm:$0xff] %vm197_vm0, %v258_v6 }
  0x34   : > { %292 = vst.msk [vmem:[#allocation2 + $0x61] sm:$0xff] %vm197_vm0, %v259_v9  ;;  %293 = vst.msk [vmem:[#allocation2 + $0x69] sm:$0xff] %vm197_vm0, %v260_v11 }
  0x35   : > { %294 = vst.msk [vmem:[#allocation2 + $0x79] sm:$0xff] %vm197_vm0, %v261_v12  ;;  %295 = vst.msk [vmem:[#allocation2 + $0x81] sm:$0xff] %vm197_vm0, %v262_v13 }
  0x36   : > { %296 = vst.msk [vmem:[#allocation2 + $0x91] sm:$0xff] %vm197_vm0, %v263_v14  ;;  %297 = vst.msk [vmem:[#allocation2 + $0x99] sm:$0xff] %vm197_vm0, %v264_v15  ;;  %v382_v15 = vld [vmem:[#allocation2 + $0x2] sm:$0xff] }
  0x37   : > { %298 = vst.msk [vmem:[#allocation2 + $0xa9] sm:$0xff] %vm197_vm0, %v265_v16  ;;  %299 = vst.msk [vmem:[#allocation2 + $0xb1] sm:$0xff] %vm197_vm0, %v266_v17  ;;  %v383_v16 = vld [vmem:[#allocation2 + $0xa] sm:$0xff] }
  0x38   : > { %300 = vst.msk [vmem:[#allocation2 + $0xc1] sm:$0xff] %vm197_vm0, %v267_v18  ;;  %301 = vst.msk [vmem:[#allocation2 + $0xc9] sm:$0xff] %vm197_vm0, %v268_v19  ;;  %v354_v26 = vld [vmem:[#allocation2 + $0x31] sm:$0xff]  ;;  %v355_v27 = vld [vmem:[#allocation2 + $0x39] sm:$0xff]  ;;  %v4560_v18 = vpack.i.bf16 %v383_v16, %v382_v15 }
  0x39   : > { %302 = vst.msk [vmem:[#allocation2 + $0xd9] sm:$0xff] %vm197_vm0, %v269_v20  ;;  %303 = vst.msk [vmem:[#allocation2 + $0xe1] sm:$0xff] %vm197_vm0, %v270_v21  ;;  %v352_v28 = vld [vmem:[#allocation2 + $0x19] sm:$0xff]  ;;  %v6082_v29 = vpack.i.bf16 %v355_v27, %v354_v26  ;;  %v353_v30 = vld [vmem:[#allocation2 + $0x21] sm:$0xff] }
  0x3a   : > { %304 = vst.msk [vmem:[#allocation2 + $0xf1] sm:$0xff] %vm197_vm0, %v271_v22  ;;  %305 = vst.msk [vmem:[#allocation2 + $0xf9] sm:$0xff] %vm197_vm0, %v272_v23  ;;  %v356_v31 = vld [vmem:[#allocation2 + $0x49] sm:$0xff]  ;;  %v357_v32 = vld [vmem:[#allocation2 + $0x51] sm:$0xff]  ;;  %v6084_v33 = vpack.i.bf16 %v353_v30, %v352_v28 }
  0x3b   : > { %306 = vst.msk [vmem:[#allocation2 + $0x109] sm:$0xff] %vm197_vm0, %v273_v24  ;;  %307 = vst.msk [vmem:[#allocation2 + $0x111] sm:$0xff] %vm197_vm0, %v274_v25  ;;  %v358_v34 = vld [vmem:[#allocation2 + $0x61] sm:$0xff]  ;;  %4491 = vrot.lane.b32.xlu1 %v6082_v29, %s5833_s6  ;;  %v6090_v37 = vpack.i.bf16 %v357_v32, %v356_v31  ;;  %v359_v38 = vld [vmem:[#allocation2 + $0x69] sm:$0xff] }
  0x3c   : > { %308 = vst.msk [vmem:[#allocation2 + $0x121] sm:$0xff] %vm197_vm0, %v275_v35  ;;  %309 = vst.msk [vmem:[#allocation2 + $0x129] sm:$0xff] %vm197_vm0, %v276_v36  ;;  %4486 = vrot.lane.b32.xlu0 %v6084_v33, %s5833_s6  ;;  %v6096_v39 = vpack.i.bf16 %v359_v38, %v358_v34  ;;  %v360_v40 = vld [vmem:[#allocation2 + $0x79] sm:$0xff]  ;;  %v361_v41 = vld [vmem:[#allocation2 + $0x81] sm:$0xff] }
  0x3d   : > { %v362_v42 = vld [vmem:[#allocation2 + $0x91] sm:$0xff]  ;;  %v363_v43 = vld [vmem:[#allocation2 + $0x99] sm:$0xff]  ;;  %v6100_v45 = vpack.i.bf16 %v361_v41, %v360_v40  ;;  %310 = vst.msk [vmem:[#allocation2 + $0x139] sm:$0xff] %vm197_vm0, %v277_v50  ;;  %311 = vst.msk [vmem:[#allocation2 + $0x141] sm:$0xff] %vm197_vm0, %v278_v51 }
  0x3e   : > { %v364_v44 = vld [vmem:[#allocation2 + $0xa9] sm:$0xff]  ;;  %v365_v46 = vld [vmem:[#allocation2 + $0xb1] sm:$0xff]  ;;  %v6104_v49 = vpack.i.bf16 %v363_v43, %v362_v42  ;;  %312 = vst.msk [vmem:[#allocation2 + $0x151] sm:$0xff] %vm197_vm0, %v279_v52  ;;  %313 = vst.msk [vmem:[#allocation2 + $0x159] sm:$0xff] %vm197_vm0, %v280_v53 }
  0x3f   : > { %4496 = vrot.lane.b32.xlu1 %v6090_v37, %s5833_s6  ;;  %v366_v47 = vld [vmem:[#allocation2 + $0xc1] sm:$0xff]  ;;  %v367_v48 = vld [vmem:[#allocation2 + $0xc9] sm:$0xff]  ;;  %314 = vst.msk [vmem:[#allocation2 + $0x169] sm:$0xff] %vm197_vm0, %v281_v54  ;;  %315 = vst.msk [vmem:[#allocation2 + $0x171] sm:$0xff] %vm197_vm0, %v282_v55  ;;  %v6120_v56 = vpack.i.bf16 %v365_v46, %v364_v44 }
  0x40   : > { %4501 = vrot.lane.b32.xlu0 %v6096_v39, %s5833_s6  ;;  %v6124_v57 = vpack.i.bf16 %v367_v48, %v366_v47  ;;  %v368_v58 = vld [vmem:[#allocation2 + $0xd9] sm:$0xff]  ;;  %v369_v59 = vld [vmem:[#allocation2 + $0xe1] sm:$0xff]  ;;  %2176 = vst.msk [vmem:[#allocation3] sm:$0xff] %vm1663_vm2, %v8730_v0  ;;  %2177 = vst.msk [vmem:[#allocation3 + $0x8] sm:$0xff] %vm1663_vm2, %v8730_v0 }
  0x41   : > { %v370_v60 = vld [vmem:[#allocation2 + $0xf1] sm:$0xff]  ;;  %v371_v61 = vld [vmem:[#allocation2 + $0xf9] sm:$0xff]  ;;  %v6128_v62 = vpack.i.bf16 %v369_v59, %v368_v58  ;;  %2180 = vst.msk [vmem:[#allocation3 + $0x18] sm:$0xff] %vm1663_vm2, %v8730_v0  ;;  %2181 = vst.msk [vmem:[#allocation3 + $0x20] sm:$0xff] %vm1663_vm2, %v8730_v0 }
  0x42   : > { %v6132_v63 = vpack.i.bf16 %v371_v61, %v370_v60  ;;  %v372_v1 = vld [vmem:[#allocation2 + $0x109] sm:$0xff]  ;;  %v373_v2 = vld [vmem:[#allocation2 + $0x111] sm:$0xff]  ;;  %2183 = vst.msk [vmem:[#allocation3 + $0x30] sm:$0xff] %vm1663_vm2, %v8730_v0  ;;  %2184 = vst.msk [vmem:[#allocation3 + $0x38] sm:$0xff] %vm1663_vm2, %v8730_v0 }
  0x43   : > { %4506 = vrot.lane.b32.xlu1 %v6100_v45, %s5833_s6  ;;  %v374_v3 = vld [vmem:[#allocation2 + $0x121] sm:$0xff]  ;;  %v375_v4 = vld [vmem:[#allocation2 + $0x129] sm:$0xff]  ;;  %v6136_v5 = vpack.i.bf16 %v373_v2, %v372_v1  ;;  %2186 = vst.msk [vmem:[#allocation3 + $0x48] sm:$0xff] %vm1663_vm2, %v8730_v0  ;;  %2187 = vst.msk [vmem:[#allocation3 + $0x50] sm:$0xff] %vm1663_vm2, %v8730_v0 }
  0x44   : > { %4511 = vrot.lane.b32.xlu0 %v6104_v49, %s5833_s6  ;;  %v6140_v6 = vpack.i.bf16 %v375_v4, %v374_v3  ;;  %v376_v7 = vld [vmem:[#allocation2 + $0x139] sm:$0xff]  ;;  %v377_v8 = vld [vmem:[#allocation2 + $0x141] sm:$0xff]  ;;  %2189 = vst.msk [vmem:[#allocation3 + $0x60] sm:$0xff] %vm1663_vm2, %v8730_v0  ;;  %2190 = vst.msk [vmem:[#allocation3 + $0x68] sm:$0xff] %vm1663_vm2, %v8730_v0 }
  0x45   : > { %v378_v9 = vld [vmem:[#allocation2 + $0x151] sm:$0xff]  ;;  %v379_v10 = vld [vmem:[#allocation2 + $0x159] sm:$0xff]  ;;  %2192 = vst.msk [vmem:[#allocation3 + $0x78] sm:$0xff] %vm1663_vm2, %v8730_v0  ;;  %2193 = vst.msk [vmem:[#allocation3 + $0x80] sm:$0xff] %vm1663_vm2, %v8730_v0  ;;  %v6216_v11 = vpack.i.bf16 %v377_v8, %v376_v7 }
  0x46   : > { %2195 = vst.msk [vmem:[#allocation3 + $0x90] sm:$0xff] %vm1663_vm2, %v8730_v0  ;;  %2196 = vst.msk [vmem:[#allocation3 + $0x98] sm:$0xff] %vm1663_vm2, %v8730_v0  ;;  %v6220_v12 = vpack.i.bf16 %v379_v10, %v378_v9  ;;  %v380_v13 = vld [vmem:[#allocation2 + $0x169] sm:$0xff]  ;;  %v381_v14 = vld [vmem:[#allocation2 + $0x171] sm:$0xff] }
  0x47   : > { %4516 = vrot.lane.b32.xlu1 %v6120_v56, %s5833_s6  ;;  %2198 = vst.msk [vmem:[#allocation3 + $0xa8] sm:$0xff] %vm1663_vm2, %v8730_v0  ;;  %2199 = vst.msk [vmem:[#allocation3 + $0xb0] sm:$0xff] %vm1663_vm2, %v8730_v0  ;;  %v6224_v17 = vpack.i.bf16 %v381_v14, %v380_v13  ;;  %v384_v19 = vld [vmem:[#allocation2 + $0x1a] sm:$0xff]  ;;  %v385_v20 = vld [vmem:[#allocation2 + $0x22] sm:$0xff] }
  0x48   : > { %4521 = vrot.lane.b32.xlu0 %v6124_v57, %s5833_s6  ;;  %2201 = vst.msk [vmem:[#allocation3 + $0xc0] sm:$0xff] %vm1663_vm2, %v8730_v0  ;;  %2202 = vst.msk [vmem:[#allocation3 + $0xc8] sm:$0xff] %vm1663_vm2, %v8730_v0  ;;  %v386_v21 = vld [vmem:[#allocation2 + $0x32] sm:$0xff]  ;;  %v387_v22 = vld [vmem:[#allocation2 + $0x3a] sm:$0xff]  ;;  %v6230_v23 = vpack.i.bf16 %v385_v20, %v384_v19 }
  0x49   : > { %2204 = vst.msk [vmem:[#allocation3 + $0xd8] sm:$0xff] %vm1663_vm2, %v8730_v0  ;;  %2205 = vst.msk [vmem:[#allocation3 + $0xe0] sm:$0xff] %vm1663_vm2, %v8730_v0  ;;  %v6233_v24 = vpack.i.bf16 %v387_v22, %v386_v21  ;;  %v388_v25 = vld [vmem:[#allocation2 + $0x4a] sm:$0xff]  ;;  %v389_v26 = vld [vmem:[#allocation2 + $0x52] sm:$0xff] }
  0x4a   : > { %2207 = vst.msk [vmem:[#allocation3 + $0xf0] sm:$0xff] %vm1663_vm2, %v8730_v0  ;;  %2208 = vst.msk [vmem:[#allocation3 + $0xf8] sm:$0xff] %vm1663_vm2, %v8730_v0  ;;  %v390_v27 = vld [vmem:[#allocation2 + $0x62] sm:$0xff]  ;;  %v391_v28 = vld [vmem:[#allocation2 + $0x6a] sm:$0xff]  ;;  %v6241_v32 = vpack.i.bf16 %v389_v26, %v388_v25 }
  0x4b   : > { %4526 = vrot.lane.b32.xlu1 %v6128_v62, %s5833_s6  ;;  %2210 = vst.msk [vmem:[#allocation3 + $0x108] sm:$0xff] %vm1663_vm2, %v8730_v0  ;;  %2211 = vst.msk [vmem:[#allocation3 + $0x110] sm:$0xff] %vm1663_vm2, %v8730_v0  ;;  %v283_v30 = vld [vmem:[%s6035_s5 + $0xf0] sm:$0xff]  ;;  %v284_v31 = vld [vmem:[%s6035_s5 + $0xf8] sm:$0xff]  ;;  %v6245_v34 = vpack.i.bf16 %v391_v28, %v390_v27  ;;  %s5843_s5 = smov 64  }
  0x4c   : > { %4531 = vrot.lane.b32.xlu0 %v6132_v63, %s5833_s6  ;;  %2213 = vst.msk [vmem:[#allocation3 + $0x120] sm:$0xff] %vm1663_vm2, %v8730_v0  ;;  %2214 = vst.msk [vmem:[#allocation3 + $0x128] sm:$0xff] %vm1663_vm2, %v8730_v0  ;;  %v392_v35 = vld [vmem:[#allocation2 + $0x7a] sm:$0xff]  ;;  %v393_v36 = vld [vmem:[#allocation2 + $0x82] sm:$0xff] }
  0x4d   : > { %2216 = vst.msk [vmem:[#allocation3 + $0x138] sm:$0xff] %vm1663_vm2, %v8730_v0  ;;  %2217 = vst.msk [vmem:[#allocation3 + $0x140] sm:$0xff] %vm1663_vm2, %v8730_v0  ;;  %v394_v38 = vld [vmem:[#allocation2 + $0x92] sm:$0xff]  ;;  %v395_v40 = vld [vmem:[#allocation2 + $0x9a] sm:$0xff]  ;;  %v6249_v41 = vpack.i.bf16 %v393_v36, %v392_v35 }
  0x4e   : > { %2219 = vst.msk [vmem:[#allocation3 + $0x150] sm:$0xff] %vm1663_vm2, %v8730_v0  ;;  %2220 = vst.msk [vmem:[#allocation3 + $0x158] sm:$0xff] %vm1663_vm2, %v8730_v0  ;;  %v6253_v42 = vpack.i.bf16 %v395_v40, %v394_v38  ;;  %v396_v43 = vld [vmem:[#allocation2 + $0xaa] sm:$0xff]  ;;  %v397_v44 = vld [vmem:[#allocation2 + $0xb2] sm:$0xff] }
  0x4f   : > { %2222 = vst.msk [vmem:[#allocation3 + $0x168] sm:$0xff] %vm1663_vm2, %v8730_v0  ;;  %2223 = vst.msk [vmem:[#allocation3 + $0x170] sm:$0xff] %vm1663_vm2, %v8730_v0  ;;  %4536 = vrot.lane.b32.xlu1 %v6136_v5, %s5833_s6  ;;  %v398_v46 = vld [vmem:[#allocation2 + $0xc2] sm:$0xff]  ;;  %v399_v47 = vld [vmem:[#allocation2 + $0xca] sm:$0xff]  ;;  %v6257_v48 = vpack.i.bf16 %v397_v44, %v396_v43 }
  0x50   : > { %2225 = vst.msk [vmem:[#allocation3 + $0x180] sm:$0xff] %vm1663_vm2, %v8730_v0  ;;  %2226 = vst.msk [vmem:[#allocation3 + $0x188] sm:$0xff] %vm1663_vm2, %v8730_v0  ;;  %4541 = vrot.lane.b32.xlu0 %v6140_v6, %s5833_s6  ;;  %v6261_v50 = vpack.i.bf16 %v399_v47, %v398_v46  ;;  %v400_v51 = vld [vmem:[#allocation2 + $0xda] sm:$0xff]  ;;  %v401_v52 = vld [vmem:[#allocation2 + $0xe2] sm:$0xff] }
  0x51   : > { %2228 = vst.msk [vmem:[#allocation3 + $0x198] sm:$0xff] %vm1663_vm2, %v8730_v0  ;;  %2229 = vst.msk [vmem:[#allocation3 + $0x1a0] sm:$0xff] %vm1663_vm2, %v8730_v0  ;;  %v402_v53 = vld [vmem:[#allocation2 + $0xf2] sm:$0xff]  ;;  %v403_v54 = vld [vmem:[#allocation2 + $0xfa] sm:$0xff]  ;;  %v6265_v55 = vpack.i.bf16 %v401_v52, %v400_v51 }
  0x52   : > { %316 = vst.msk [vmem:[#allocation2 + $0x181] sm:$0xff] %vm197_vm0, %v283_v30  ;;  %317 = vst.msk [vmem:[#allocation2 + $0x189] sm:$0xff] %vm197_vm0, %v284_v31  ;;  %v6269_v58 = vpack.i.bf16 %v403_v54, %v402_v53  ;;  %v404_v59 = vld [vmem:[#allocation2 + $0x10a] sm:$0xff]  ;;  %v405_v60 = vld [vmem:[#allocation2 + $0x112] sm:$0xff] }
  0x53   : > { %4546 = vrot.lane.b32.xlu1 %v6216_v11, %s5833_s6  ;;  %v406_v61 = vld [vmem:[#allocation2 + $0x122] sm:$0xff]  ;;  %v407_v1 = vld [vmem:[#allocation2 + $0x12a] sm:$0xff]  ;;  %v6273_v2 = vpack.i.bf16 %v405_v60, %v404_v59  ;;  %v408_v4 = vld [vmem:[#allocation2 + $0x13a] sm:$0xff] }
  0x54   : > { %4551 = vrot.lane.b32.xlu0 %v6220_v12, %s5833_s6  ;;  %v6277_v3 = vpack.i.bf16 %v407_v1, %v406_v61  ;;  %v409_v7 = vld [vmem:[#allocation2 + $0x142] sm:$0xff]  ;;  %v410_v8 = vld [vmem:[#allocation2 + $0x152] sm:$0xff]  ;;  %v411_v9 = vld [vmem:[#allocation2 + $0x15a] sm:$0xff] }
  0x55   : > { %v6281_v10 = vpack.i.bf16 %v409_v7, %v408_v4  ;;  %v6285_v13 = vpack.i.bf16 %v411_v9, %v410_v8  ;;  %v412_v14 = vld [vmem:[#allocation2 + $0x16a] sm:$0xff]  ;;  %v413_v15 = vld [vmem:[#allocation2 + $0x172] sm:$0xff]  ;;  %v6318_v30 = vld [vmem:[#allocation2 + $0x60] sm:$0xff] }
  0x56   : > { %v6287_v16 = vld [vmem:[#allocation2 + $0x18] sm:$0xff]  ;;  %v6293_v19 = vpack.i.bf16 %v413_v15, %v412_v14  ;;  %v6299_v21 = vld [vmem:[#allocation2 + $0x30] sm:$0xff]  ;;  %v6303_v25 = vld [vmem:[#allocation2 + $0x48] sm:$0xff] }
  0x57   : > { %4556 = vrot.lane.b32.xlu1 %v6224_v17, %s5833_s6  ;;  %v6301_v22 = vld [vmem:[#allocation2 + $0x38] sm:$0xff]  ;;  %v6305_v26 = vld [vmem:[#allocation2 + $0x50] sm:$0xff]  ;;  %v6320_v31 = vld [vmem:[#allocation2 + $0x68] sm:$0xff]  ;;  %s5844_s6 = smov 40  }
  0x58   : > { %4561 = vrot.lane.b32.xlu0 %v4560_v18, %s5834_s7  ;;  %v6289_v18 = vld [vmem:[#allocation2 + $0x20] sm:$0xff]  ;;  %v6311_v27 = vpack.i.bf16 %v6301_v22, %v6299_v21  ;;  %v6316_v28 = vpack.i.bf16 %v6305_v26, %v6303_v25  ;;  %v6322_v35 = vld [vmem:[#allocation2 + $0x78] sm:$0xff]  ;;  %v6330_v38 = vpack.i.bf16 %v6320_v31, %v6318_v30  ;;  %v6338_v43 = vld [vmem:[#allocation2 + $0x90] sm:$0xff] }
  0x59   : > { %v4640_v20 = vpack.i.bf16 %v6289_v18, %v6287_v16  ;;  %v6324_v36 = vld [vmem:[#allocation2 + $0x80] sm:$0xff]  ;;  %v6340_v44 = vld [vmem:[#allocation2 + $0x98] sm:$0xff]  ;;  %v6342_v46 = vld [vmem:[#allocation2 + $0xa8] sm:$0xff] }
  0x5a   : > { %v6336_v40 = vpack.i.bf16 %v6324_v36, %v6322_v35  ;;  %8804 = vst [vmem:[#allocation7_spill] sm:$0xff] %v6342_v46  ;;  %v6344_v47 = vld [vmem:[#allocation2 + $0xb0] sm:$0xff]  ;;  %v6350_v51 = vpack.i.bf16 %v6340_v44, %v6338_v43  ;;  %v6358_v53 = vld [vmem:[#allocation2 + $0xc0] sm:$0xff]  ;;  %v6360_v54 = vld [vmem:[#allocation2 + $0xc8] sm:$0xff] }
  0x5b   : > { %4566 = vrot.lane.b32.xlu1 %v6230_v23, %s5834_s7  ;;  %v6356_v52 = vpack.i.bf16 %v6344_v47, %v6342_v46  ;;  %8805 = vst [vmem:[#allocation8_spill] sm:$0xff] %v6358_v53  ;;  %8806 = vst [vmem:[#allocation9_spill] sm:$0xff] %v6360_v54  ;;  %v6362_v59 = vld [vmem:[#allocation2 + $0xd8] sm:$0xff]  ;;  %v6364_v60 = vld [vmem:[#allocation2 + $0xe0] sm:$0xff]  ;;  %v6370_v61 = vpack.i.bf16 %v6360_v54, %v6358_v53 }
  0x5c   : > { %4571 = vrot.lane.b32.xlu0 %v6233_v24, %s5834_s7  ;;  %8807 = vst [vmem:[#allocation10_spill] sm:$0xff] %v6362_v59  ;;  %8808 = vst [vmem:[#allocation11_spill] sm:$0xff] %v6364_v60  ;;  %v6376_v1 = vpack.i.bf16 %v6364_v60, %v6362_v59  ;;  %v6378_v4 = vld [vmem:[#allocation2 + $0xf0] sm:$0xff]  ;;  %v6380_v7 = vld [vmem:[#allocation2 + $0xf8] sm:$0xff] }
  0x5d   : > { %8809 = vst [vmem:[#allocation12_spill] sm:$0xff] %v6378_v4  ;;  %8810 = vst [vmem:[#allocation13_spill] sm:$0xff] %v6380_v7  ;;  %v6382_v8 = vld [vmem:[#allocation2 + $0x108] sm:$0xff]  ;;  %v6384_v9 = vld [vmem:[#allocation2 + $0x110] sm:$0xff]  ;;  %v6390_v14 = vpack.i.bf16 %v6380_v7, %v6378_v4 }
  0x5e   : > { %8811 = vst [vmem:[#allocation14_spill] sm:$0xff] %v6382_v8  ;;  %8812 = vst [vmem:[#allocation15_spill] sm:$0xff] %v6384_v9  ;;  %v6396_v15 = vpack.i.bf16 %v6384_v9, %v6382_v8  ;;  %v6400_v0 = vld [vmem:[#allocation2 + $0x128] sm:$0xff]  ;;  %v6402_v59 = vld [vmem:[#allocation2 + $0x138] sm:$0xff] }
  0x5f   : > { %4576 = vrot.lane.b32.xlu1 %v6241_v32, %s5834_s7  ;;  %8814 = vst [vmem:[#allocation17_spill] sm:$0xff] %v6400_v0  ;;  %8815 = vst [vmem:[#allocation18_spill] sm:$0xff] %v6402_v59  ;;  %v6404_v60 = vld [vmem:[#allocation2 + $0x140] sm:$0xff]  ;;  %v6418_v9 = vld [vmem:[#allocation2 + $0x150] sm:$0xff] }
  0x60   : > { %4581 = vrot.lane.b32.xlu0 %v6245_v34, %s5834_s7  ;;  %8816 = vst [vmem:[#allocation19_spill] sm:$0xff] %v6404_v60  ;;  %v6416_v8 = vpack.i.bf16 %v6404_v60, %v6402_v59  ;;  %v6420_v7 = vld [vmem:[#allocation2 + $0x158] sm:$0xff]  ;;  %v6422_v53 = vld [vmem:[#allocation2 + $0x168] sm:$0xff]  ;;  %v6424_v54 = vld [vmem:[#allocation2 + $0x170] sm:$0xff] }
  0x61   : > { %v6436_v59 = vpack.i.bf16 %v6424_v54, %v6422_v53  ;;  %v444_v60 = vld [vmem:[#allocation2 + $0x180] sm:$0xff] }
  0x63   : > { %4586 = vrot.lane.b32.xlu1 %v6249_v41, %s5834_s7 }
  0x64   : > { %4591 = vrot.lane.b32.xlu0 %v6253_v42, %s5834_s7 }
  0x67   : > { %4596 = vrot.lane.b32.xlu1 %v6257_v48, %s5834_s7 }
  0x68   : > { %4601 = vrot.lane.b32.xlu0 %v6261_v50, %s5834_s7 }
  0x6b   : > { %4606 = vrot.lane.b32.xlu1 %v6265_v55, %s5834_s7 }
  0x6c   : > { %4611 = vrot.lane.b32.xlu0 %v6269_v58, %s5834_s7 }
  0x6f   : > { %4616 = vrot.lane.b32.xlu1 %v6273_v2, %s5834_s7 }
  0x70   : > { %4621 = vrot.lane.b32.xlu0 %v6277_v3, %s5834_s7 }
  0x73   : > { %4626 = vrot.lane.b32.xlu1 %v6281_v10, %s5834_s7 }
  0x74   : > { %4631 = vrot.lane.b32.xlu0 %v6285_v13, %s5834_s7 }
  0x77   : > { %4636 = vrot.lane.b32.xlu1 %v6293_v19, %s5834_s7 }
  0x78   : > { %4641 = vrot.lane.b32.xlu0 %v4640_v20, %s5835_s8  ;;  %v6398_v20 = vld [vmem:[#allocation2 + $0x120] sm:$0xff] }
  0x79   : > { %8813 = vst [vmem:[#allocation16_spill] sm:$0xff] %v6398_v20  ;;  %v6410_v4 = vpack.i.bf16 %v6400_v0, %v6398_v20  ;;  %v6430_v20 = vpack.i.bf16 %v6420_v7, %v6418_v9  ;;  %v445_v0 = vld [vmem:[#allocation2 + $0x188] sm:$0xff] }
  0x7a   : > { %v6440_v46 = vpack.i.bf16 %v445_v0, %v444_v60 }
  0x7b   : > { %4646 = vrot.lane.b32.xlu1 %v6311_v27, %s5835_s8 }
  0x7c   : > { %4651 = vrot.lane.b32.xlu0 %v6316_v28, %s5835_s8 }
  0x7f   : > { %4656 = vrot.lane.b32.xlu1 %v6330_v38, %s5835_s8 }
  0x80   : > { %4661 = vrot.lane.b32.xlu0 %v6336_v40, %s5835_s8 }
  0x83   : > { %4666 = vrot.lane.b32.xlu1 %v6350_v51, %s5835_s8 }
  0x84   : > { %4671 = vrot.lane.b32.xlu0 %v6356_v52, %s5835_s8 }
  0x87   : > { %4676 = vrot.lane.b32.xlu1 %v6370_v61, %s5835_s8 }
  0x88   : > { %4681 = vrot.lane.b32.xlu0 %v6376_v1, %s5835_s8 }
  0x8b   : > { %4686 = vrot.lane.b32.xlu1 %v6390_v14, %s5835_s8 }
  0x8c   : > { %4691 = vrot.lane.b32.xlu0 %v6396_v15, %s5835_s8 }
  0x8f   : > { %4696 = vrot.lane.b32.xlu1 %v6410_v4, %s5835_s8 }
  0x90   : > { %4701 = vrot.lane.b32.xlu0 %v6416_v8, %s5835_s8 }
  0x93   : > { %4706 = vrot.lane.b32.xlu1 %v6430_v20, %s5835_s8  ;;  %v6464_v0 = vpop.permute.xlu0 %4481 }
  0x94   : > { %4711 = vrot.lane.b32.xlu0 %v6436_v59, %s5835_s8 }
  0x97   : > { %4716 = vrot.lane.b32.xlu1 %v6440_v46, %s5835_s8 }
  0x98   : > { %4721 = vrot.lane.b32.xlu0 %v6084_v33, %s5836_s9 }
  0x9b   : > { %4726 = vrot.lane.b32.xlu1 %v6082_v29, %s5836_s9 }
  0x9c   : > { %4731 = vrot.lane.b32.xlu0 %v6090_v37, %s5836_s9  ;;  %v476_v37 = vld [vmem:[#allocation2 + $0x181] sm:$0xff] }
  0x9f   : > { %4736 = vrot.lane.b32.xlu1 %v6096_v39, %s5836_s9  ;;  %v477_v39 = vld [vmem:[#allocation2 + $0x189] sm:$0xff] }
  0xa0   : > { %4741 = vrot.lane.b32.xlu0 %v6100_v45, %s5836_s9 }
  0xa3   : > { %4746 = vrot.lane.b32.xlu1 %v6104_v49, %s5836_s9 }
  0xa4   : > { %4751 = vrot.lane.b32.xlu0 %v6120_v56, %s5836_s9  ;;  %v4795_v56 = vpack.i.bf16 %v477_v39, %v476_v37 }
  0xa7   : > { %4756 = vrot.lane.b32.xlu1 %v6124_v57, %s5836_s9 }
  0xa8   : > { %4761 = vrot.lane.b32.xlu0 %v6128_v62, %s5836_s9 }
  0xab   : > { %4766 = vrot.lane.b32.xlu1 %v6132_v63, %s5836_s9 }
  0xac   : > { %4771 = vrot.lane.b32.xlu0 %v6136_v5, %s5836_s9 }
  0xad   : > { %v6470_v29 = vpop.permute.xlu1 %4491 }
  0xae   : > { %v6472_v33 = vpop.permute.xlu0 %4486 }
  0xaf   : > { %4776 = vrot.lane.b32.xlu1 %v6140_v6, %s5836_s9 }
  0xb0   : > { %4781 = vrot.lane.b32.xlu0 %v6216_v11, %s5836_s9 }
  0xb1   : > { %v6478_v45 = vpop.permute.xlu1 %4496 }
  0xb2   : > { %v6480_v49 = vpop.permute.xlu0 %4501 }
  0xb3   : > { %4786 = vrot.lane.b32.xlu1 %v6220_v12, %s5836_s9 }
  0xb4   : > { %4791 = vrot.lane.b32.xlu0 %v6224_v17, %s5836_s9 }
  0xb5   : > { %v6486_v57 = vpop.permute.xlu1 %4506 }
  0xb6   : > { %v6488_v62 = vpop.permute.xlu0 %4511 }
  0xb7   : > { %4796 = vrot.lane.b32.xlu1 %v4795_v56, %s5836_s9  ;;  %v542_v56 = vld [vmem:[#allocation2 + $0x1a0] sm:$0xff] }
  0xb8   : > { %4801 = vrot.lane.b32.xlu0 %v6230_v23, %s5837_s10 }
  0xb9   : > { %v6493_v63 = vpop.permute.xlu1 %4516 }
  0xba   : > { %v6495_v5 = vpop.permute.xlu0 %4521 }
  0xbb   : > { %4806 = vrot.lane.b32.xlu1 %v6233_v24, %s5837_s10 }
  0xbc   : > { %4811 = vrot.lane.b32.xlu0 %v6241_v32, %s5837_s10 }
  0xbd   : > { %v6501_v6 = vpop.permute.xlu1 %4526 }
  0xbe   : > { %v6503_v11 = vpop.permute.xlu0 %4531 }
  0xbf   : > { %4816 = vrot.lane.b32.xlu1 %v6245_v34, %s5837_s10 }
  0xc0   : > { %4821 = vrot.lane.b32.xlu0 %v6249_v41, %s5837_s10 }
  0xc1   : > { %v6509_v12 = vpop.permute.xlu1 %4536 }
  0xc2   : > { %v6511_v17 = vpop.permute.xlu0 %4541 }
  0xc3   : > { %4826 = vrot.lane.b32.xlu1 %v6253_v42, %s5837_s10 }
  0xc4   : > { %4831 = vrot.lane.b32.xlu0 %v6257_v48, %s5837_s10  ;;  %v508_v48 = vld [vmem:[#allocation2 + $0x182] sm:$0xff] }
  0xc5   : > { %v6517_v23 = vpop.permute.xlu1 %4546 }
  0xc6   : > { %v6519_v24 = vpop.permute.xlu0 %4551 }
  0xc7   : > { %4836 = vrot.lane.b32.xlu1 %v6261_v50, %s5837_s10  ;;  %v509_v50 = vld [vmem:[#allocation2 + $0x18a] sm:$0xff] }
  0xc8   : > { %4841 = vrot.lane.b32.xlu0 %v6265_v55, %s5837_s10 }
  0xc9   : > { %v6525_v32 = vpop.permute.xlu1 %4556 }
  0xca   : > { %v6527_v34 = vpop.permute.xlu0 %4561 }
  0xcb   : > { %4846 = vrot.lane.b32.xlu1 %v6269_v58, %s5837_s10  ;;  %v6547_v58 = vpack.i.bf16 %v509_v50, %v508_v48  ;;  %v543_v48 = vld [vmem:[#allocation2 + $0x31] sm:$0xff]  ;;  %v544_v50 = vld [vmem:[#allocation2 + $0x39] sm:$0xff] }
  0xcc   : > { %4851 = vrot.lane.b32.xlu0 %v6273_v2, %s5837_s10 }
  0xcd   : > { %v6533_v41 = vpop.permute.xlu1 %4566 }
  0xce   : > { %v6535_v42 = vpop.permute.xlu0 %4571 }
  0xcf   : > { %4856 = vrot.lane.b32.xlu1 %v6277_v3, %s5837_s10 }
  0xd0   : > { %4861 = vrot.lane.b32.xlu0 %v6281_v10, %s5837_s10 }
  0xd1   : > { %v6541_v55 = vpop.permute.xlu1 %4576 }
  0xd2   : > { %v6543_v60 = vpop.permute.xlu0 %4581 }
  0xd3   : > { %4866 = vrot.lane.b32.xlu1 %v6285_v13, %s5837_s10 }
  0xd4   : > { %4871 = vrot.lane.b32.xlu0 %v6293_v19, %s5837_s10 }
  0xd5   : > { %v6551_v2 = vpop.permute.xlu1 %4586 }
  0xd6   : > { %v6553_v3 = vpop.permute.xlu0 %4591 }
  0xd7   : > { %4876 = vrot.lane.b32.xlu1 %v6547_v58, %s5837_s10 }
  0xd8   : > { %4881 = vrot.lane.b32.xlu0 %v6311_v27, %s5838_s11 }
  0xd9   : > { %v6559_v10 = vpop.permute.xlu1 %4596 }
  0xda   : > { %8817 = vst [vmem:[#allocation20_spill] sm:$0xff] %v6559_v10  ;;  %v6561_v37 = vpop.permute.xlu0 %4601 }
  0xdb   : > { %8818 = vst [vmem:[#allocation21_spill] sm:$0xff] %v6561_v37  ;;  %4886 = vrot.lane.b32.xlu1 %v6316_v28, %s5838_s11  ;;  %v574_v37 = vld [vmem:[#allocation2 + $0x1a1] sm:$0xff] }
  0xdc   : > { %4891 = vrot.lane.b32.xlu0 %v6330_v38, %s5838_s11 }
  0xdd   : > { %v6567_v13 = vpop.permute.xlu1 %4606 }
  0xde   : > { %8819 = vst [vmem:[#allocation22_spill] sm:$0xff] %v6567_v13  ;;  %v6569_v19 = vpop.permute.xlu0 %4611  ;;  %v4503_v13 = vunpack.i.l.bf16 %v6480_v49 }
  0xdf   : > { %8820 = vst [vmem:[#allocation23_spill] sm:$0xff] %v6569_v19  ;;  %4896 = vrot.lane.b32.xlu1 %v6336_v40, %s5838_s11  ;;  %v4489_v19 = vunpack.i.h.bf16 %v6472_v33 }
  0xe0   : > { %4901 = vrot.lane.b32.xlu0 %v6350_v51, %s5838_s11 }
  0xe1   : > { %v6575_v27 = vpop.permute.xlu1 %4616 }
  0xe2   : > { %8821 = vst [vmem:[#allocation24_spill] sm:$0xff] %v6575_v27  ;;  %v6577_v39 = vpop.permute.xlu0 %4621 }
  0xe3   : > { %8822 = vst [vmem:[#allocation25_spill] sm:$0xff] %v6577_v39  ;;  %4906 = vrot.lane.b32.xlu1 %v6356_v52, %s5838_s11  ;;  %v5760_v52 = vld [vmem:[%s8726_s1] sm:$0xff]   ;;  %v570_v39 = vld [vmem:[#allocation2 + $0x171] sm:$0xff] }
  0xe4   : > { %4911 = vrot.lane.b32.xlu0 %v6370_v61, %s5838_s11  ;;  %4345 = vmatprep.subr.bf16.mxu0 %v5760_v52 }
  0xe5   : > { %v6583_v28 = vpop.permute.xlu1 %4626  ;;  %4346 = vmatpush3.bf16.msra.mxu0 %v5760_v52 }
  0xe6   : > { %8823 = vst [vmem:[#allocation26_spill] sm:$0xff] %v6583_v28  ;;  %v6585_v38 = vpop.permute.xlu0 %4631 }
  0xe7   : > { %8824 = vst [vmem:[#allocation27_spill] sm:$0xff] %v6585_v38  ;;  %4916 = vrot.lane.b32.xlu1 %v6376_v1, %s5838_s11 }
  0xe8   : > { %4921 = vrot.lane.b32.xlu0 %v6390_v14, %s5838_s11  ;;  %v5761_v14 = vld [vmem:[%s8726_s1 + $0x8] sm:$0xff]  }
  0xe9   : > { %v6591_v40 = vpop.permute.xlu1 %4636  ;;  %4347 = vmatprep.subr.bf16.mxu0 %v5761_v14 }
  0xea   : > { %8825 = vst [vmem:[#allocation28_spill] sm:$0xff] %v6591_v40  ;;  %v6593_v51 = vpop.permute.xlu0 %4641  ;;  %4348 = vmatpush3.bf16.msra.mxu0 %v5761_v14  ;;  %v576_v40 = vld [vmem:[#allocation2 + $0x3a] sm:$0xff] }
  0xeb   : > { %8826 = vst [vmem:[#allocation29_spill] sm:$0xff] %v6593_v51  ;;  %4926 = vrot.lane.b32.xlu1 %v6396_v15, %s5838_s11  ;;  %v541_v15 = vld [vmem:[#allocation2 + $0x198] sm:$0xff] }
  0xec   : > { %4931 = vrot.lane.b32.xlu0 %v6410_v4, %s5838_s11 }
  0xed   : > { %v6602_v61 = vpop.permute.xlu1 %4646 }
  0xee   : > { %8827 = vst [vmem:[#allocation30_spill] sm:$0xff] %v6602_v61  ;;  %v6604_v1 = vpop.permute.xlu0 %4651  ;;  %v545_v61 = vld [vmem:[#allocation2 + $0x49] sm:$0xff] }
  0xef   : > { %8828 = vst [vmem:[#allocation31_spill] sm:$0xff] %v6604_v1  ;;  %4936 = vrot.lane.b32.xlu1 %v6416_v8, %s5838_s11  ;;  %v5762_v1 = vld [vmem:[%s8726_s1 + $0x10] ss:$0 sps:$4 sm:$0x33]   ;;  %v4955_v8 = vpack.i.bf16 %v542_v56, %v541_v15  ;;  %v578_v56 = vld [vmem:[#allocation2 + $0x52] sm:$0xff] }
  0xf0   : > { %4941 = vrot.lane.b32.xlu0 %v6430_v20, %s5838_s11  ;;  %v4960_v20 = vpack.i.bf16 %v544_v50, %v543_v48  ;;  %4425 = vmatprep.subr.msk.bf16.mxu0 %vm1979_vm3, %v5762_v1  ;;  %v1981_v51 = vsel %vm1979_vm3, %v5762_v1, 0  ;;  %v547_v50 = vld [vmem:[#allocation2 + $0x61] sm:$0xff]  ;;  %v548_v1 = vld [vmem:[#allocation2 + $0x69] sm:$0xff] }
  0xf1   : > { %v6613_v4 = vpop.permute.xlu1 %4656  ;;  %4350 = vmatpush3.bf16.msra.mxu0 %v1981_v51 }
  0xf2   : > { %8829 = vst [vmem:[#allocation32_spill] sm:$0xff] %v6613_v4  ;;  %v6615_v52 = vpop.permute.xlu0 %4661  ;;  %v546_v4 = vld [vmem:[#allocation2 + $0x51] sm:$0xff] }
  0xf3   : > { %8830 = vst [vmem:[#allocation33_spill] sm:$0xff] %v6615_v52  ;;  %4946 = vrot.lane.b32.xlu1 %v6436_v59, %s5838_s11  ;;  %v575_v52 = vld [vmem:[#allocation2 + $0x32] sm:$0xff]  ;;  %v4965_v59 = vpack.i.bf16 %v546_v4, %v545_v61  ;;  %v550_v4 = vld [vmem:[#allocation2 + $0x81] sm:$0xff] }
  0xf4   : > { %4951 = vrot.lane.b32.xlu0 %v6440_v46, %s5838_s11  ;;  %v4970_v15 = vpack.i.bf16 %v576_v40, %v575_v52  ;;  %v577_v46 = vld [vmem:[#allocation2 + $0x4a] sm:$0xff]  ;;  %v549_v61 = vld [vmem:[#allocation2 + $0x79] sm:$0xff]  ;;  %v579_v40 = vld [vmem:[#allocation2 + $0x62] sm:$0xff] }
  0xf5   : > { %v6624_v14 = vpop.permute.xlu1 %4666  ;;  %v4975_v51 = vpack.i.bf16 %v578_v56, %v577_v46  ;;  %v580_v52 = vld [vmem:[#allocation2 + $0x6a] sm:$0xff]  ;;  %v582_v46 = vld [vmem:[#allocation2 + $0x82] sm:$0xff] }
  0xf6   : > { %8831 = vst [vmem:[#allocation34_spill] sm:$0xff] %v6624_v14  ;;  %v6626_v38 = vpop.permute.xlu0 %4671  ;;  %v553_v14 = vld [vmem:[#allocation2 + $0xa9] sm:$0xff] }
  0xf7   : > { %8832 = vst [vmem:[#allocation35_spill] sm:$0xff] %v6626_v38  ;;  %4956 = vrot.lane.b32.xlu1 %v4955_v8, %s5838_s11  ;;  %v4980_v8 = vpack.i.bf16 %v548_v1, %v547_v50  ;;  %v552_v50 = vld [vmem:[#allocation2 + $0x99] sm:$0xff] }
  0xf8   : > { %4961 = vrot.lane.b32.xlu0 %v4960_v20, %s5839_s27 }
  0xf9   : > { %v6630_v48 = vpop.permute.xlu1 %4676 }
  0xfa   : > { %8833 = vst [vmem:[#allocation36_spill] sm:$0xff] %v6630_v48  ;;  %v6632_v28 = vpop.permute.xlu0 %4681  ;;  %v4985_v48 = vpack.i.bf16 %v550_v4, %v549_v61  ;;  %v584_v4 = vld [vmem:[#allocation2 + $0x9a] sm:$0xff] }
  0xfb   : > { %8834 = vst [vmem:[#allocation37_spill] sm:$0xff] %v6632_v28  ;;  %4966 = vrot.lane.b32.xlu1 %v4965_v59, %s5839_s27  ;;  %v4990_v28 = vpack.i.bf16 %v580_v52, %v579_v40  ;;  %v581_v59 = vld [vmem:[#allocation2 + $0x7a] sm:$0xff] }
  0xfc   : > { %4971 = vrot.lane.b32.xlu0 %v4970_v15, %s5840_s28  ;;  %v551_v15 = vld [vmem:[#allocation2 + $0x91] sm:$0xff] }
  0xfd   : > { %v6636_v38 = vpop.permute.xlu1 %4686 }
  0xfe   : > { %8835 = vst [vmem:[#allocation38_spill] sm:$0xff] %v6636_v38  ;;  %v6638_v20 = vpop.permute.xlu0 %4691  ;;  %v4995_v38 = vpack.i.bf16 %v582_v46, %v581_v59  ;;  %v556_v46 = vld [vmem:[#allocation2 + $0xc9] sm:$0xff] }
  0xff   : > { %8836 = vst [vmem:[#allocation39_spill] sm:$0xff] %v6638_v20  ;;  %4976 = vrot.lane.b32.xlu1 %v4975_v51, %s5840_s28  ;;  %v5000_v20 = vpack.i.bf16 %v552_v50, %v551_v15  ;;  %v554_v51 = vld [vmem:[#allocation2 + $0xb1] sm:$0xff] }
 0x100   : > { %4981 = vrot.lane.b32.xlu0 %v4980_v8, %s5839_s27  ;;  %v583_v8 = vld [vmem:[#allocation2 + $0x92] sm:$0xff]  ;;  %v5005_v52 = vpack.i.bf16 %v554_v51, %v553_v14  ;;  %v588_v51 = vld [vmem:[#allocation2 + $0xca] sm:$0xff] }
 0x101   : > { %v6642_v56 = vpop.permute.xlu1 %4696 }
 0x102   : > { %8837 = vst [vmem:[#allocation40_spill] sm:$0xff] %v6642_v56  ;;  %v6644_v1 = vpop.permute.xlu0 %4701  ;;  %v585_v56 = vld [vmem:[#allocation2 + $0xaa] sm:$0xff] }
 0x103   : > { %8838 = vst [vmem:[#allocation41_spill] sm:$0xff] %v6644_v1  ;;  %4986 = vrot.lane.b32.xlu1 %v4985_v48, %s5839_s27  ;;  %v5010_v1 = vpack.i.bf16 %v584_v4, %v583_v8  ;;  %v586_v48 = vld [vmem:[#allocation2 + $0xb2] sm:$0xff] }
 0x104   : > { %4991 = vrot.lane.b32.xlu0 %v4990_v28, %s5840_s28  ;;  %v555_v28 = vld [vmem:[#allocation2 + $0xc1] sm:$0xff]  ;;  %v5015_v50 = vpack.i.bf16 %v586_v48, %v585_v56  ;;  %v560_v48 = vld [vmem:[#allocation2 + $0xf9] sm:$0xff] }
 0x105   : > { %v6648_v61 = vpop.permute.xlu1 %4706 }
 0x106   : > { %8839 = vst [vmem:[#allocation42_spill] sm:$0xff] %v6648_v61  ;;  %v6650_v40 = vpop.permute.xlu0 %4711  ;;  %v557_v61 = vld [vmem:[#allocation2 + $0xd9] sm:$0xff] }
 0x107   : > { %8840 = vst [vmem:[#allocation43_spill] sm:$0xff] %v6650_v40  ;;  %4996 = vrot.lane.b32.xlu1 %v4995_v38, %s5840_s28  ;;  %v5020_v40 = vpack.i.bf16 %v556_v46, %v555_v28  ;;  %v558_v38 = vld [vmem:[#allocation2 + $0xe1] sm:$0xff] }
 0x108   : > { %5001 = vrot.lane.b32.xlu0 %v5000_v20, %s5839_s27  ;;  %v587_v20 = vld [vmem:[#allocation2 + $0xc2] sm:$0xff]  ;;  %v5025_v4 = vpack.i.bf16 %v558_v38, %v557_v61  ;;  %v592_v38 = vld [vmem:[#allocation2 + $0xfa] sm:$0xff] }
 0x109   : > { %v6654_v59 = vpop.permute.xlu1 %4716 }
 0x10a   : > { %8841 = vst [vmem:[#allocation44_spill] sm:$0xff] %v6654_v59  ;;  %v6656_v15 = vpop.permute.xlu0 %4721  ;;  %v589_v59 = vld [vmem:[#allocation2 + $0xda] sm:$0xff] }
 0x10b   : > { %8842 = vst [vmem:[#allocation45_spill] sm:$0xff] %v6656_v15  ;;  %5006 = vrot.lane.b32.xlu1 %v5005_v52, %s5839_s27  ;;  %v5030_v15 = vpack.i.bf16 %v588_v51, %v587_v20  ;;  %v590_v52 = vld [vmem:[#allocation2 + $0xe2] sm:$0xff] }
 0x10c   : > { %5011 = vrot.lane.b32.xlu0 %v5010_v1, %s5840_s28  ;;  %v559_v1 = vld [vmem:[#allocation2 + $0xf1] sm:$0xff]  ;;  %v5035_v46 = vpack.i.bf16 %v590_v52, %v589_v59  ;;  %v564_v52 = vld [vmem:[#allocation2 + $0x129] sm:$0xff] }
 0x10d   : > { %v6660_v14 = vpop.permute.xlu1 %4726 }
 0x10e   : > { %8843 = vst [vmem:[#allocation46_spill] sm:$0xff] %v6660_v14  ;;  %v6662_v8 = vpop.permute.xlu0 %4731  ;;  %v561_v14 = vld [vmem:[#allocation2 + $0x109] sm:$0xff] }
 0x10f   : > { %8844 = vst [vmem:[#allocation47_spill] sm:$0xff] %v6662_v8  ;;  %5016 = vrot.lane.b32.xlu1 %v5015_v50, %s5840_s28  ;;  %v5040_v8 = vpack.i.bf16 %v560_v48, %v559_v1  ;;  %v562_v50 = vld [vmem:[#allocation2 + $0x111] sm:$0xff] }
 0x110   : > { %5021 = vrot.lane.b32.xlu0 %v5020_v40, %s5839_s27  ;;  %v591_v40 = vld [vmem:[#allocation2 + $0xf2] sm:$0xff]  ;;  %v5045_v51 = vpack.i.bf16 %v562_v50, %v561_v14  ;;  %v596_v50 = vld [vmem:[#allocation2 + $0x12a] sm:$0xff] }
 0x111   : > { %v6666_v56 = vpop.permute.xlu1 %4736 }
 0x112   : > { %8845 = vst [vmem:[#allocation48_spill] sm:$0xff] %v6666_v56  ;;  %v6668_v28 = vpop.permute.xlu0 %4741  ;;  %v593_v56 = vld [vmem:[#allocation2 + $0x10a] sm:$0xff] }
 0x113   : > { %8846 = vst [vmem:[#allocation49_spill] sm:$0xff] %v6668_v28  ;;  %5026 = vrot.lane.b32.xlu1 %v5025_v4, %s5839_s27  ;;  %v5050_v28 = vpack.i.bf16 %v592_v38, %v591_v40  ;;  %v594_v4 = vld [vmem:[#allocation2 + $0x112] sm:$0xff] }
 0x114   : > { %5031 = vrot.lane.b32.xlu0 %v5030_v15, %s5840_s28  ;;  %v563_v15 = vld [vmem:[#allocation2 + $0x121] sm:$0xff]  ;;  %v5055_v48 = vpack.i.bf16 %v594_v4, %v593_v56  ;;  %v568_v4 = vld [vmem:[#allocation2 + $0x159] sm:$0xff] }
 0x115   : > { %v6672_v61 = vpop.permute.xlu1 %4746 }
 0x116   : > { %8847 = vst [vmem:[#allocation50_spill] sm:$0xff] %v6672_v61  ;;  %v6674_v20 = vpop.permute.xlu0 %4751  ;;  %v565_v61 = vld [vmem:[#allocation2 + $0x139] sm:$0xff] }
 0x117   : > { %8848 = vst [vmem:[#allocation51_spill] sm:$0xff] %v6674_v20  ;;  %5036 = vrot.lane.b32.xlu1 %v5035_v46, %s5840_s28  ;;  %v5060_v20 = vpack.i.bf16 %v564_v52, %v563_v15  ;;  %v566_v46 = vld [vmem:[#allocation2 + $0x141] sm:$0xff] }
 0x118   : > { %5041 = vrot.lane.b32.xlu0 %v5040_v8, %s5839_s27  ;;  %v595_v8 = vld [vmem:[#allocation2 + $0x122] sm:$0xff]  ;;  %v5065_v38 = vpack.i.bf16 %v566_v46, %v565_v61  ;;  %v599_v46 = vld [vmem:[#allocation2 + $0x152] sm:$0xff] }
 0x119   : > { %v6678_v59 = vpop.permute.xlu1 %4756 }
 0x11a   : > { %8849 = vst [vmem:[#allocation52_spill] sm:$0xff] %v6678_v59  ;;  %v6680_v1 = vpop.permute.xlu0 %4761  ;;  %v597_v59 = vld [vmem:[#allocation2 + $0x13a] sm:$0xff] }
 0x11b   : > { %8850 = vst [vmem:[#allocation53_spill] sm:$0xff] %v6680_v1  ;;  %5046 = vrot.lane.b32.xlu1 %v5045_v51, %s5839_s27  ;;  %v5070_v1 = vpack.i.bf16 %v596_v50, %v595_v8  ;;  %v598_v51 = vld [vmem:[#allocation2 + $0x142] sm:$0xff]  ;;  %v600_v8 = vld [vmem:[#allocation2 + $0x15a] sm:$0xff]  ;;  %v4483_v50 = vunpack.i.l.bf16 %v6464_v0 }
 0x11c   : > { %5051 = vrot.lane.b32.xlu0 %v5050_v28, %s5840_s28  ;;  %v567_v28 = vld [vmem:[#allocation2 + $0x151] sm:$0xff]  ;;  %v5075_v52 = vpack.i.bf16 %v598_v51, %v597_v59  ;;  %v4494_v59 = vunpack.i.h.bf16 %v6470_v29  ;;  %v4493_v51 = vunpack.i.l.bf16 %v6470_v29  ;;  %v4504_v29 = vunpack.i.h.bf16 %v6480_v49 }
 0x11d   : > { %v6684_v14 = vpop.permute.xlu1 %4766  ;;  %v5080_v61 = vpack.i.bf16 %v568_v4, %v567_v28  ;;  %v602_v28 = vld [vmem:[#allocation2 + $0x172] sm:$0xff]  ;;  %v571_v4 = vld [vmem:[#allocation2 + $0x181] sm:$0xff] }
 0x11e   : > { %8851 = vst [vmem:[#allocation54_spill] sm:$0xff] %v6684_v14  ;;  %v6686_v40 = vpop.permute.xlu0 %4771  ;;  %v569_v14 = vld [vmem:[#allocation2 + $0x169] sm:$0xff]  ;;  %v6729_v49 = vsel %vm197_vm0, %v6301_v22, %v4494_v59  ;;  %v4523_v59 = vunpack.i.l.bf16 %v6495_v5 }
 0x11f   : > { %8852 = vst [vmem:[#allocation55_spill] sm:$0xff] %v6686_v40  ;;  %5056 = vrot.lane.b32.xlu1 %v5055_v48, %s5840_s28  ;;  %v4484_v40 = vunpack.i.h.bf16 %v6464_v0 }
 0x120   : > { %5061 = vrot.lane.b32.xlu0 %v5060_v20, %s5839_s27  ;;  %v319_v20 = vld [vmem:[#allocation2 + $0x8] sm:$0xff] }
 0x121   : > { %v6690_v56 = vpop.permute.xlu1 %4776  ;;  %v6708_v0 = vsel %vm197_vm0, %v319_v20, %v4484_v40  ;;  %v4509_v40 = vunpack.i.h.bf16 %v6486_v57 }
 0x122   : > { %8853 = vst [vmem:[#allocation56_spill] sm:$0xff] %v6690_v56  ;;  %v6692_v15 = vpop.permute.xlu0 %4781  ;;  %v318_v56 = vld [vmem:[#allocation2] sm:$0xff] }
 0x123   : > { %8854 = vst [vmem:[#allocation57_spill] sm:$0xff] %v6692_v15  ;;  %5066 = vrot.lane.b32.xlu1 %v5065_v38, %s5839_s27  ;;  %v5085_v15 = vpack.i.bf16 %v570_v39, %v569_v14  ;;  %v601_v38 = vld [vmem:[#allocation2 + $0x16a] sm:$0xff]  ;;  %v5090_v39 = vpack.i.bf16 %v600_v8, %v599_v46  ;;  %v4499_v14 = vunpack.i.h.bf16 %v6478_v45  ;;  %v6718_v10 = vsel %vm197_vm0, %v318_v56, %v4483_v50  ;;  %v605_v50 = vld [vmem:[#allocation2 + $0x19a] sm:$0xff] }
 0x124   : > { %5071 = vrot.lane.b32.xlu0 %v5070_v1, %s5840_s28  ;;  %v4488_v1 = vunpack.i.l.bf16 %v6472_v33  ;;  %v6737_v56 = vsel %vm197_vm0, %v6289_v18, %v4489_v19  ;;  %v6754_v19 = vsel %vm197_vm0, %v6320_v31, %v4504_v29  ;;  %v4524_v31 = vunpack.i.h.bf16 %v6495_v5 }
 0x125   : > { %v6697_v48 = vpop.permute.xlu1 %4786  ;;  %v4534_v5 = vunpack.i.h.bf16 %v6503_v11  ;;  %v4543_v29 = vunpack.i.l.bf16 %v6511_v17 }
 0x126   : > { %8855 = vst [vmem:[#allocation58_spill] sm:$0xff] %v6697_v48  ;;  %v6700_v27 = vpop.permute.xlu0 %4791  ;;  %v572_v48 = vld [vmem:[#allocation2 + $0x189] sm:$0xff]  ;;  %v6733_v8 = vsel %vm197_vm0, %v6287_v16, %v4488_v1  ;;  %v6746_v16 = vsel %vm197_vm0, %v6305_v26, %v4499_v14  ;;  %v4519_v26 = vunpack.i.h.bf16 %v6493_v63 }
 0x127   : > { %8856 = vst [vmem:[#allocation59_spill] sm:$0xff] %v6700_v27  ;;  %5076 = vrot.lane.b32.xlu1 %v5075_v52, %s5840_s28  ;;  %v4498_v27 = vunpack.i.l.bf16 %v6478_v45  ;;  %v573_v52 = vld [vmem:[#allocation2 + $0x199] sm:$0xff]  ;;  %v5100_v46 = vpack.i.bf16 %v572_v48, %v571_v4  ;;  %v6725_v45 = vsel %vm197_vm0, %v6299_v21, %v4493_v51  ;;  %v606_v48 = vld [vmem:[#allocation2 + $0x1a2] sm:$0xff]  ;;  %v4514_v21 = vunpack.i.h.bf16 %v6488_v62 }
 0x128   : > { %5081 = vrot.lane.b32.xlu0 %v5080_v61, %s5839_s27  ;;  %v5095_v61 = vpack.i.bf16 %v602_v28, %v601_v38  ;;  %v4508_v38 = vunpack.i.l.bf16 %v6486_v57  ;;  %v4513_v51 = vunpack.i.l.bf16 %v6488_v62  ;;  %v5105_v22 = vpack.i.bf16 %v574_v37, %v573_v52 }
 0x129   : > { %v6715_v33 = vpop.permute.xlu1 %4796  ;;  %v6750_v18 = vsel %vm197_vm0, %v6303_v25, %v4498_v27  ;;  %v6758_v57 = vsel %vm197_vm0, %v6318_v30, %v4503_v13  ;;  %v6764_v37 = vsel %vm197_vm0, %v6324_v36, %v4509_v40  ;;  %v5115_v27 = vpack.i.bf16 %v606_v48, %v605_v50  ;;  %v8859_v40 = vld [vmem:[#allocation9_spill] sm:$0xff]  ;;  %v8862_v48 = vld [vmem:[#allocation10_spill] sm:$0xff] }
 0x12a   : > { %8857 = vst [vmem:[#allocation60_spill] sm:$0xff] %v6715_v33  ;;  %v6721_v20 = vpop.permute.xlu0 %4801  ;;  %v4529_v30 = vunpack.i.h.bf16 %v6501_v6  ;;  %v4528_v13 = vunpack.i.l.bf16 %v6501_v6  ;;  %v6777_v36 = vsel %vm197_vm0, %v6322_v35, %v4508_v38  ;;  %v6785_v1 = vsel %vm197_vm0, %v6338_v43, %v4513_v51  ;;  %v8858_v43 = vld [vmem:[#allocation7_spill] sm:$0xff] }
 0x12b   : > { %5086 = vrot.lane.b32.xlu1 %v5085_v15, %s5839_s27  ;;  %v4518_v15 = vunpack.i.l.bf16 %v6493_v63  ;;  %v6781_v63 = vsel %vm197_vm0, %v6340_v44, %v4514_v21  ;;  %v4533_v6 = vunpack.i.l.bf16 %v6503_v11  ;;  %v4539_v28 = vunpack.i.h.bf16 %v6509_v12 }
 0x12c   : > { %5091 = vrot.lane.b32.xlu0 %v5090_v39, %s5840_s28  ;;  %v4538_v4 = vunpack.i.l.bf16 %v6509_v12  ;;  %v4544_v35 = vunpack.i.h.bf16 %v6511_v17  ;;  %v6797_v44 = vsel %vm197_vm0, %v6344_v47, %v4519_v26  ;;  %v4549_v11 = vunpack.i.h.bf16 %v6517_v23  ;;  %v8861_v47 = vld [vmem:[#allocation11_spill] sm:$0xff]  ;;  %v8863_v17 = vld [vmem:[#allocation13_spill] sm:$0xff] }
 0x12d   : > { %v6760_v62 = vpop.permute.xlu1 %4806  ;;  %v6801_v14 = vsel %vm197_vm0, %v8858_v43, %v4518_v15  ;;  %v6809_v12 = vsel %vm197_vm0, %v8859_v40, %v4524_v31  ;;  %v6817_v50 = vsel %vm197_vm0, %v8861_v47, %v4529_v30  ;;  %v6821_v38 = vsel %vm197_vm0, %v8862_v48, %v4528_v13  ;;  %v8864_v31 = vld [vmem:[#allocation12_spill] sm:$0xff]  ;;  %v8865_v30 = vld [vmem:[#allocation15_spill] sm:$0xff]  ;;  %v8866_v13 = vld [vmem:[#allocation14_spill] sm:$0xff] }
 0x12e   : > { %v6768_v25 = vpop.permute.xlu0 %4811  ;;  %v6826_v21 = vsel %vm197_vm0, %v8863_v17, %v4534_v5  ;;  %v4548_v51 = vunpack.i.l.bf16 %v6517_v23  ;;  %v4554_v26 = vunpack.i.h.bf16 %v6519_v24  ;;  %v4553_v15 = vunpack.i.l.bf16 %v6519_v24  ;;  %v8867_v23 = vld [vmem:[#allocation17_spill] sm:$0xff]  ;;  %v8868_v40 = vld [vmem:[#allocation16_spill] sm:$0xff] }
 0x12f   : > { %5096 = vrot.lane.b32.xlu1 %v5095_v61, %s5840_s28  ;;  %v8860_v61 = vld [vmem:[#allocation8_spill] sm:$0xff]  ;;  %v6843_v5 = vsel %vm197_vm0, %v8866_v13, %v4538_v4  ;;  %v6847_v43 = vsel %vm197_vm0, %v8867_v23, %v4544_v35  ;;  %v4558_v47 = vunpack.i.l.bf16 %v6525_v32  ;;  %v4564_v48 = vunpack.i.h.bf16 %v6527_v34 }
 0x130   : > { %5101 = vrot.lane.b32.xlu0 %v5100_v46, %s5839_s27  ;;  %v6813_v46 = vsel %vm197_vm0, %v8860_v61, %v4523_v59  ;;  %v6835_v59 = vsel %vm197_vm0, %v8864_v31, %v4533_v6  ;;  %v8869_v6 = vld [vmem:[#allocation19_spill] sm:$0xff]  ;;  %v4563_v35 = vunpack.i.l.bf16 %v6527_v34  ;;  %v4569_v17 = vunpack.i.h.bf16 %v6533_v41 }
 0x131   : > { %v6793_v39 = vpop.permute.xlu1 %4816  ;;  %v6857_v61 = vsel %vm197_vm0, %v8869_v6, %v4549_v11  ;;  %v4568_v31 = vunpack.i.l.bf16 %v6533_v41  ;;  %v4574_v34 = vunpack.i.h.bf16 %v6535_v42  ;;  %v4573_v13 = vunpack.i.l.bf16 %v6535_v42 }
 0x132   : > { %v6805_v52 = vpop.permute.xlu0 %4821  ;;  %v4579_v41 = vunpack.i.h.bf16 %v6541_v55  ;;  %v4583_v23 = vunpack.i.l.bf16 %v6543_v60  ;;  %v4589_v42 = vunpack.i.h.bf16 %v6551_v2  ;;  %v4588_v6 = vunpack.i.l.bf16 %v6551_v2 }
 0x133   : > { %5106 = vrot.lane.b32.xlu1 %v5105_v22, %s5839_s27  ;;  %v6839_v22 = vsel %vm197_vm0, %v8865_v30, %v4539_v28  ;;  %v4559_v28 = vunpack.i.h.bf16 %v6525_v32  ;;  %v6874_v30 = vsel %vm197_vm0, %v6420_v7, %v4554_v26  ;;  %v6878_v32 = vsel %vm197_vm0, %v6418_v9, %v4553_v15 }
 0x134   : > { %5111 = vrot.lane.b32.xlu0 %v6547_v58, %s5840_s28  ;;  %v6853_v58 = vsel %vm197_vm0, %v8868_v40, %v4543_v29  ;;  %v8870_v29 = vld [vmem:[#allocation18_spill] sm:$0xff]  ;;  %v6893_v9 = vsel %vm197_vm0, %v6422_v53, %v4558_v47  ;;  %v4584_v26 = vunpack.i.h.bf16 %v6543_v60  ;;  %v6905_v40 = vsel %vm1663_vm2, %v6718_v10, %v4563_v35  ;;  %v8876_v35 = vld [vmem:[#allocation21_spill] sm:$0xff] }
 0x135   : > { %v6849_v24 = vpop.permute.xlu1 %4826  ;;  %v6870_v11 = vsel %vm197_vm0, %v8870_v29, %v4548_v51  ;;  %v6889_v7 = vsel %vm197_vm0, %v6424_v54, %v4559_v28  ;;  %v6909_v54 = vsel %vm1663_vm2, %v6733_v8, %v4568_v31  ;;  %v6913_v53 = vsel %vm1663_vm2, %v6737_v56, %v4569_v17  ;;  %v8877_v31 = vld [vmem:[#allocation22_spill] sm:$0xff] }
 0x136   : > { %v6861_v4 = vpop.permute.xlu0 %4831  ;;  %v6917_v60 = vsel %vm1663_vm2, %v6729_v49, %v4574_v34  ;;  %v4593_v28 = vunpack.i.l.bf16 %v6553_v3  ;;  %v6924_v10 = vsel %vm1663_vm2, %v6725_v45, %v4573_v13  ;;  %v6928_v8 = vsel %vm1663_vm2, %v6746_v16, %v4579_v41  ;;  %v8874_v16 = vld [vmem:[#allocation20_spill] sm:$0xff]  ;;  %v8878_v41 = vld [vmem:[#allocation23_spill] sm:$0xff] }
 0x137   : > { %5116 = vrot.lane.b32.xlu1 %v5115_v27, %s5840_s28  ;;  %v4578_v27 = vunpack.i.l.bf16 %v6541_v55  ;;  %v6901_v55 = vsel %vm1663_vm2, %v6708_v0, %v4564_v48  ;;  %v4594_v0 = vunpack.i.h.bf16 %v6553_v3  ;;  %v6936_v49 = vsel %vm1663_vm2, %v6758_v57, %v4583_v23 }
 0x138   : > { %v6942_v3 = vsel %vm1663_vm2, %v6754_v19, %v4584_v26  ;;  %v6946_v45 = vsel %vm1663_vm2, %v6764_v37, %v4589_v42  ;;  %v4599_v47 = vunpack.i.h.bf16 %v8874_v16  ;;  %v4598_v48 = vunpack.i.l.bf16 %v8874_v16  ;;  %v8879_v26 = vld [vmem:[#allocation24_spill] sm:$0xff] }
 0x139   : > { %v6885_v51 = vpop.permute.xlu1 %4836  ;;  %v6932_v56 = vsel %vm1663_vm2, %v6750_v18, %v4578_v27  ;;  %v4604_v17 = vunpack.i.h.bf16 %v8876_v35  ;;  %v4603_v57 = vunpack.i.l.bf16 %v8876_v35  ;;  %v4609_v29 = vunpack.i.h.bf16 %v8877_v31  ;;  %v8880_v35 = vld [vmem:[#allocation25_spill] sm:$0xff] }
 0x13a   : > { %8871 = vst [vmem:[#allocation7_spill] sm:$0xff] %v6885_v51  ;;  %v6897_v15 = vpop.permute.xlu0 %4841  ;;  %v4608_v34 = vunpack.i.l.bf16 %v8877_v31  ;;  %v6958_v19 = vsel %vm1663_vm2, %v6777_v36, %v4588_v6  ;;  %v6962_v37 = vsel %vm1663_vm2, %v6785_v1, %v4593_v28  ;;  %v6966_v13 = vsel %vm1663_vm2, %v6781_v63, %v4594_v0  ;;  %v8882_v28 = vld [vmem:[#allocation26_spill] sm:$0xff] }
 0x13b   : > { %8872 = vst [vmem:[#allocation9_spill] sm:$0xff] %v6897_v15  ;;  %v4613_v27 = vunpack.i.l.bf16 %v8878_v41  ;;  %v4614_v23 = vunpack.i.h.bf16 %v8878_v41  ;;  %v4619_v42 = vunpack.i.h.bf16 %v8879_v26  ;;  %v4618_v16 = vunpack.i.l.bf16 %v8879_v26 }
 0x13c   : > { %v4623_v36 = vunpack.i.l.bf16 %v8880_v35  ;;  %v6977_v1 = vsel %vm1663_vm2, %v6797_v44, %v4599_v47  ;;  %v6981_v63 = vsel %vm1663_vm2, %v6801_v14, %v4598_v48  ;;  %v4624_v0 = vunpack.i.h.bf16 %v8880_v35 }
 0x13d   : > { %v6938_v2 = vpop.permute.xlu1 %4846  ;;  %v4629_v31 = vunpack.i.h.bf16 %v8882_v28  ;;  %v6989_v26 = vsel %vm1663_vm2, %v6813_v46, %v4603_v57  ;;  %v6997_v44 = vsel %vm1663_vm2, %v6817_v50, %v4609_v29  ;;  %v7001_v14 = vsel %vm1663_vm2, %v6821_v38, %v4608_v34  ;;  %v8884_v46 = vld [vmem:[#allocation27_spill] sm:$0xff] }
 0x13e   : > { %8873 = vst [vmem:[#allocation8_spill] sm:$0xff] %v6938_v2  ;;  %v6950_v18 = vpop.permute.xlu0 %4851  ;;  %v7005_v47 = vsel %vm1663_vm2, %v6835_v59, %v4613_v27  ;;  %v4628_v48 = vunpack.i.l.bf16 %v8882_v28  ;;  %v4634_v57 = vunpack.i.h.bf16 %v8884_v46  ;;  %v4633_v35 = vunpack.i.l.bf16 %v8884_v46  ;;  %v8901_v2 = vld [vmem:[#allocation41_spill] sm:$0xff] }
 0x13f   : > { %8875 = vst [vmem:[#allocation11_spill] sm:$0xff] %v6950_v18  ;;  %v7016_v50 = vsel %vm1663_vm2, %v6839_v22, %v4619_v42  ;;  %v7020_v38 = vsel %vm1663_vm2, %v6843_v5, %v4618_v16  ;;  %v7024_v59 = vsel %vm1663_vm2, %v6853_v58, %v4623_v36  ;;  %v7030_v29 = vsel %vm1663_vm2, %v6847_v43, %v4624_v0  ;;  %v8886_v22 = vld [vmem:[#allocation28_spill] sm:$0xff]  ;;  %v8889_v16 = vld [vmem:[#allocation30_spill] sm:$0xff] }
 0x140   : > { %v4639_v34 = vunpack.i.h.bf16 %v8886_v22  ;;  %v4638_v27 = vunpack.i.l.bf16 %v8886_v22  ;;  %v4649_v36 = vunpack.i.h.bf16 %v8889_v16  ;;  %v4648_v28 = vunpack.i.l.bf16 %v8889_v16 }
 0x141   : > { %v6973_v6 = vpop.permute.xlu1 %4856  ;;  %v7046_v43 = vsel %vm1663_vm2, %v6870_v11, %v4628_v48  ;;  %v7054_v0 = vsel %vm1663_vm2, %v6874_v30, %v4634_v57  ;;  %v8894_v57 = vld [vmem:[#allocation34_spill] sm:$0xff]  ;;  %vm3804_vm0 = vcmask 523264  }
 0x142   : > { %8881 = vst [vmem:[#allocation10_spill] sm:$0xff] %v6973_v6  ;;  %v6985_v41 = vpop.permute.xlu0 %4861  ;;  %v6993_v6 = vsel %vm1663_vm2, %v6809_v12, %v4604_v17  ;;  %v7012_v12 = vsel %vm1663_vm2, %v6826_v21, %v4614_v23  ;;  %v7034_v21 = vsel %vm1663_vm2, %v6857_v61, %v4629_v31  ;;  %v8888_v23 = vld [vmem:[#allocation29_spill] sm:$0xff]  ;;  %v7050_v61 = vsel %vm1663_vm2, %v6878_v32, %v4633_v35  ;;  %v8890_v31 = vld [vmem:[#allocation31_spill] sm:$0xff] }
 0x143   : > { %8883 = vst [vmem:[#allocation13_spill] sm:$0xff] %v6985_v41  ;;  %v4644_v42 = vunpack.i.h.bf16 %v8888_v23  ;;  %v4643_v58 = vunpack.i.l.bf16 %v8888_v23  ;;  %v4653_v46 = vunpack.i.l.bf16 %v8890_v31  ;;  %v4654_v22 = vunpack.i.h.bf16 %v8890_v31  ;;  %v8891_v23 = vld [vmem:[#allocation32_spill] sm:$0xff] }
 0x144   : > { %v4658_v16 = vunpack.i.l.bf16 %v8891_v23  ;;  %v7065_v32 = vsel %vm1663_vm2, %v6889_v7, %v4639_v34  ;;  %v7069_v30 = vsel %vm1663_vm2, %v6893_v9, %v4638_v27  ;;  %v4668_v35 = vunpack.i.l.bf16 %v8894_v57 }
 0x145   : > { %v7026_v17 = vpop.permute.xlu1 %4866  ;;  %v7085_v7 = vsel %vm1696_vm4, %v6909_v54, %v4648_v28  ;;  %v7089_v9 = vsel %vm1696_vm4, %v6913_v53, %v4649_v36  ;;  %v4669_v34 = vunpack.i.h.bf16 %v8894_v57 }
 0x146   : > { %8885 = vst [vmem:[#allocation12_spill] sm:$0xff] %v7026_v17  ;;  %v7038_v5 = vpop.permute.xlu0 %4871  ;;  %v8892_v17 = vld [vmem:[#allocation33_spill] sm:$0xff]  ;;  %v7104_v54 = vsel %vm1696_vm4, %v6932_v56, %v4658_v16  ;;  %v8896_v56 = vld [vmem:[#allocation36_spill] sm:$0xff] }
 0x147   : > { %8887 = vst [vmem:[#allocation15_spill] sm:$0xff] %v7038_v5  ;;  %v4659_v5 = vunpack.i.h.bf16 %v8891_v23  ;;  %v4663_v41 = vunpack.i.l.bf16 %v8892_v17  ;;  %v4664_v48 = vunpack.i.h.bf16 %v8892_v17  ;;  %v7077_v23 = vsel %vm1696_vm4, %v6905_v40, %v4643_v58  ;;  %v8895_v40 = vld [vmem:[#allocation35_spill] sm:$0xff] }
 0x148   : > { %v7093_v17 = vsel %vm1696_vm4, %v6924_v10, %v4653_v46  ;;  %v4674_v27 = vunpack.i.h.bf16 %v8895_v40  ;;  %v4673_v58 = vunpack.i.l.bf16 %v8895_v40  ;;  %v4679_v28 = vunpack.i.h.bf16 %v8896_v56 }
 0x149   : > { %v7061_v11 = vpop.permute.xlu1 %4876  ;;  %v7108_v53 = vsel %vm1696_vm4, %v6928_v8, %v4659_v5  ;;  %v7112_v10 = vsel %vm1696_vm4, %v6936_v49, %v4663_v41  ;;  %v7118_v36 = vsel %vm1696_vm4, %v6942_v3, %v4664_v48  ;;  %v4678_v46 = vunpack.i.l.bf16 %v8896_v56  ;;  %v8897_v5 = vld [vmem:[#allocation37_spill] sm:$0xff]  ;;  %v8898_v41 = vld [vmem:[#allocation38_spill] sm:$0xff] }
 0x14a   : > { %8893 = vst [vmem:[#allocation14_spill] sm:$0xff] %v7061_v11  ;;  %v7073_v31 = vpop.permute.xlu0 %4881  ;;  %v7081_v11 = vsel %vm1696_vm4, %v6901_v55, %v4644_v42  ;;  %v7100_v55 = vsel %vm1696_vm4, %v6917_v60, %v4654_v22  ;;  %v7122_v60 = vsel %vm1696_vm4, %v6958_v19, %v4668_v35  ;;  %v4684_v22 = vunpack.i.h.bf16 %v8897_v5  ;;  %v8899_v35 = vld [vmem:[#allocation39_spill] sm:$0xff] }
 0x14b   : > { %v4683_v49 = vunpack.i.l.bf16 %v8897_v5  ;;  %v4689_v16 = vunpack.i.h.bf16 %v8898_v41  ;;  %v4688_v57 = vunpack.i.l.bf16 %v8898_v41  ;;  %v7134_v3 = vsel %vm1696_vm4, %v6946_v45, %v4669_v34  ;;  %v8900_v5 = vld [vmem:[#allocation40_spill] sm:$0xff] }
 0x14c   : > { %v7138_v19 = vsel %vm1696_vm4, %v6962_v37, %v4673_v58  ;;  %v7142_v48 = vsel %vm1696_vm4, %v6966_v13, %v4674_v27  ;;  %v4693_v40 = vunpack.i.l.bf16 %v8899_v35  ;;  %v4694_v56 = vunpack.i.h.bf16 %v8899_v35  ;;  %v8902_v58 = vld [vmem:[#allocation42_spill] sm:$0xff] }
 0x14d   : > { %v7114_v42 = vpop.permute.xlu1 %4886  ;;  %v4699_v18 = vunpack.i.h.bf16 %v8900_v5  ;;  %v4698_v41 = vunpack.i.l.bf16 %v8900_v5  ;;  %v4703_v45 = vunpack.i.l.bf16 %v8901_v2  ;;  %v7153_v37 = vsel %vm1696_vm4, %v6981_v63, %v4678_v46 }
 0x14e   : > { %v7126_v8 = vpop.permute.xlu0 %4891  ;;  %v7157_v13 = vsel %vm1696_vm4, %v6977_v1, %v4679_v28  ;;  %v4704_v27 = vunpack.i.h.bf16 %v8901_v2  ;;  %v4708_v35 = vunpack.i.l.bf16 %v8902_v58  ;;  %v7165_v5 = vsel %vm1696_vm4, %v6989_v26, %v4683_v49  ;;  %v8904_v26 = vld [vmem:[#allocation43_spill] sm:$0xff] }
 0x14f   : > { %v7169_v51 = vsel %vm1696_vm4, %v6993_v6, %v4684_v22  ;;  %v7173_v63 = vsel %vm1696_vm4, %v7001_v14, %v4688_v57  ;;  %v7177_v1 = vsel %vm1696_vm4, %v6997_v44, %v4689_v16  ;;  %v7181_v2 = vsel %vm1696_vm4, %v7005_v47, %v4693_v40 }
 0x150   : > { %v4709_v28 = vunpack.i.h.bf16 %v8902_v58  ;;  %v4714_v46 = vunpack.i.h.bf16 %v8904_v26  ;;  %v4713_v49 = vunpack.i.l.bf16 %v8904_v26  ;;  %v7188_v6 = vsel %vm1696_vm4, %v7012_v12, %v4694_v56 }
 0x151   : > { %v7149_v34 = vpop.permute.xlu1 %4896  ;;  %v7192_v14 = vsel %vm1696_vm4, %v7020_v38, %v4698_v41  ;;  %v7196_v44 = vsel %vm1696_vm4, %v7016_v50, %v4699_v18  ;;  %v7200_v47 = vsel %vm1696_vm4, %v7024_v59, %v4703_v45  ;;  %v7206_v16 = vsel %vm1696_vm4, %v7030_v29, %v4704_v27  ;;  %v8906_v38 = vld [vmem:[#allocation44_spill] sm:$0xff]  ;;  %v8908_v50 = vld [vmem:[#allocation45_spill] sm:$0xff]  ;;  %v8909_v41 = vld [vmem:[#allocation46_spill] sm:$0xff] }
 0x152   : > { %v7161_v15 = vpop.permute.xlu0 %4901  ;;  %v7210_v12 = vsel %vm1696_vm4, %v7046_v43, %v4708_v35  ;;  %v4719_v57 = vunpack.i.h.bf16 %v8906_v38  ;;  %v4718_v40 = vunpack.i.l.bf16 %v8906_v38  ;;  %v4724_v56 = vunpack.i.h.bf16 %v8908_v50  ;;  %v8910_v35 = vld [vmem:[#allocation47_spill] sm:$0xff] }
 0x153   : > { %8903 = vst [vmem:[#allocation17_spill] sm:$0xff] %v7161_v15  ;;  %v4723_v59 = vunpack.i.l.bf16 %v8908_v50  ;;  %v4729_v45 = vunpack.i.h.bf16 %v8909_v41  ;;  %v4728_v58 = vunpack.i.l.bf16 %v8909_v41  ;;  %v7222_v29 = vsel %vm1696_vm4, %v7034_v21, %v4709_v28  ;;  %v8911_v50 = vld [vmem:[#allocation48_spill] sm:$0xff] }
 0x154   : > { %v7226_v43 = vsel %vm1696_vm4, %v7050_v61, %v4713_v49  ;;  %v7230_v27 = vsel %vm1696_vm4, %v7054_v0, %v4714_v46  ;;  %v4733_v26 = vunpack.i.l.bf16 %v8910_v35  ;;  %v4734_v38 = vunpack.i.h.bf16 %v8910_v35  ;;  %v8916_v46 = vld [vmem:[#allocation50_spill] sm:$0xff] }
 0x155   : > { %v7202_v22 = vpop.permute.xlu1 %4906  ;;  %v4738_v41 = vunpack.i.l.bf16 %v8911_v50  ;;  %v7241_v61 = vsel %vm1696_vm4, %v7069_v30, %v4718_v40  ;;  %v7245_v0 = vsel %vm1696_vm4, %v7065_v32, %v4719_v57  ;;  %v4748_v49 = vunpack.i.l.bf16 %v8916_v46 }
 0x156   : > { %8905 = vst [vmem:[#allocation16_spill] sm:$0xff] %v7202_v22  ;;  %v7214_v18 = vpop.permute.xlu0 %4911  ;;  %v8912_v22 = vld [vmem:[#allocation49_spill] sm:$0xff]  ;;  %8914 = vst [vmem:[#allocation20_spill] sm:$0xff] %v7241_v61  ;;  %v7261_v30 = vsel %vm1729_vm5, %v7085_v7, %v4728_v58  ;;  %v7265_v32 = vsel %vm1729_vm5, %v7089_v9, %v4729_v45  ;;  %v4749_v57 = vunpack.i.h.bf16 %v8916_v46 }
 0x157   : > { %8907 = vst [vmem:[#allocation19_spill] sm:$0xff] %v7214_v18  ;;  %v4739_v18 = vunpack.i.h.bf16 %v8911_v50  ;;  %v4743_v15 = vunpack.i.l.bf16 %v8912_v22  ;;  %8915 = vst [vmem:[#allocation21_spill] sm:$0xff] %v7245_v0  ;;  %v4744_v28 = vunpack.i.h.bf16 %v8912_v22  ;;  %v7253_v50 = vsel %vm1729_vm5, %v7077_v23, %v4723_v59  ;;  %v8917_v23 = vld [vmem:[#allocation51_spill] sm:$0xff]  ;;  %v8924_v61 = vld [vmem:[#allocation57_spill] sm:$0xff] }
 0x158   : > { %v7269_v22 = vsel %vm1729_vm5, %v7093_v17, %v4733_v26  ;;  %v4754_v40 = vunpack.i.h.bf16 %v8917_v23  ;;  %v4753_v59 = vunpack.i.l.bf16 %v8917_v23  ;;  %v7280_v7 = vsel %vm1729_vm5, %v7104_v54, %v4738_v41  ;;  %v8918_v54 = vld [vmem:[#allocation52_spill] sm:$0xff] }
 0x159   : > { %v7237_v21 = vpop.permute.xlu1 %4916  ;;  %v7284_v9 = vsel %vm1729_vm5, %v7108_v53, %v4739_v18  ;;  %v7288_v17 = vsel %vm1729_vm5, %v7112_v10, %v4743_v15  ;;  %v7294_v45 = vsel %vm1729_vm5, %v7118_v36, %v4744_v28  ;;  %v4759_v58 = vunpack.i.h.bf16 %v8918_v54  ;;  %v8920_v18 = vld [vmem:[#allocation53_spill] sm:$0xff]  ;;  %v8921_v10 = vld [vmem:[#allocation54_spill] sm:$0xff] }
 0x15a   : > { %8913 = vst [vmem:[#allocation18_spill] sm:$0xff] %v7237_v21  ;;  %v7249_v35 = vpop.permute.xlu0 %4921  ;;  %v7257_v21 = vsel %vm1729_vm5, %v7081_v11, %v4724_v56  ;;  %v7276_v11 = vsel %vm1729_vm5, %v7100_v55, %v4734_v38  ;;  %v7298_v55 = vsel %vm1729_vm5, %v7122_v60, %v4748_v49  ;;  %v4758_v26 = vunpack.i.l.bf16 %v8918_v54  ;;  %v8922_v49 = vld [vmem:[#allocation55_spill] sm:$0xff] }
 0x15b   : > { %v4764_v38 = vunpack.i.h.bf16 %v8920_v18  ;;  %v4763_v15 = vunpack.i.l.bf16 %v8920_v18  ;;  %v4769_v41 = vunpack.i.h.bf16 %v8921_v10  ;;  %v4768_v46 = vunpack.i.l.bf16 %v8921_v10  ;;  %v8923_v18 = vld [vmem:[#allocation56_spill] sm:$0xff] }
 0x15c   : > { %v7310_v36 = vsel %vm1729_vm5, %v7134_v3, %v4749_v57  ;;  %v7314_v60 = vsel %vm1729_vm5, %v7138_v19, %v4753_v59  ;;  %v7318_v28 = vsel %vm1729_vm5, %v7142_v48, %v4754_v40  ;;  %v4773_v23 = vunpack.i.l.bf16 %v8922_v49  ;;  %v8926_v40 = vld [vmem:[#allocation58_spill] sm:$0xff] }
 0x15d   : > { %v7290_v56 = vpop.permute.xlu1 %4926  ;;  %v4774_v54 = vunpack.i.h.bf16 %v8922_v49  ;;  %v4779_v0 = vunpack.i.h.bf16 %v8923_v18  ;;  %v4778_v10 = vunpack.i.l.bf16 %v8923_v18  ;;  %v7329_v19 = vsel %vm1729_vm5, %v7153_v37, %v4758_v26 }
 0x15e   : > { %v7302_v53 = vpop.permute.xlu0 %4931  ;;  %v7333_v48 = vsel %vm1729_vm5, %v7157_v13, %v4759_v58  ;;  %v4784_v57 = vunpack.i.h.bf16 %v8924_v61  ;;  %v4788_v59 = vunpack.i.l.bf16 %v8926_v40  ;;  %v7341_v18 = vsel %vm1729_vm5, %v7165_v5, %v4763_v15  ;;  %v8927_v58 = vld [vmem:[#allocation59_spill] sm:$0xff] }
 0x15f   : > { %8919 = vst [vmem:[#allocation22_spill] sm:$0xff] %v7302_v53  ;;  %v4783_v53 = vunpack.i.l.bf16 %v8924_v61  ;;  %v7349_v37 = vsel %vm1729_vm5, %v7173_v63, %v4768_v46  ;;  %v7353_v13 = vsel %vm1729_vm5, %v7177_v1, %v4769_v41  ;;  %v7357_v61 = vsel %vm1729_vm5, %v7181_v2, %v4773_v23 }
 0x160   : > { %v4789_v5 = vunpack.i.h.bf16 %v8926_v40  ;;  %v4794_v26 = vunpack.i.h.bf16 %v8927_v58  ;;  %v7368_v63 = vsel %vm1729_vm5, %v7192_v14, %v4778_v10  ;;  %v7372_v1 = vsel %vm1729_vm5, %v7196_v44, %v4779_v0 }
 0x161   : > { %v7325_v3 = vpop.permute.xlu1 %4936  ;;  %v7376_v2 = vsel %vm1729_vm5, %v7200_v47, %v4783_v53  ;;  %v7382_v41 = vsel %vm1729_vm5, %v7206_v16, %v4784_v57  ;;  %v4804_v14 = vunpack.i.h.bf16 %v6721_v20  ;;  %v4803_v44 = vunpack.i.l.bf16 %v6721_v20 }
 0x162   : > { %8925 = vst [vmem:[#allocation23_spill] sm:$0xff] %v7325_v3  ;;  %v7337_v49 = vpop.permute.xlu0 %4941  ;;  %v7345_v3 = vsel %vm1729_vm5, %v7169_v51, %v4764_v38  ;;  %v4793_v51 = vunpack.i.l.bf16 %v8927_v58  ;;  %v7364_v38 = vsel %vm1729_vm5, %v7188_v6, %v4774_v54  ;;  %v7386_v6 = vsel %vm1729_vm5, %v7210_v12, %v4788_v59 }
 0x163   : > { %v4809_v47 = vunpack.i.h.bf16 %v6760_v62  ;;  %v4808_v53 = vunpack.i.l.bf16 %v6760_v62  ;;  %v4814_v46 = vunpack.i.h.bf16 %v6768_v25  ;;  %v4813_v16 = vunpack.i.l.bf16 %v6768_v25 }
 0x164   : > { %v7398_v23 = vsel %vm1729_vm5, %v7222_v29, %v4789_v5  ;;  %v7402_v12 = vsel %vm1729_vm5, %v7226_v43, %v4793_v51  ;;  %v7406_v20 = vsel %vm1729_vm5, %v7230_v27, %v4794_v26  ;;  %v4818_v54 = vunpack.i.l.bf16 %v6793_v39 }
 0x165   : > { %v7378_v15 = vpop.permute.xlu1 %4946  ;;  %v4819_v25 = vunpack.i.h.bf16 %v6793_v39  ;;  %v4823_v57 = vunpack.i.l.bf16 %v6805_v52  ;;  %v1763_v43 = vsel %vm1762_vm6, %v7253_v50, %v4803_v44  ;;  %v1764_v27 = vsel %vm1762_vm6, %v7257_v21, %v4804_v14 }
 0x166   : > { %v7390_v0 = vpop.permute.xlu0 %4951  ;;  %v4884_v40 = vunpack.i.h.bf16 %v7073_v31  ;;  %v4883_v59 = vunpack.i.l.bf16 %v7073_v31  ;;  %v1765_v58 = vsel %vm1762_vm6, %v7261_v30, %v4808_v53  ;;  %v1766_v39 = vsel %vm1762_vm6, %v7265_v32, %v4809_v47 }
 0x167   : > { %v1767_v26 = vsel %vm1762_vm6, %v7269_v22, %v4813_v16  ;;  %v1768_v50 = vsel %vm1762_vm6, %v7276_v11, %v4814_v46  ;;  %v1769_v21 = vsel %vm1762_vm6, %v7280_v7, %v4818_v54  ;;  %v4824_v51 = vunpack.i.h.bf16 %v6805_v52 }
 0x168   : > { %v1770_v44 = vsel %vm1762_vm6, %v7284_v9, %v4819_v25  ;;  %v7436_v30 = vsel %vm1762_vm6, %v7288_v17, %v4823_v57  ;;  %v4829_v32 = vunpack.i.h.bf16 %v6849_v24  ;;  %v4888_v22 = vunpack.i.l.bf16 %v7114_v42 }
 0x169   : > { %v7413_v29 = vpop.permute.xlu1 %4956  ;;  %v4828_v11 = vunpack.i.l.bf16 %v6849_v24  ;;  %v4889_v7 = vunpack.i.h.bf16 %v7114_v42  ;;  %v1796_v52 = vsel %vm1795_vm7, %v1763_v43, %v4883_v59  ;;  %v1797_v46 = vsel %vm1795_vm7, %v1764_v27, %v4884_v40 }
 0x16a   : > { %v4962_v5 = vpop.permute.xlu0 %4961  ;;  %v4833_v17 = vunpack.i.l.bf16 %v6861_v4  ;;  %v4894_v57 = vunpack.i.h.bf16 %v7126_v8  ;;  %v1798_v24 = vsel %vm1795_vm7, %v1765_v58, %v4888_v22  ;;  %v4893_v42 = vunpack.i.l.bf16 %v7126_v8 }
 0x16b   : > { %v4964_v14 = vunpack.i.h.bf16 %v4962_v5  ;;  %v4963_v31 = vunpack.i.l.bf16 %v4962_v5  ;;  %v1799_v40 = vsel %vm1795_vm7, %v1766_v39, %v4889_v7 }
 0x16c   : > { %v7468_v7 = vsel %vm1762_vm6, %v7314_v60, %v4833_v17 }
 0x16d   : > { %v4967_v47 = vpop.permute.xlu1 %4966  ;;  %v1829_v5 = vsel %vm1828_vm8, %v1796_v52, %v4963_v31  ;;  %v1830_v62 = vsel %vm1828_vm8, %v1797_v46, %v4964_v14  ;;  %v1772_v31 = vsel %vm1762_vm6, %v7294_v45, %v4824_v51  ;;  %v4834_v14 = vunpack.i.h.bf16 %v6861_v4 }
 0x16e   : > { %v4972_v53 = vpop.permute.xlu0 %4971  ;;  %v4969_v16 = vunpack.i.h.bf16 %v4967_v47  ;;  %v4968_v9 = vunpack.i.l.bf16 %v4967_v47  ;;  %v1774_v45 = vsel %vm1762_vm6, %v7310_v36, %v4829_v32  ;;  %v4898_v4 = vunpack.i.l.bf16 %v7149_v34  ;;  %v8928_v36 = vld [vmem:[#allocation7_spill] sm:$0xff] }
 0x16f   : > { %v4974_v54 = vunpack.i.h.bf16 %v4972_v53  ;;  %v4973_v25 = vunpack.i.l.bf16 %v4972_v53  ;;  %v4838_v32 = vunpack.i.l.bf16 %v8928_v36 }
 0x170   : > { %v1831_v58 = vsel %vm1828_vm8, %v1798_v24, %v4968_v9  ;;  %v1832_v8 = vsel %vm1828_vm8, %v1799_v40, %v4969_v16  ;;  %v1800_v16 = vsel %vm1795_vm7, %v1767_v26, %v4893_v42  ;;  %v1801_v9 = vsel %vm1795_vm7, %v1768_v50, %v4894_v57  ;;  %v8929_v24 = vld [vmem:[#allocation17_spill] sm:$0xff] }
 0x171   : > { %v4977_v10 = vpop.permute.xlu1 %4976  ;;  %v1862_v43 = vsel %vm1861_vm9, %v1829_v5, %v4973_v25  ;;  %v1863_v27 = vsel %vm1861_vm9, %v1830_v62, %v4974_v54  ;;  %v1802_v26 = vsel %vm1795_vm7, %v1769_v21, %v4898_v4  ;;  %v4903_v50 = vunpack.i.l.bf16 %v8929_v24 }
 0x172   : > { %v4979_v59 = vunpack.i.h.bf16 %v4977_v10  ;;  %v4978_v47 = vunpack.i.l.bf16 %v4977_v10  ;;  %v4982_v53 = vpop.permute.xlu0 %4981  ;;  %v1894_v33 = vpack.c.bf16 %v1863_v27, %v1862_v43  ;;  %v1773_v10 = vsel %vm1762_vm6, %v7298_v55, %v4828_v11 }
 0x173   : > { %v4984_v62 = vunpack.i.h.bf16 %v4982_v53  ;;  %v4983_v46 = vunpack.i.l.bf16 %v4982_v53  ;;  %v4904_v43 = vunpack.i.h.bf16 %v8929_v24 }
 0x174   : > { %v1864_v22 = vsel %vm1861_vm9, %v1831_v58, %v4978_v47  ;;  %v1865_v52 = vsel %vm1861_vm9, %v1832_v8, %v4979_v59  ;;  %4351 = vmatprep.mubr.msk.bf16.mxu0 %vm1930_vm10, %v1894_v33  ;;  %v4899_v33 = vunpack.i.h.bf16 %v7149_v34  ;;  %v1776_v58 = vsel %vm1762_vm6, %v7318_v28, %v4834_v14 }
 0x175   : > { %v4987_v39 = vpop.permute.xlu1 %4986  ;;  %v1895_v51 = vpack.c.bf16 %v1865_v52, %v1864_v22  ;;  %v1833_v60 = vsel %vm1828_vm8, %v1800_v16, %v4983_v46  ;;  %v1834_v17 = vsel %vm1828_vm8, %v1801_v9, %v4984_v62  ;;  %v4839_v8 = vunpack.i.h.bf16 %v8928_v36  ;;  %v8931_v16 = vld [vmem:[#allocation16_spill] sm:$0xff] }
 0x176   : > { %v4992_v54 = vpop.permute.xlu0 %4991  ;;  %v4989_v25 = vunpack.i.h.bf16 %v4987_v39  ;;  %v4988_v55 = vunpack.i.l.bf16 %v4987_v39  ;;  %v1803_v27 = vsel %vm1795_vm7, %v1770_v44, %v4899_v33  ;;  %v8930_v44 = vld [vmem:[#allocation9_spill] sm:$0xff]  ;;  %v4908_v28 = vunpack.i.l.bf16 %v8931_v16 }
 0x177   : > { %v4994_v11 = vunpack.i.h.bf16 %v4992_v54  ;;  %v4993_v5 = vunpack.i.l.bf16 %v4992_v54  ;;  %4352 = vmatmul.mubr.msk.bf16.vlgmr.msra.gmra.mrb[0].mxu0 %vm1930_vm10, %v1895_v51  ;;  %v4844_v39 = vunpack.i.h.bf16 %v8930_v44  ;;  %v4843_v51 = vunpack.i.l.bf16 %v8930_v44 }
 0x178   : > { %v1835_v21 = vsel %vm1828_vm8, %v1802_v26, %v4988_v55  ;;  %v1836_v22 = vsel %vm1828_vm8, %v1803_v27, %v4989_v25  ;;  %v1777_v33 = vsel %vm1762_vm6, %v7329_v19, %v4838_v32  ;;  %v1804_v54 = vsel %vm1795_vm7, %v7436_v30, %v4903_v50  ;;  %v8932_v26 = vld [vmem:[#allocation19_spill] sm:$0xff] }
 0x179   : > { %v1866_v34 = vsel %vm1861_vm9, %v1833_v60, %v4993_v5  ;;  %v1867_v57 = vsel %vm1861_vm9, %v1834_v17, %v4994_v11  ;;  %v4997_v42 = vpop.permute.xlu1 %4996  ;;  %v1805_v25 = vsel %vm1795_vm7, %v1772_v31, %v4904_v43  ;;  %v4909_v55 = vunpack.i.h.bf16 %v8931_v16 }
 0x17a   : > { %v4999_v40 = vunpack.i.h.bf16 %v4997_v42  ;;  %v4998_v59 = vunpack.i.l.bf16 %v4997_v42  ;;  %v5002_v47 = vpop.permute.xlu0 %5001  ;;  %v1896_v53 = vpack.c.bf16 %v1867_v57, %v1866_v34  ;;  %v1778_v17 = vsel %vm1762_vm6, %v7333_v48, %v4839_v8 }
 0x17b   : > { %v5004_v46 = vunpack.i.h.bf16 %v5002_v47  ;;  %v5003_v4 = vunpack.i.l.bf16 %v5002_v47  ;;  %v4914_v34 = vunpack.i.h.bf16 %v8932_v26  ;;  %v1806_v31 = vsel %vm1795_vm7, %v1773_v10, %v4908_v28 }
 0x17c   : > { %v1868_v52 = vsel %vm1861_vm9, %v1835_v21, %v4998_v59  ;;  %v1869_v62 = vsel %vm1861_vm9, %v1836_v22, %v4999_v40  ;;  %4355 = vmatprep.mubr.msk.bf16.mxu0 %vm1930_vm10, %v1896_v53  ;;  %v4913_v32 = vunpack.i.l.bf16 %v8932_v26  ;;  %v1807_v42 = vsel %vm1795_vm7, %v1774_v45, %v4909_v55 }
 0x17d   : > { %v5007_v14 = vpop.permute.xlu1 %5006  ;;  %v1897_v9 = vpack.c.bf16 %v1869_v62, %v1868_v52  ;;  %v1837_v19 = vsel %vm1828_vm8, %v1804_v54, %v5003_v4  ;;  %v1838_v30 = vsel %vm1828_vm8, %v1805_v25, %v5004_v46  ;;  %v1779_v47 = vsel %vm1762_vm6, %v7341_v18, %v4843_v51  ;;  %v8933_v62 = vld [vmem:[#allocation8_spill] sm:$0xff]  ;;  %v8934_v18 = vld [vmem:[#allocation18_spill] sm:$0xff] }
 0x17e   : > { %v5012_v11 = vpop.permute.xlu0 %5011  ;;  %v5009_v5 = vunpack.i.h.bf16 %v5007_v14  ;;  %v5008_v36 = vunpack.i.l.bf16 %v5007_v14  ;;  %v1780_v53 = vsel %vm1762_vm6, %v7345_v3, %v4844_v39  ;;  %v4849_v46 = vunpack.i.h.bf16 %v8933_v62  ;;  %v8935_v39 = vld [vmem:[#allocation11_spill] sm:$0xff] }
 0x17f   : > { %v5014_v24 = vunpack.i.h.bf16 %v5012_v11  ;;  %v5013_v60 = vunpack.i.l.bf16 %v5012_v11  ;;  %4356 = vmatmul.mubr.msk.bf16.gmra.mrb[4].mxu0 %vm1930_vm10, %v1897_v9  ;;  %v4848_v4 = vunpack.i.l.bf16 %v8933_v62  ;;  %v4918_v44 = vunpack.i.l.bf16 %v8934_v18 }
 0x180   : > { %v1839_v10 = vsel %vm1828_vm8, %v1806_v31, %v5008_v36  ;;  %v1840_v8 = vsel %vm1828_vm8, %v1807_v42, %v5009_v5  ;;  %v4854_v16 = vunpack.i.h.bf16 %v8935_v39  ;;  %v1808_v28 = vsel %vm1795_vm7, %v7468_v7, %v4913_v32 }
 0x181   : > { %v1870_v43 = vsel %vm1861_vm9, %v1837_v19, %v5013_v60  ;;  %v1871_v50 = vsel %vm1861_vm9, %v1838_v30, %v5014_v24  ;;  %v5017_v57 = vpop.permute.xlu1 %5016  ;;  %v1809_v14 = vsel %vm1795_vm7, %v1776_v58, %v4914_v34  ;;  %v4919_v9 = vunpack.i.h.bf16 %v8934_v18 }
 0x182   : > { %v5019_v27 = vunpack.i.h.bf16 %v5017_v57  ;;  %v5018_v40 = vunpack.i.l.bf16 %v5017_v57  ;;  %v5022_v48 = vpop.permute.xlu0 %5021  ;;  %v1898_v59 = vpack.c.bf16 %v1871_v50, %v1870_v43  ;;  %v4853_v36 = vunpack.i.l.bf16 %v8935_v39 }
 0x183   : > { %v5024_v52 = vunpack.i.h.bf16 %v5022_v48  ;;  %v5023_v45 = vunpack.i.l.bf16 %v5022_v48  ;;  %v4924_v24 = vunpack.i.h.bf16 %v7249_v35  ;;  %v1810_v7 = vsel %vm1795_vm7, %v1777_v33, %v4918_v44 }
 0x184   : > { %v1872_v21 = vsel %vm1861_vm9, %v1839_v10, %v5018_v40  ;;  %v1873_v22 = vsel %vm1861_vm9, %v1840_v8, %v5019_v27  ;;  %4359 = vmatprep.mubr.msk.bf16.mxu0 %vm1930_vm10, %v1898_v59  ;;  %v4923_v58 = vunpack.i.l.bf16 %v7249_v35  ;;  %v1811_v31 = vsel %vm1795_vm7, %v1778_v17, %v4919_v9  ;;  %v8936_v8 = vld [vmem:[#allocation10_spill] sm:$0xff] }
 0x185   : > { %v5027_v51 = vpop.permute.xlu1 %5026  ;;  %v1899_v3 = vpack.c.bf16 %v1873_v22, %v1872_v21  ;;  %v1841_v60 = vsel %vm1828_vm8, %v1808_v28, %v5023_v45  ;;  %v1842_v26 = vsel %vm1828_vm8, %v1809_v14, %v5024_v52  ;;  %v1781_v42 = vsel %vm1762_vm6, %v7349_v37, %v4848_v4  ;;  %v8938_v14 = vld [vmem:[#allocation22_spill] sm:$0xff] }
 0x186   : > { %v5032_v54 = vpop.permute.xlu0 %5031  ;;  %v5029_v25 = vunpack.i.h.bf16 %v5027_v51  ;;  %v5028_v55 = vunpack.i.l.bf16 %v5027_v51  ;;  %v1782_v27 = vsel %vm1762_vm6, %v7353_v13, %v4849_v46  ;;  %v1783_v10 = vsel %vm1762_vm6, %v7357_v61, %v4853_v36  ;;  %v8937_v61 = vld [vmem:[#allocation13_spill] sm:$0xff] }
 0x187   : > { %v5034_v11 = vunpack.i.h.bf16 %v5032_v54  ;;  %v5033_v5 = vunpack.i.l.bf16 %v5032_v54  ;;  %4360 = vmatmul.mubr.msk.bf16.gmra.mrb[8].mxu0 %vm1930_vm10, %v1899_v3  ;;  %v4859_v37 = vunpack.i.h.bf16 %v8936_v8  ;;  %v4928_v21 = vunpack.i.l.bf16 %v7290_v56 }
 0x188   : > { %v1843_v33 = vsel %vm1828_vm8, %v1810_v7, %v5028_v55  ;;  %v1844_v35 = vsel %vm1828_vm8, %v1811_v31, %v5029_v25  ;;  %v4858_v52 = vunpack.i.l.bf16 %v8936_v8  ;;  %v1812_v45 = vsel %vm1795_vm7, %v1779_v47, %v4923_v58 }
 0x189   : > { %v1874_v34 = vsel %vm1861_vm9, %v1841_v60, %v5033_v5  ;;  %v1875_v19 = vsel %vm1861_vm9, %v1842_v26, %v5034_v11  ;;  %v5037_v30 = vpop.permute.xlu1 %5036  ;;  %v1813_v62 = vsel %vm1795_vm7, %v1780_v53, %v4924_v24  ;;  %v4929_v46 = vunpack.i.h.bf16 %v7290_v56 }
 0x18a   : > { %v5039_v32 = vunpack.i.h.bf16 %v5037_v30  ;;  %v5038_v43 = vunpack.i.l.bf16 %v5037_v30  ;;  %v5042_v50 = vpop.permute.xlu0 %5041  ;;  %v1900_v57 = vpack.c.bf16 %v1875_v19, %v1874_v34  ;;  %v4863_v28 = vunpack.i.l.bf16 %v8937_v61 }
 0x18b   : > { %v5044_v59 = vunpack.i.h.bf16 %v5042_v50  ;;  %v5043_v17 = vunpack.i.l.bf16 %v5042_v50  ;;  %v4934_v9 = vunpack.i.h.bf16 %v8938_v14  ;;  %v1814_v47 = vsel %vm1795_vm7, %v1781_v42, %v4928_v21 }
 0x18c   : > { %v1876_v40 = vsel %vm1861_vm9, %v1843_v33, %v5038_v43  ;;  %v1877_v48 = vsel %vm1861_vm9, %v1844_v35, %v5039_v32  ;;  %4363 = vmatprep.mubr.msk.bf16.mxu0 %vm1930_vm10, %v1900_v57  ;;  %v4933_v53 = vunpack.i.l.bf16 %v8938_v14  ;;  %v1815_v5 = vsel %vm1795_vm7, %v1782_v27, %v4929_v46 }
 0x18d   : > { %v5047_v13 = vpop.permute.xlu1 %5046  ;;  %v1901_v22 = vpack.c.bf16 %v1877_v48, %v1876_v40  ;;  %v1845_v54 = vsel %vm1828_vm8, %v1812_v45, %v5043_v17  ;;  %v1846_v25 = vsel %vm1828_vm8, %v1813_v62, %v5044_v59  ;;  %v1784_v7 = vsel %vm1762_vm6, %v7364_v38, %v4854_v16  ;;  %v8939_v16 = vld [vmem:[#allocation23_spill] sm:$0xff] }
 0x18e   : > { %v5052_v4 = vpop.permute.xlu0 %5051  ;;  %v5049_v18 = vunpack.i.h.bf16 %v5047_v13  ;;  %v5048_v44 = vunpack.i.l.bf16 %v5047_v13  ;;  %v4864_v58 = vunpack.i.h.bf16 %v8937_v61  ;;  %v1785_v39 = vsel %vm1762_vm6, %v7368_v63, %v4858_v52 }
 0x18f   : > { %v5054_v51 = vunpack.i.h.bf16 %v5052_v4  ;;  %v5053_v3 = vunpack.i.l.bf16 %v5052_v4  ;;  %4364 = vmatmul.mubr.msk.bf16.gmra.mrb[12].mxu0 %vm1930_vm10, %v1901_v22  ;;  %v1786_v38 = vsel %vm1762_vm6, %v7372_v1, %v4859_v37  ;;  %v4938_v50 = vunpack.i.l.bf16 %v8939_v16  ;;  %v8940_v1 = vld [vmem:[#allocation12_spill] sm:$0xff] }
 0x190   : > { %v1847_v34 = vsel %vm1828_vm8, %v1814_v47, %v5048_v44  ;;  %v1848_v19 = vsel %vm1828_vm8, %v1815_v5, %v5049_v18  ;;  %v1787_v27 = vsel %vm1762_vm6, %v7376_v2, %v4863_v28  ;;  %v1816_v33 = vsel %vm1795_vm7, %v1783_v10, %v4933_v53  ;;  %v8941_v47 = vld [vmem:[#allocation15_spill] sm:$0xff] }
 0x191   : > { %v1878_v56 = vsel %vm1861_vm9, %v1845_v54, %v5053_v3  ;;  %v1879_v55 = vsel %vm1861_vm9, %v1846_v25, %v5054_v51  ;;  %v5057_v11 = vpop.permute.xlu1 %5056  ;;  %v1817_v35 = vsel %vm1795_vm7, %v1784_v7, %v4934_v9  ;;  %v4939_v40 = vunpack.i.h.bf16 %v8939_v16 }
 0x192   : > { %v5059_v36 = vunpack.i.h.bf16 %v5057_v11  ;;  %v5058_v24 = vunpack.i.l.bf16 %v5057_v11  ;;  %v5062_v60 = vpop.permute.xlu0 %5061  ;;  %v1902_v26 = vpack.c.bf16 %v1879_v55, %v1878_v56  ;;  %v4868_v37 = vunpack.i.l.bf16 %v8940_v1 }
 0x193   : > { %v5064_v32 = vunpack.i.h.bf16 %v5062_v60  ;;  %v5063_v43 = vunpack.i.l.bf16 %v5062_v60  ;;  %v4944_v21 = vunpack.i.h.bf16 %v7337_v49  ;;  %v1818_v10 = vsel %vm1795_vm7, %v1785_v39, %v4938_v50 }
 0x194   : > { %v1880_v30 = vsel %vm1861_vm9, %v1847_v34, %v5058_v24  ;;  %v1881_v31 = vsel %vm1861_vm9, %v1848_v19, %v5059_v36  ;;  %4367 = vmatprep.mubr.msk.bf16.mxu0 %vm1930_vm10, %v1902_v26  ;;  %v4943_v22 = vunpack.i.l.bf16 %v7337_v49  ;;  %v1819_v46 = vsel %vm1795_vm7, %v1786_v38, %v4939_v40 }
 0x195   : > { %v5067_v57 = vpop.permute.xlu1 %5066  ;;  %v1903_v42 = vpack.c.bf16 %v1881_v31, %v1880_v30  ;;  %v1849_v13 = vsel %vm1828_vm8, %v1816_v33, %v5063_v43  ;;  %v1850_v2 = vsel %vm1828_vm8, %v1817_v35, %v5064_v32  ;;  %v1788_v3 = vsel %vm1762_vm6, %v7382_v41, %v4864_v58  ;;  %v8942_v35 = vld [vmem:[#allocation14_spill] sm:$0xff] }
 0x196   : > { %v5072_v48 = vpop.permute.xlu0 %5071  ;;  %v5069_v59 = vunpack.i.h.bf16 %v5067_v57  ;;  %v5068_v17 = vunpack.i.l.bf16 %v5067_v57  ;;  %v4869_v61 = vunpack.i.h.bf16 %v8940_v1  ;;  %v4874_v53 = vunpack.i.h.bf16 %v8941_v47 }
 0x197   : > { %v5074_v63 = vunpack.i.h.bf16 %v5072_v48  ;;  %v5073_v8 = vunpack.i.l.bf16 %v5072_v48  ;;  %4368 = vmatmul.mubr.msk.bf16.gmra.mrb[16].mxu0 %vm1930_vm10, %v1903_v42  ;;  %v4873_v56 = vunpack.i.l.bf16 %v8941_v47  ;;  %v4948_v41 = vunpack.i.l.bf16 %v7378_v15 }
 0x198   : > { %v1851_v28 = vsel %vm1828_vm8, %v1818_v10, %v5068_v17  ;;  %v1852_v49 = vsel %vm1828_vm8, %v1819_v46, %v5069_v59  ;;  %v1789_v5 = vsel %vm1762_vm6, %v7386_v6, %v4868_v37  ;;  %v1820_v36 = vsel %vm1795_vm7, %v1787_v27, %v4943_v22  ;;  %v8945_v22 = vld [vmem:[#allocation20_spill] sm:$0xff] }
 0x199   : > { %v1882_v52 = vsel %vm1861_vm9, %v1849_v13, %v5073_v8  ;;  %v1883_v45 = vsel %vm1861_vm9, %v1850_v2, %v5074_v63  ;;  %v5077_v62 = vpop.permute.xlu1 %5076  ;;  %v1821_v24 = vsel %vm1795_vm7, %v1788_v3, %v4944_v21  ;;  %v4949_v60 = vunpack.i.h.bf16 %v7378_v15  ;;  %v8943_v2 = vld [vmem:[#allocation60_spill] sm:$0xff] }
 0x19a   : > { %v5079_v4 = vunpack.i.h.bf16 %v5077_v62  ;;  %v5078_v18 = vunpack.i.l.bf16 %v5077_v62  ;;  %v5082_v44 = vpop.permute.xlu0 %5081  ;;  %v1904_v51 = vpack.c.bf16 %v1883_v45, %v1882_v52  ;;  %v1790_v30 = vsel %vm1762_vm6, %v7398_v23, %v4869_v61  ;;  %v8947_v61 = vld [vmem:[#allocation21_spill] sm:$0xff] }
 0x19b   : > { %v5084_v54 = vunpack.i.h.bf16 %v5082_v44  ;;  %v5083_v25 = vunpack.i.l.bf16 %v5082_v44  ;;  %v4954_v31 = vunpack.i.h.bf16 %v7390_v0  ;;  %v1822_v43 = vsel %vm1795_vm7, %v1789_v5, %v4948_v41 }
 0x19c   : > { %v1884_v14 = vsel %vm1861_vm9, %v1851_v28, %v5078_v18  ;;  %v1885_v9 = vsel %vm1861_vm9, %v1852_v49, %v5079_v4  ;;  %4371 = vmatprep.mubr.msk.bf16.mxu0 %vm1930_vm10, %v1904_v51  ;;  %v4953_v15 = vunpack.i.l.bf16 %v7390_v0  ;;  %v1823_v50 = vsel %vm1795_vm7, %v1790_v30, %v4949_v60  ;;  %v2328_v30 = vld [vmem:[#allocation3 + $0x2] sm:$0xff] }
 0x19d   : > { %v5087_v55 = vpop.permute.xlu1 %5086  ;;  %v1905_v11 = vpack.c.bf16 %v1885_v9, %v1884_v14  ;;  %v1853_v6 = vsel %vm1828_vm8, %v1820_v36, %v5083_v25  ;;  %v1854_v32 = vsel %vm1828_vm8, %v1821_v24, %v5084_v54  ;;  %v1791_v33 = vsel %vm1762_vm6, %v7402_v12, %v4873_v56 }
 0x19e   : > { %v5092_v26 = vpop.permute.xlu0 %5091  ;;  %v5089_v7 = vunpack.i.h.bf16 %v5087_v55  ;;  %v5088_v58 = vunpack.i.l.bf16 %v5087_v55  ;;  %v4878_v40 = vunpack.i.l.bf16 %v8942_v35  ;;  %v1792_v1 = vsel %vm1762_vm6, %v7406_v20, %v4874_v53 }
 0x19f   : > { %v5094_v34 = vunpack.i.h.bf16 %v5092_v26  ;;  %v5093_v19 = vunpack.i.l.bf16 %v5092_v26  ;;  %4372 = vmatmul.mubr.msk.bf16.gmra.mrb[20].mxu0 %vm1930_vm10, %v1905_v11  ;;  %v4879_v37 = vunpack.i.h.bf16 %v8942_v35  ;;  %v4958_v12 = vunpack.i.l.bf16 %v7413_v29 }
 0x1a0   : > { %v1855_v48 = vsel %vm1828_vm8, %v1822_v43, %v5088_v58  ;;  %v1856_v0 = vsel %vm1828_vm8, %v1823_v50, %v5089_v7  ;;  %v8944_v10 = vunpack.i.l.bf16 %v8943_v2  ;;  %v1824_v45 = vsel %vm1795_vm7, %v1791_v33, %v4953_v15  ;;  %v2296_v58 = vld [vmem:[#allocation3 + $0x1] sm:$0xff] }
 0x1a1   : > { %v1886_v39 = vsel %vm1861_vm9, %v1853_v6, %v5093_v19  ;;  %v1887_v38 = vsel %vm1861_vm9, %v1854_v32, %v5094_v34  ;;  %v5097_v16 = vpop.permute.xlu1 %5096  ;;  %v1825_v62 = vsel %vm1795_vm7, %v1792_v1, %v4954_v31  ;;  %v4959_v46 = vunpack.i.h.bf16 %v7413_v29 }
 0x1a2   : > { %v5099_v57 = vunpack.i.h.bf16 %v5097_v16  ;;  %v5098_v42 = vunpack.i.l.bf16 %v5097_v16  ;;  %v5102_v23 = vpop.permute.xlu0 %5101  ;;  %v1906_v27 = vpack.c.bf16 %v1887_v38, %v1886_v39  ;;  %v1760_v52 = vsel %vm1729_vm5, %v8945_v22, %v8944_v10 }
 0x1a3   : > { %v5104_v63 = vunpack.i.h.bf16 %v5102_v23  ;;  %v5103_v8 = vunpack.i.l.bf16 %v5102_v23  ;;  %v8946_v3 = vunpack.i.h.bf16 %v8943_v2  ;;  %v1793_v49 = vsel %vm1762_vm6, %v1760_v52, %v4878_v40 }
 0x1a4   : > { %v1888_v59 = vsel %vm1861_vm9, %v1855_v48, %v5098_v42  ;;  %v1889_v17 = vsel %vm1861_vm9, %v1856_v0, %v5099_v57  ;;  %4375 = vmatprep.mubr.msk.bf16.mxu0 %vm1930_vm10, %v1906_v27  ;;  %v1826_v54 = vsel %vm1795_vm7, %v1793_v49, %v4958_v12  ;;  %v8948_v7 = vmov 0.0  }
 0x1a5   : > { %v5107_v21 = vpop.permute.xlu1 %5106  ;;  %v1907_v13 = vpack.c.bf16 %v1889_v17, %v1888_v59  ;;  %v1761_v28 = vsel %vm1729_vm5, %v8947_v61, %v8946_v3  ;;  %v1857_v14 = vsel %vm1828_vm8, %v1824_v45, %v5103_v8  ;;  %v1858_v9 = vsel %vm1828_vm8, %v1825_v62, %v5104_v63  ;;  %2185 = vst.msk [vmem:[#allocation3 + $0x40] sm:$0x3] %vm2178_vm11, %v8948_v7 }
 0x1a6   : > { %v5112_v4 = vpop.permute.xlu0 %5111  ;;  %v5109_v18 = vunpack.i.h.bf16 %v5107_v21  ;;  %v5108_v20 = vunpack.i.l.bf16 %v5107_v21  ;;  %v1794_v29 = vsel %vm1762_vm6, %v1761_v28, %v4879_v37  ;;  %2179 = vst.msk [vmem:[#allocation3 + $0x10] sm:$0x3] %vm2178_vm11, %v8948_v7  ;;  %2182 = vst.msk [vmem:[#allocation3 + $0x28] sm:$0x3] %vm2178_vm11, %v8948_v7 }
 0x1a7   : > { %v5114_v44 = vunpack.i.h.bf16 %v5112_v4  ;;  %v5113_v51 = vunpack.i.l.bf16 %v5112_v4  ;;  %4376 = vmatmul.mubr.msk.bf16.gmra.mrb[24].mxu0 %vm1930_vm10, %v1907_v13  ;;  %v1827_v56 = vsel %vm1795_vm7, %v1794_v29, %v4959_v46  ;;  %2188 = vst.msk [vmem:[#allocation3 + $0x58] sm:$0x3] %vm2178_vm11, %v8948_v7  ;;  %2191 = vst.msk [vmem:[#allocation3 + $0x70] sm:$0x3] %vm2178_vm11, %v8948_v7 }
 0x1a8   : > { %v1859_v5 = vsel %vm1828_vm8, %v1826_v54, %v5108_v20  ;;  %v1860_v36 = vsel %vm1828_vm8, %v1827_v56, %v5109_v18  ;;  %2194 = vst.msk [vmem:[#allocation3 + $0x88] sm:$0x3] %vm2178_vm11, %v8948_v7  ;;  %2197 = vst.msk [vmem:[#allocation3 + $0xa0] sm:$0x3] %vm2178_vm11, %v8948_v7 }
 0x1a9   : > { %v1890_v25 = vsel %vm1861_vm9, %v1857_v14, %v5113_v51  ;;  %v1891_v47 = vsel %vm1861_vm9, %v1858_v9, %v5114_v44  ;;  %v5117_v53 = vpop.permute.xlu1 %5116  ;;  %2200 = vst.msk [vmem:[#allocation3 + $0xb8] sm:$0x3] %vm2178_vm11, %v8948_v7  ;;  %2203 = vst.msk [vmem:[#allocation3 + $0xd0] sm:$0x3] %vm2178_vm11, %v8948_v7 }
 0x1aa   : > { %v5119_v41 = vunpack.i.h.bf16 %v5117_v53  ;;  %v5118_v55 = vunpack.i.l.bf16 %v5117_v53  ;;  %v1908_v11 = vpack.c.bf16 %v1891_v47, %v1890_v25  ;;  %2206 = vst.msk [vmem:[#allocation3 + $0xe8] sm:$0x3] %vm2178_vm11, %v8948_v7  ;;  %2209 = vst.msk [vmem:[#allocation3 + $0x100] sm:$0x3] %vm2178_vm11, %v8948_v7 }
 0x1ab   : > { %2212 = vst.msk [vmem:[#allocation3 + $0x118] sm:$0x3] %vm2178_vm11, %v8948_v7  ;;  %2215 = vst.msk [vmem:[#allocation3 + $0x130] sm:$0x3] %vm2178_vm11, %v8948_v7 }
 0x1ac   : > { %v1892_v24 = vsel %vm1861_vm9, %v1859_v5, %v5118_v55  ;;  %v1893_v60 = vsel %vm1861_vm9, %v1860_v36, %v5119_v41  ;;  %4379 = vmatprep.mubr.msk.bf16.mxu0 %vm1930_vm10, %v1908_v11  ;;  %2218 = vst.msk [vmem:[#allocation3 + $0x148] sm:$0x3] %vm2178_vm11, %v8948_v7  ;;  %2221 = vst.msk [vmem:[#allocation3 + $0x160] sm:$0x3] %vm2178_vm11, %v8948_v7 }
 0x1ad   : > { %v1909_v26 = vpack.c.bf16 %v1893_v60, %v1892_v24  ;;  %2224 = vst.msk [vmem:[#allocation3 + $0x178] sm:$0x3] %vm2178_vm11, %v8948_v7  ;;  %2227 = vst.msk [vmem:[#allocation3 + $0x190] sm:$0x3] %vm2178_vm11, %v8948_v7  ;;  %v2297_v34 = vld [vmem:[#allocation3 + $0x9] sm:$0xff] }
 0x1ae   : > { %2230 = vst.msk [vmem:[#allocation3 + $0x1a8] sm:$0x3] %vm2178_vm11, %v8948_v7  ;;  %v5120_v19 = vpack.i.bf16 %v2297_v34, %v2296_v58  ;;  %v2329_v31 = vld [vmem:[#allocation3 + $0xa] sm:$0xff] }
 0x1af   : > { %4380 = vmatmul.mubr.msk.bf16.gmra.mrb[28].mxu0 %vm1930_vm10, %v1909_v26  ;;  %v5125_v6 = vpack.i.bf16 %v2329_v31, %v2328_v30 }
 0x1b0   : > { %5121 = vrot.lane.b32.xlu0 %v5120_v19, %s5834_s7  ;;  %v5763_v19 = vld [vmem:[%s8727_s2] sm:$0xff]  }
 0x1b1   : > { %4383 = vmatprep.subr.bf16.mxu1 %v5763_v19 }
 0x1b2   : > { %4384 = vmatpush3.bf16.msra.mxu1 %v5763_v19 }
 0x1b4   : > { %5126 = vrot.lane.b32.xlu0 %v5125_v6, %s5836_s9 }
 0x24a   : > { %v4353_v32 = vpop.f32.mrb[0].mxu0 }
 0x24b   : > { %v2146_v43 = vmax.f32 %v4353_v32, 0.0  ;;  %v2017_v15 = vpop.f32.mrb[1].mxu0 }
 0x24c   : > { %v2144_v39 = vmax.f32 %v2017_v15, 0.0  ;;  %v4354_v38 = vpop.f32.mrb[2].mxu0 }
 0x24d   : > { %2234 = vst.msk [vmem:[#allocation3 + $0x31] sm:$0xff] %vm1663_vm2, %v2146_v43  ;;  %v2147_v16 = vmax.f32 %v4354_v38, 0.0  ;;  %v2020_v50 = vpop.f32.mrb[3].mxu0  ;;  %v5764_v43 = vld [vmem:[%s8727_s2 + $0x8] sm:$0xff]  }
 0x24e   : > { %2232 = vst.msk [vmem:[#allocation3 + $0x19] sm:$0xff] %vm1663_vm2, %v2144_v39  ;;  %v2145_v57 = vmax.f32 %v2020_v50, 0.0  ;;  %4385 = vmatprep.subr.bf16.mxu1 %v5764_v43 }
 0x24f   : > { %2235 = vst.msk [vmem:[#allocation3 + $0x39] sm:$0xff] %vm1663_vm2, %v2147_v16  ;;  %4386 = vmatpush3.bf16.msra.mxu1 %v5764_v43 }
 0x250   : > { %2233 = vst.msk [vmem:[#allocation3 + $0x21] sm:$0xff] %vm1663_vm2, %v2145_v57 }
 0x252   : > { %v4357_v42 = vpop.f32.mrb[4].mxu0 }
 0x253   : > { %v2150_v23 = vmax.f32 %v4357_v42, 0.0  ;;  %v2033_v27 = vpop.f32.mrb[5].mxu0 }
 0x254   : > { %v2148_v33 = vmax.f32 %v2033_v27, 0.0  ;;  %v4358_v35 = vpop.f32.mrb[6].mxu0  ;;  %v7703_v0 = vld [vmem:[#allocation3 + $0x30] sm:$0xff]  ;;  %v5765_v27 = vld [vmem:[%s8727_s2 + $0x10] sm:$0xff]  }
 0x255   : > { %2238 = vst.msk [vmem:[#allocation3 + $0x61] sm:$0xff] %vm1663_vm2, %v2150_v23  ;;  %v2151_v40 = vmax.f32 %v4358_v35, 0.0  ;;  %v2036_v48 = vpop.f32.mrb[7].mxu0  ;;  %v2300_v63 = vld [vmem:[#allocation3 + $0x31] sm:$0xff]  ;;  %v2298_v54 = vld [vmem:[#allocation3 + $0x19] sm:$0xff]  ;;  %4387 = vmatprep.subr.bf16.mxu1 %v5765_v27 }
 0x256   : > { %2236 = vst.msk [vmem:[#allocation3 + $0x49] sm:$0xff] %vm1663_vm2, %v2148_v33  ;;  %v2149_v59 = vmax.f32 %v2036_v48, 0.0  ;;  %v7706_v17 = vld [vmem:[#allocation3 + $0x38] sm:$0xff]  ;;  %4388 = vmatpush3.bf16.msra.mxu1 %v5765_v27 }
 0x257   : > { %v2301_v8 = vld [vmem:[#allocation3 + $0x39] sm:$0xff]  ;;  %2239 = vst.msk [vmem:[#allocation3 + $0x69] sm:$0xff] %vm1663_vm2, %v2151_v40  ;;  %v5140_v1 = vpack.i.bf16 %v7706_v17, %v7703_v0  ;;  %v2299_v28 = vld [vmem:[#allocation3 + $0x21] sm:$0xff] }
 0x258   : > { %v5130_v37 = vpack.i.bf16 %v2301_v8, %v2300_v63  ;;  %2237 = vst.msk [vmem:[#allocation3 + $0x51] sm:$0xff] %vm1663_vm2, %v2149_v59  ;;  %v2332_v12 = vld [vmem:[#allocation3 + $0x32] sm:$0xff]  ;;  %v2333_v21 = vld [vmem:[#allocation3 + $0x3a] sm:$0xff]  ;;  %v5170_v47 = vpack.i.bf16 %v2299_v28, %v2298_v54  ;;  %v2331_v56 = vld [vmem:[#allocation3 + $0x22] sm:$0xff] }
 0x259   : > { %5141 = vrot.lane.b32.xlu1 %v5140_v1, %s5838_s11  ;;  %v5135_v22 = vpack.i.bf16 %v2333_v21, %v2332_v12  ;;  %v7722_v61 = vld [vmem:[#allocation3 + $0x20] sm:$0xff]  ;;  %v7728_v29 = vld [vmem:[#allocation3 + $0x18] sm:$0xff]  ;;  %v5766_v59 = vld [vmem:[%s8727_s2 + $0x18] sm:$0xff]  }
 0x25a   : > { %5131 = vrot.lane.b32.xlu0 %v5130_v37, %s5834_s7  ;;  %v4361_v13 = vpop.f32.mrb[8].mxu0  ;;  %v5180_v25 = vpack.i.bf16 %v7722_v61, %v7728_v29  ;;  %v2330_v53 = vld [vmem:[#allocation3 + $0x1a] sm:$0xff]  ;;  %4389 = vmatprep.subr.bf16.mxu1 %v5766_v59 }
 0x25b   : > { %v2154_v2 = vmax.f32 %v4361_v13, 0.0  ;;  %v2049_v10 = vpop.f32.mrb[9].mxu0  ;;  %v5175_v24 = vpack.i.bf16 %v2331_v56, %v2330_v53  ;;  %4390 = vmatpush3.bf16.msra.mxu1 %v5766_v59  ;;  %v7853_v59 = vpop.permute.xlu0 %5121 }
 0x25c   : > { %v2152_v52 = vmax.f32 %v2049_v10, 0.0  ;;  %v4362_v45 = vpop.f32.mrb[10].mxu0  ;;  %v2304_v11 = vld [vmem:[#allocation3 + $0x61] sm:$0xff] }
 0x25d   : > { %2242 = vst.msk [vmem:[#allocation3 + $0x91] sm:$0xff] %vm1663_vm2, %v2154_v2  ;;  %v2155_v62 = vmax.f32 %v4362_v45, 0.0  ;;  %5156 = vrot.lane.b32.xlu1 %v5140_v1, %s5841_s29  ;;  %v2052_v46 = vpop.f32.mrb[11].mxu0  ;;  %v7766_v35 = vld [vmem:[#allocation3 + $0x60] sm:$0xff]  ;;  %v7780_v8 = vld [vmem:[#allocation3 + $0x48] sm:$0xff] }
 0x25e   : > { %5136 = vrot.lane.b32.xlu0 %v5135_v22, %s5836_s9  ;;  %2240 = vst.msk [vmem:[#allocation3 + $0x79] sm:$0xff] %vm1663_vm2, %v2152_v52  ;;  %v2153_v4 = vmax.f32 %v2052_v46, 0.0  ;;  %v2305_v41 = vld [vmem:[#allocation3 + $0x69] sm:$0xff] }
 0x25f   : > { %2243 = vst.msk [vmem:[#allocation3 + $0x99] sm:$0xff] %vm1663_vm2, %v2155_v62  ;;  %v7736_v60 = vpack.i.bf16 %v2305_v41, %v2304_v11  ;;  %v2336_v58 = vld [vmem:[#allocation3 + $0x62] sm:$0xff]  ;;  %v2337_v34 = vld [vmem:[#allocation3 + $0x6a] sm:$0xff] }
 0x260   : > { %2241 = vst.msk [vmem:[#allocation3 + $0x81] sm:$0xff] %vm1663_vm2, %v2153_v4  ;;  %v7747_v32 = vpack.i.bf16 %v2337_v34, %v2336_v58  ;;  %v7756_v57 = vld [vmem:[#allocation3 + $0x68] sm:$0xff]  ;;  %v7772_v48 = vld [vmem:[#allocation3 + $0x50] sm:$0xff] }
 0x261   : > { %5161 = vrot.lane.b32.xlu1 %v5130_v37, %s5842_s30  ;;  %v5205_v40 = vpack.i.bf16 %v7756_v57, %v7766_v35  ;;  %v5245_v12 = vpack.i.bf16 %v7772_v48, %v7780_v8  ;;  %v2492_v62 = vld [vmem:[#allocation3 + $0x51] sm:$0xff]  ;;  %v2491_v4 = vld [vmem:[#allocation3 + $0x49] sm:$0xff] }
 0x262   : > { %5146 = vrot.lane.b32.xlu0 %v5130_v37, %s5840_s28  ;;  %v4365_v18 = vpop.f32.mrb[12].mxu0  ;;  %v2523_v28 = vld [vmem:[#allocation3 + $0x4a] sm:$0xff] }
 0x263   : > { %v2158_v20 = vmax.f32 %v4365_v18, 0.0  ;;  %v2065_v44 = vpop.f32.mrb[13].mxu0 }
 0x264   : > { %v2156_v51 = vmax.f32 %v2065_v44, 0.0  ;;  %v4366_v3 = vpop.f32.mrb[14].mxu0  ;;  %v5255_v44 = vpack.i.bf16 %v2492_v62, %v2491_v4  ;;  %v2308_v53 = vld [vmem:[#allocation3 + $0x91] sm:$0xff] }
 0x265   : > { %2246 = vst.msk [vmem:[#allocation3 + $0xc1] sm:$0xff] %vm1663_vm2, %v2158_v20  ;;  %v2159_v49 = vmax.f32 %v4366_v3, 0.0  ;;  %5166 = vrot.lane.b32.xlu1 %v5135_v22, %s5843_s5  ;;  %v2068_v14 = vpop.f32.mrb[15].mxu0  ;;  %v2495_v34 = vld [vmem:[#allocation3 + $0x79] sm:$0xff] }
 0x266   : > { %5151 = vrot.lane.b32.xlu0 %v5135_v22, %s5844_s6  ;;  %2244 = vst.msk [vmem:[#allocation3 + $0xa9] sm:$0xff] %vm1663_vm2, %v2156_v51  ;;  %v2157_v9 = vmax.f32 %v2068_v14, 0.0  ;;  %v5767_v22 = vld [vmem:[%s8727_s2 + $0x20] ss:$0 sps:$4 sm:$0xff]   ;;  %v2340_v41 = vld [vmem:[#allocation3 + $0x92] sm:$0xff] }
 0x267   : > { %2247 = vst.msk [vmem:[#allocation3 + $0xc9] sm:$0xff] %vm1663_vm2, %v2159_v49  ;;  %4426 = vmatprep.subr.msk.bf16.mxu1 %vm3945_vm12, %v5767_v22  ;;  %v3947_v45 = vsel %vm3945_vm12, %v5767_v22, 0  ;;  %v2524_v49 = vld [vmem:[#allocation3 + $0x52] sm:$0xff]  ;;  %v2496_v58 = vld [vmem:[#allocation3 + $0x81] sm:$0xff] }
 0x268   : > { %2245 = vst.msk [vmem:[#allocation3 + $0xb1] sm:$0xff] %vm1663_vm2, %v2157_v9  ;;  %4392 = vmatpush3.bf16.msra.mxu1 %v3947_v45  ;;  %v5335_v19 = vpack.i.bf16 %v2496_v58, %v2495_v34 }
 0x269   : > { %5171 = vrot.lane.b32.xlu1 %v5170_v47, %s5834_s7 }
 0x26a   : > { %5181 = vrot.lane.b32.xlu0 %v5180_v25, %s5838_s11  ;;  %v4369_v55 = vpop.f32.mrb[16].mxu0  ;;  %v5260_v25 = vpack.i.bf16 %v2524_v49, %v2523_v28 }
 0x26b   : > { %v2162_v5 = vmax.f32 %v4369_v55, 0.0  ;;  %v2081_v36 = vpop.f32.mrb[17].mxu0  ;;  %v2341_v55 = vld [vmem:[#allocation3 + $0x9a] sm:$0xff] }
 0x26c   : > { %v2160_v26 = vmax.f32 %v2081_v36, 0.0  ;;  %v4370_v7 = vpop.f32.mrb[18].mxu0  ;;  %v5280_v11 = vpack.i.bf16 %v2341_v55, %v2340_v41  ;;  %v7813_v36 = vld [vmem:[#allocation3 + $0x90] sm:$0xff]  ;;  %v2312_v43 = vld [vmem:[#allocation3 + $0xc1] sm:$0xff] }
 0x26d   : > { %2250 = vst.msk [vmem:[#allocation3 + $0xf1] sm:$0xff] %vm1663_vm2, %v2162_v5  ;;  %v2163_v30 = vmax.f32 %v4370_v7, 0.0  ;;  %5176 = vrot.lane.b32.xlu1 %v5175_v24, %s5836_s9  ;;  %v2084_v31 = vpop.f32.mrb[19].mxu0  ;;  %v7809_v5 = vld [vmem:[#allocation3 + $0x98] sm:$0xff] }
 0x26e   : > { %5196 = vrot.lane.b32.xlu0 %v7736_v60, %s5834_s7  ;;  %2248 = vst.msk [vmem:[#allocation3 + $0xd9] sm:$0xff] %vm1663_vm2, %v2160_v26  ;;  %v2161_v6 = vmax.f32 %v2084_v31, 0.0  ;;  %v7821_v26 = vld [vmem:[#allocation3 + $0x78] sm:$0xff]  ;;  %v2528_v31 = vld [vmem:[#allocation3 + $0x82] sm:$0xff] }
 0x26f   : > { %2251 = vst.msk [vmem:[#allocation3 + $0xf9] sm:$0xff] %vm1663_vm2, %v2163_v30  ;;  %v2527_v30 = vld [vmem:[#allocation3 + $0x7a] sm:$0xff]  ;;  %v2373_v27 = vld [vmem:[#allocation3 + $0xb0] sm:$0xff] }
 0x270   : > { %2249 = vst.msk [vmem:[#allocation3 + $0xe1] sm:$0xff] %vm1663_vm2, %v2161_v6  ;;  %v5340_v6 = vpack.i.bf16 %v2528_v31, %v2527_v30 }
 0x271   : > { %5186 = vrot.lane.b32.xlu1 %v5170_v47, %s5840_s28  ;;  %v2309_v47 = vld [vmem:[#allocation3 + $0x99] sm:$0xff] }
 0x272   : > { %5201 = vrot.lane.b32.xlu0 %v7747_v32, %s5836_s9  ;;  %v4373_v15 = vpop.f32.mrb[20].mxu0  ;;  %v5275_v56 = vpack.i.bf16 %v2309_v47, %v2308_v53 }
 0x273   : > { %v2166_v39 = vmax.f32 %v4373_v15, 0.0  ;;  %v2097_v38 = vpop.f32.mrb[21].mxu0 }
 0x274   : > { %v2164_v16 = vmax.f32 %v2097_v38, 0.0  ;;  %v4374_v50 = vpop.f32.mrb[22].mxu0  ;;  %v2345_v38 = vld [vmem:[#allocation3 + $0xca] sm:$0xff] }
 0x275   : > { %2254 = vst.msk [vmem:[#allocation3 + $0x121] sm:$0xff] %vm1663_vm2, %v2166_v39  ;;  %v2167_v42 = vmax.f32 %v4374_v50, 0.0  ;;  %5191 = vrot.lane.b32.xlu1 %v5175_v24, %s5844_s6  ;;  %v2100_v23 = vpop.f32.mrb[23].mxu0  ;;  %v5285_v24 = vpack.i.bf16 %v7809_v5, %v7813_v36  ;;  %v2344_v39 = vld [vmem:[#allocation3 + $0xc2] sm:$0xff]  ;;  %v2316_v22 = vld [vmem:[#allocation3 + $0xf1] sm:$0xff]  ;;  %v2314_v53 = vld [vmem:[#allocation3 + $0xd9] sm:$0xff] }
 0x276   : > { %5211 = vrot.lane.b32.xlu0 %v7736_v60, %s5840_s28  ;;  %2252 = vst.msk [vmem:[#allocation3 + $0x109] sm:$0xff] %vm1663_vm2, %v2164_v16  ;;  %v2165_v33 = vmax.f32 %v2100_v23, 0.0  ;;  %v7835_v16 = vpack.i.bf16 %v2345_v38, %v2344_v39  ;;  %v7840_v50 = vld [vmem:[#allocation3 + $0xc8] sm:$0xff]  ;;  %v2349_v4 = vld [vmem:[#allocation3 + $0xfa] sm:$0xff]  ;;  %v2378_v28 = vld [vmem:[#allocation3 + $0xf0] sm:$0xff] }
 0x277   : > { %2255 = vst.msk [vmem:[#allocation3 + $0x129] sm:$0xff] %vm1663_vm2, %v2167_v42  ;;  %v7844_v42 = vld [vmem:[#allocation3 + $0xc0] sm:$0xff]  ;;  %v2376_v49 = vld [vmem:[#allocation3 + $0xd8] sm:$0xff]  ;;  %v2265_v38 = vld [vmem:[#allocation3 + $0x8] sm:$0xff] }
 0x278   : > { %2253 = vst.msk [vmem:[#allocation3 + $0x111] sm:$0xff] %vm1663_vm2, %v2165_v33  ;;  %v5365_v23 = vpack.i.bf16 %v7840_v50, %v7844_v42  ;;  %v2372_v33 = vld [vmem:[#allocation3 + $0xa8] sm:$0xff]  ;;  %v2264_v39 = vld [vmem:[#allocation3] sm:$0xff] }
 0x279   : > { %5206 = vrot.lane.b32.xlu1 %v5205_v40, %s5838_s11  ;;  %v2315_v47 = vld [vmem:[#allocation3 + $0xe1] sm:$0xff] }
 0x27a   : > { %5216 = vrot.lane.b32.xlu0 %v7747_v32, %s5844_s6  ;;  %v4377_v63 = vpop.f32.mrb[24].mxu0  ;;  %v7894_v55 = vpack.i.bf16 %v2315_v47, %v2314_v53 }
 0x27b   : > { %v2170_v1 = vmax.f32 %v4377_v63, 0.0  ;;  %v2113_v37 = vpop.f32.mrb[25].mxu0  ;;  %v2500_v63 = vld [vmem:[#allocation3 + $0xb1] sm:$0xff] }
 0x27c   : > { %v2168_v21 = vmax.f32 %v2113_v37, 0.0  ;;  %v4378_v13 = vpop.f32.mrb[26].mxu0  ;;  %v2320_v58 = vld [vmem:[#allocation3 + $0x121] sm:$0xff] }
 0x27d   : > { %2258 = vst.msk [vmem:[#allocation3 + $0x151] sm:$0xff] %vm1663_vm2, %v2170_v1  ;;  %v2171_v2 = vmax.f32 %v4378_v13, 0.0  ;;  %5221 = vrot.lane.b32.xlu1 %v5205_v40, %s5841_s29  ;;  %v2116_v10 = vpop.f32.mrb[27].mxu0  ;;  %v5400_v40 = vpack.i.bf16 %v2373_v27, %v2372_v33  ;;  %v2499_v1 = vld [vmem:[#allocation3 + $0xa9] sm:$0xff]  ;;  %v7859_v13 = vpop.permute.xlu0 %5126  ;;  %v5123_v27 = vunpack.i.l.bf16 %v7853_v59 }
 0x27e   : > { %5246 = vrot.lane.b32.xlu0 %v5245_v12, %s5838_s11  ;;  %2256 = vst.msk [vmem:[#allocation3 + $0x139] sm:$0xff] %vm1663_vm2, %v2168_v21  ;;  %v2169_v52 = vmax.f32 %v2116_v10, 0.0  ;;  %v5410_v37 = vpack.i.bf16 %v2500_v63, %v2499_v1  ;;  %v2532_v21 = vld [vmem:[#allocation3 + $0xb2] sm:$0xff] }
 0x27f   : > { %2259 = vst.msk [vmem:[#allocation3 + $0x159] sm:$0xff] %vm1663_vm2, %v2171_v2  ;;  %v2317_v10 = vld [vmem:[#allocation3 + $0xf9] sm:$0xff] }
 0x280   : > { %2257 = vst.msk [vmem:[#allocation3 + $0x141] sm:$0xff] %vm1663_vm2, %v2169_v52  ;;  %v7867_v62 = vpack.i.bf16 %v2317_v10, %v2316_v22  ;;  %v2380_v10 = vld [vmem:[#allocation3 + $0x108] sm:$0xff] }
 0x281   : > { %5226 = vrot.lane.b32.xlu1 %v7736_v60, %s5842_s30  ;;  %v7817_v60 = vld [vmem:[#allocation3 + $0x80] sm:$0xff] }
 0x282   : > { %5251 = vrot.lane.b32.xlu0 %v5245_v12, %s5841_s29  ;;  %v4381_v46 = vpop.f32.mrb[28].mxu0  ;;  %v5325_v7 = vpack.i.bf16 %v7817_v60, %v7821_v26  ;;  %v2531_v12 = vld [vmem:[#allocation3 + $0xaa] sm:$0xff] }
 0x283   : > { %v2174_v18 = vmax.f32 %v4381_v46, 0.0  ;;  %v2129_v20 = vpop.f32.mrb[29].mxu0  ;;  %v5415_v2 = vpack.i.bf16 %v2532_v21, %v2531_v12  ;;  %v2348_v46 = vld [vmem:[#allocation3 + $0xf2] sm:$0xff]  ;;  %v2350_v12 = vld [vmem:[#allocation3 + $0x10a] sm:$0xff] }
 0x284   : > { %v2172_v51 = vmax.f32 %v2129_v20, 0.0  ;;  %v4382_v3 = vpop.f32.mrb[30].mxu0  ;;  %v2351_v21 = vld [vmem:[#allocation3 + $0x112] sm:$0xff] }
 0x285   : > { %2262 = vst.msk [vmem:[#allocation3 + $0x181] sm:$0xff] %vm1663_vm2, %v2174_v18  ;;  %v2175_v14 = vmax.f32 %v4382_v3, 0.0  ;;  %5231 = vrot.lane.b32.xlu1 %v7747_v32, %s5843_s5  ;;  %v2132_v9 = vpop.f32.mrb[31].mxu0  ;;  %v2313_v32 = vld [vmem:[#allocation3 + $0xc9] sm:$0xff]  ;;  %v2377_v3 = vld [vmem:[#allocation3 + $0xe0] sm:$0xff] }
 0x286   : > { %5256 = vrot.lane.b32.xlu0 %v5255_v44, %s5842_s30  ;;  %2260 = vst.msk [vmem:[#allocation3 + $0x169] sm:$0xff] %vm1663_vm2, %v2172_v51  ;;  %v2173_v54 = vmax.f32 %v2132_v9, 0.0  ;;  %v5355_v15 = vpack.i.bf16 %v2313_v32, %v2312_v43  ;;  %v2379_v51 = vld [vmem:[#allocation3 + $0xf8] sm:$0xff]  ;;  %v2353_v32 = vld [vmem:[#allocation3 + $0x12a] sm:$0xff] }
 0x287   : > { %2263 = vst.msk [vmem:[#allocation3 + $0x189] sm:$0xff] %vm1663_vm2, %v2175_v14  ;;  %v2319_v43 = vld [vmem:[#allocation3 + $0x111] sm:$0xff]  ;;  %v2325_v47 = vld [vmem:[#allocation3 + $0x159] sm:$0xff] }
 0x288   : > { %2261 = vst.msk [vmem:[#allocation3 + $0x171] sm:$0xff] %vm1663_vm2, %v2173_v54  ;;  %v7885_v54 = vpack.i.bf16 %v2379_v51, %v2378_v28  ;;  %v7931_v28 = vpack.i.bf16 %v2351_v21, %v2350_v12 }
 0x289   : > { %5236 = vrot.lane.b32.xlu1 %v5255_v44, %s5834_s7 }
 0x28a   : > { %5261 = vrot.lane.b32.xlu0 %v5260_v25, %s5843_s5 }
 0x28d   : > { %5241 = vrot.lane.b32.xlu1 %v5260_v25, %s5836_s9 }
 0x28e   : > { %5276 = vrot.lane.b32.xlu0 %v5275_v56, %s5834_s7 }
 0x291   : > { %5266 = vrot.lane.b32.xlu1 %v5255_v44, %s5840_s28  ;;  %v7876_v44 = vpack.i.bf16 %v2349_v4, %v2348_v46  ;;  %v3577_v46 = vsel %vm1663_vm2, %v2264_v39, %v5123_v27 }
 0x292   : > { %5281 = vrot.lane.b32.xlu0 %v5280_v11, %s5836_s9 }
 0x295   : > { %5271 = vrot.lane.b32.xlu1 %v5260_v25, %s5844_s6  ;;  %v5455_v25 = vpack.i.bf16 %v2377_v3, %v2376_v49 }
 0x296   : > { %5291 = vrot.lane.b32.xlu0 %v5275_v56, %s5840_s28 }
 0x299   : > { %5286 = vrot.lane.b32.xlu1 %v5285_v24, %s5838_s11 }
 0x29a   : > { %5296 = vrot.lane.b32.xlu0 %v5280_v11, %s5844_s6 }
 0x29d   : > { %5301 = vrot.lane.b32.xlu1 %v5285_v24, %s5841_s29  ;;  %v2347_v24 = vld [vmem:[#allocation3 + $0xe2] sm:$0xff] }
 0x29e   : > { %5326 = vrot.lane.b32.xlu0 %v5325_v7, %s5838_s11 }
 0x2a1   : > { %5306 = vrot.lane.b32.xlu1 %v5275_v56, %s5842_s30 }
 0x2a2   : > { %5331 = vrot.lane.b32.xlu0 %v5325_v7, %s5841_s29  ;;  %v2321_v7 = vld [vmem:[#allocation3 + $0x129] sm:$0xff] }
 0x2a3   : > { %v7903_v31 = vpack.i.bf16 %v2321_v7, %v2320_v58  ;;  %v2324_v7 = vld [vmem:[#allocation3 + $0x151] sm:$0xff] }
 0x2a5   : > { %5311 = vrot.lane.b32.xlu1 %v5280_v11, %s5843_s5  ;;  %v2346_v11 = vld [vmem:[#allocation3 + $0xda] sm:$0xff] }
 0x2a6   : > { %5336 = vrot.lane.b32.xlu0 %v5335_v19, %s5842_s30  ;;  %v7901_v30 = vpack.i.bf16 %v2347_v24, %v2346_v11 }
 0x2a9   : > { %5316 = vrot.lane.b32.xlu1 %v5335_v19, %s5834_s7 }
 0x2aa   : > { %5341 = vrot.lane.b32.xlu0 %v5340_v6, %s5843_s5 }
 0x2ad   : > { %5321 = vrot.lane.b32.xlu1 %v5340_v6, %s5836_s9 }
 0x2ae   : > { %5356 = vrot.lane.b32.xlu0 %v5355_v15, %s5834_s7 }
 0x2b1   : > { %5346 = vrot.lane.b32.xlu1 %v5335_v19, %s5840_s28 }
 0x2b2   : > { %5361 = vrot.lane.b32.xlu0 %v7835_v16, %s5836_s9 }
 0x2b5   : > { %5351 = vrot.lane.b32.xlu1 %v5340_v6, %s5844_s6  ;;  %v2352_v6 = vld [vmem:[#allocation3 + $0x122] sm:$0xff] }
 0x2b6   : > { %5371 = vrot.lane.b32.xlu0 %v5355_v15, %s5840_s28  ;;  %v7915_v63 = vpack.i.bf16 %v2353_v32, %v2352_v6  ;;  %v7941_v32 = vpack.i.bf16 %v2325_v47, %v2324_v7 }
 0x2b9   : > { %5366 = vrot.lane.b32.xlu1 %v5365_v23, %s5838_s11 }
 0x2ba   : > { %5376 = vrot.lane.b32.xlu0 %v7835_v16, %s5844_s6 }
 0x2bd   : > { %5381 = vrot.lane.b32.xlu1 %v5365_v23, %s5841_s29  ;;  %v5124_v23 = vunpack.i.h.bf16 %v7853_v59  ;;  %v5128_v59 = vunpack.i.l.bf16 %v7859_v13 }
 0x2be   : > { %5401 = vrot.lane.b32.xlu0 %v5400_v40, %s5838_s11 }
 0x2bf   : > { %v3578_v22 = vsel %vm1663_vm2, %v2265_v38, %v5124_v23 }
 0x2c1   : > { %5386 = vrot.lane.b32.xlu1 %v5355_v15, %s5842_s30  ;;  %v2318_v15 = vld [vmem:[#allocation3 + $0x109] sm:$0xff] }
 0x2c2   : > { %5406 = vrot.lane.b32.xlu0 %v5400_v40, %s5841_s29  ;;  %v7917_v1 = vpack.i.bf16 %v2319_v43, %v2318_v15  ;;  %v2357_v43 = vld [vmem:[#allocation3 + $0x15a] sm:$0xff] }
 0x2c5   : > { %5391 = vrot.lane.b32.xlu1 %v5410_v37, %s5834_s7 }
 0x2c6   : > { %5411 = vrot.lane.b32.xlu0 %v5410_v37, %s5842_s30 }
 0x2c9   : > { %5396 = vrot.lane.b32.xlu1 %v5415_v2, %s5836_s9 }
 0x2ca   : > { %5416 = vrot.lane.b32.xlu0 %v5415_v2, %s5843_s5 }
 0x2cb   : > { %v7863_v52 = vpop.permute.xlu1 %5141 }
 0x2cc   : > { %v7865_v45 = vpop.permute.xlu0 %5131 }
 0x2cd   : > { %5421 = vrot.lane.b32.xlu1 %v5410_v37, %s5840_s28  ;;  %v2381_v37 = vld [vmem:[#allocation3 + $0x110] sm:$0xff] }
 0x2ce   : > { %5431 = vrot.lane.b32.xlu0 %v7867_v62, %s5834_s7  ;;  %v7929_v3 = vpack.i.bf16 %v2381_v37, %v2380_v10 }
 0x2cf   : > { %v7872_v18 = vpop.permute.xlu1 %5156 }
 0x2d0   : > { %v7874_v20 = vpop.permute.xlu0 %5136  ;;  %v5159_v27 = vunpack.i.h.bf16 %v7872_v18  ;;  %v5158_v37 = vunpack.i.l.bf16 %v7872_v18 }
 0x2d1   : > { %5426 = vrot.lane.b32.xlu1 %v5415_v2, %s5844_s6  ;;  %v5129_v2 = vunpack.i.h.bf16 %v7859_v13  ;;  %v3609_v13 = vsel %vm1729_vm5, %v3577_v46, %v5128_v59 }
 0x2d2   : > { %5436 = vrot.lane.b32.xlu0 %v7876_v44, %s5836_s9 }
 0x2d3   : > { %v7881_v14 = vpop.permute.xlu1 %5161  ;;  %v3610_v24 = vsel %vm1729_vm5, %v3578_v22, %v5129_v2 }
 0x2d4   : > { %v7883_v9 = vpop.permute.xlu0 %5146  ;;  %v5164_v22 = vunpack.i.h.bf16 %v7881_v14  ;;  %v5163_v18 = vunpack.i.l.bf16 %v7881_v14 }
 0x2d5   : > { %5441 = vrot.lane.b32.xlu1 %v7885_v54, %s5838_s11 }
 0x2d6   : > { %5456 = vrot.lane.b32.xlu0 %v5455_v25, %s5838_s11 }
 0x2d7   : > { %v7890_v56 = vpop.permute.xlu1 %5166 }
 0x2d8   : > { %v7892_v41 = vpop.permute.xlu0 %5151  ;;  %v5168_v47 = vunpack.i.l.bf16 %v7890_v56 }
 0x2d9   : > { %5446 = vrot.lane.b32.xlu1 %v7894_v55, %s5834_s7 }
 0x2da   : > { %5461 = vrot.lane.b32.xlu0 %v5455_v25, %s5841_s29 }
 0x2db   : > { %v7899_v19 = vpop.permute.xlu1 %5171 }
 0x2dc   : > { %v5182_v34 = vpop.permute.xlu0 %5181 }
 0x2dd   : > { %5451 = vrot.lane.b32.xlu1 %v7901_v30, %s5836_s9  ;;  %v5184_v49 = vunpack.i.h.bf16 %v5182_v34  ;;  %v5183_v25 = vunpack.i.l.bf16 %v5182_v34  ;;  %v2356_v34 = vld [vmem:[#allocation3 + $0x152] sm:$0xff] }
 0x2de   : > { %5466 = vrot.lane.b32.xlu0 %v7903_v31, %s5834_s7  ;;  %v7955_v10 = vpack.i.bf16 %v2357_v43, %v2356_v34 }
 0x2df   : > { %v7911_v33 = vpop.permute.xlu1 %5176  ;;  %v3642_v15 = vsel %vm1795_vm7, %v3610_v24, %v5184_v49  ;;  %v3641_v39 = vsel %vm1795_vm7, %v3609_v13, %v5183_v25  ;;  %v5169_v25 = vunpack.i.h.bf16 %v7890_v56  ;;  %v2323_v24 = vld [vmem:[#allocation3 + $0x141] sm:$0xff] }
 0x2e0   : > { %v7913_v40 = vpop.permute.xlu0 %5196  ;;  %v5179_v7 = vunpack.i.h.bf16 %v7911_v33  ;;  %v5178_v56 = vunpack.i.l.bf16 %v7911_v33  ;;  %v2354_v33 = vld [vmem:[#allocation3 + $0x13a] sm:$0xff] }
 0x2e1   : > { %5476 = vrot.lane.b32.xlu1 %v7917_v1, %s5834_s7 }
 0x2e2   : > { %5471 = vrot.lane.b32.xlu0 %v7915_v63, %s5836_s9 }
 0x2e3   : > { %v5187_v4 = vpop.permute.xlu1 %5186 }
 0x2e4   : > { %v7927_v51 = vpop.permute.xlu0 %5201  ;;  %v5189_v53 = vunpack.i.h.bf16 %v5187_v4  ;;  %v5188_v11 = vunpack.i.l.bf16 %v5187_v4 }
 0x2e5   : > { %5481 = vrot.lane.b32.xlu1 %v7931_v28, %s5836_s9 }
 0x2e6   : > { %5486 = vrot.lane.b32.xlu0 %v7929_v3, %s5838_s11  ;;  %v3674_v12 = vsel %vm1861_vm9, %v3642_v15, %v5189_v53  ;;  %v3673_v21 = vsel %vm1861_vm9, %v3641_v39, %v5188_v11  ;;  %v5174_v53 = vunpack.i.h.bf16 %v7899_v19  ;;  %v5173_v11 = vunpack.i.l.bf16 %v7899_v19  ;;  %v2322_v39 = vld [vmem:[#allocation3 + $0x139] sm:$0xff] }
 0x2e7   : > { %v5192_v58 = vpop.permute.xlu1 %5191 }
 0x2e8   : > { %v7939_v6 = vpop.permute.xlu0 %5211  ;;  %v5194_v38 = vunpack.i.h.bf16 %v5192_v58  ;;  %v5193_v23 = vunpack.i.l.bf16 %v5192_v58 }
 0x2e9   : > { %5506 = vrot.lane.b32.xlu1 %v7835_v16, %s5843_s5 }
 0x2ea   : > { %5491 = vrot.lane.b32.xlu0 %v7941_v32, %s5834_s7  ;;  %v3706_v2 = vsel %vm3705_vm13, %v3673_v21, %v5193_v23  ;;  %v3707_v59 = vsel %vm3705_vm13, %v3674_v12, %v5194_v38  ;;  %v7983_v38 = vpack.i.bf16 %v2323_v24, %v2322_v39  ;;  %v3579_v23 = vsel %vm1663_vm2, %v7728_v29, %v5173_v11 }
 0x2eb   : > { %v7959_v46 = vpop.permute.xlu1 %5206  ;;  %v3739_v16 = vsel %vm3738_vm14, %v3706_v2, %v5158_v37  ;;  %v3740_v49 = vsel %vm3738_vm14, %v3707_v59, %v5159_v27  ;;  %v3580_v27 = vsel %vm1663_vm2, %v7722_v61, %v5174_v53  ;;  %v2355_v37 = vld [vmem:[#allocation3 + $0x142] sm:$0xff]  ;;  %v3611_v12 = vsel %vm1729_vm5, %v3579_v23, %v5178_v56  ;;  %v2358_v56 = vld [vmem:[#allocation3 + $0x16a] sm:$0xff] }
 0x2ec   : > { %v7961_v4 = vpop.permute.xlu0 %5216  ;;  %v3772_v14 = vsel %vm3771_vm15, %v3739_v16, %v5163_v18  ;;  %v3773_v13 = vsel %vm3771_vm15, %v3740_v49, %v5164_v22  ;;  %v3612_v21 = vsel %vm1729_vm5, %v3580_v27, %v5179_v7  ;;  %v5144_v2 = vunpack.i.h.bf16 %v7863_v52  ;;  %v2327_v18 = vld [vmem:[#allocation3 + $0x171] sm:$0xff] }
 0x2ed   : > { %5516 = vrot.lane.b32.xlu1 %v7894_v55, %s5840_s28  ;;  %v3805_v58 = vsel %vm3804_vm0, %v3772_v14, %v5168_v47  ;;  %v3806_v34 = vsel %vm3804_vm0, %v3773_v13, %v5169_v25  ;;  %v5143_v29 = vunpack.i.l.bf16 %v7863_v52  ;;  %v8000_v22 = vpack.i.bf16 %v2355_v37, %v2354_v33  ;;  %v2326_v52 = vld [vmem:[#allocation3 + $0x169] sm:$0xff] }
 0x2ee   : > { %5496 = vrot.lane.b32.xlu0 %v7955_v10, %s5836_s9  ;;  %v3837_v15 = vpack.c.bf16 %v3806_v34, %v3805_v58  ;;  %v3644_v16 = vsel %vm1795_vm7, %v3612_v21, %v5144_v2  ;;  %v5149_v49 = vunpack.i.h.bf16 %v7883_v9  ;;  %v5148_v25 = vunpack.i.l.bf16 %v7883_v9  ;;  %v2359_v58 = vld [vmem:[#allocation3 + $0x172] sm:$0xff] }
 0x2ef   : > { %v7979_v19 = vpop.permute.xlu1 %5221  ;;  %v8012_v11 = vpack.i.bf16 %v2327_v18, %v2326_v52  ;;  %v5154_v34 = vunpack.i.h.bf16 %v7892_v41  ;;  %v5153_v9 = vunpack.i.l.bf16 %v7892_v41 }
 0x2f0   : > { %v7981_v43 = vpop.permute.xlu0 %5246  ;;  %4393 = vmatprep.mubr.msk.bf16.mxu1 %vm3896_vm1, %v3837_v15  ;;  %v3676_v13 = vsel %vm1861_vm9, %v3644_v16, %v5149_v49 }
 0x2f1   : > { %5526 = vrot.lane.b32.xlu1 %v7983_v38, %s5834_s7  ;;  %v3709_v27 = vsel %vm3705_vm13, %v3676_v13, %v5154_v34  ;;  %v5134_v13 = vunpack.i.h.bf16 %v7865_v45 }
 0x2f2   : > { %5501 = vrot.lane.b32.xlu0 %v7894_v55, %s5842_s30  ;;  %v3643_v55 = vsel %vm1795_vm7, %v3611_v12, %v5143_v29  ;;  %v8026_v12 = vpack.i.bf16 %v2359_v58, %v2358_v56  ;;  %v5138_v56 = vunpack.i.l.bf16 %v7874_v20 }
 0x2f3   : > { %v7998_v59 = vpop.permute.xlu1 %5226  ;;  %v3675_v14 = vsel %vm1861_vm9, %v3643_v55, %v5148_v25 }
 0x2f4   : > { %v5252_v61 = vpop.permute.xlu0 %5251  ;;  %v3708_v23 = vsel %vm3705_vm13, %v3675_v14, %v5153_v9  ;;  %v5249_v9 = vunpack.i.h.bf16 %v7981_v43 }
 0x2f5   : > { %5531 = vrot.lane.b32.xlu1 %v8000_v22, %s5836_s9  ;;  %v5254_v24 = vunpack.i.h.bf16 %v5252_v61  ;;  %v5253_v7 = vunpack.i.l.bf16 %v5252_v61 }
 0x2f6   : > { %5511 = vrot.lane.b32.xlu0 %v7901_v30, %s5843_s5 }
 0x2f7   : > { %v8010_v47 = vpop.permute.xlu1 %5231  ;;  %v3742_v21 = vsel %vm3738_vm14, %v3709_v27, %v5254_v24  ;;  %v3741_v41 = vsel %vm3738_vm14, %v3708_v23, %v5253_v7  ;;  %v5133_v24 = vunpack.i.l.bf16 %v7865_v45  ;;  %v5139_v7 = vunpack.i.h.bf16 %v7874_v20 }
 0x2f8   : > { %v5257_v53 = vpop.permute.xlu0 %5256 }
 0x2f9   : > { %v5259_v15 = vunpack.i.h.bf16 %v5257_v53  ;;  %v5258_v39 = vunpack.i.l.bf16 %v5257_v53  ;;  %5536 = vrot.lane.b32.xlu1 %v8012_v11, %s5834_s7  ;;  %v3581_v20 = vsel %vm1663_vm2, %v7703_v0, %v5133_v24 }
 0x2fa   : > { %5521 = vrot.lane.b32.xlu0 %v7867_v62, %s5840_s28 }
 0x2fb   : > { %v8024_v37 = vpop.permute.xlu1 %5236  ;;  %v3774_v61 = vsel %vm3771_vm15, %v3741_v41, %v5258_v39  ;;  %v3775_v18 = vsel %vm3771_vm15, %v3742_v21, %v5259_v15  ;;  %v5248_v15 = vunpack.i.l.bf16 %v7981_v43 }
 0x2fc   : > { %v5262_v33 = vpop.permute.xlu0 %5261 }
 0x2fd   : > { %v5264_v2 = vunpack.i.h.bf16 %v5262_v33  ;;  %v5263_v29 = vunpack.i.l.bf16 %v5262_v33  ;;  %5541 = vrot.lane.b32.xlu1 %v8026_v12, %s5836_s9  ;;  %v3582_v33 = vsel %vm1663_vm2, %v7706_v17, %v5134_v13  ;;  %s188_s9 = sand.u32 1, %s5822_s16  }
 0x2fe   : > { %5551 = vrot.lane.b32.xlu0 %v7876_v44, %s5844_s6 }
 0x2ff   : > { %v3807_v55 = vsel %vm3804_vm0, %v3774_v61, %v5263_v29  ;;  %v3808_v16 = vsel %vm3804_vm0, %v3775_v18, %v5264_v2  ;;  %v8038_v49 = vpop.permute.xlu1 %5241  ;;  %v5224_v18 = vunpack.i.h.bf16 %v7979_v19 }
 0x300   : > { %v5277_v25 = vpop.permute.xlu0 %5276  ;;  %v3838_v52 = vpack.c.bf16 %v3808_v16, %v3807_v55  ;;  %v5223_v55 = vunpack.i.l.bf16 %v7979_v19 }
 0x301   : > { %v5279_v53 = vunpack.i.h.bf16 %v5277_v25  ;;  %v5278_v14 = vunpack.i.l.bf16 %v5277_v25  ;;  %5546 = vrot.lane.b32.xlu1 %v7901_v30, %s5844_s6 }
 0x302   : > { %4394 = vmatmul.mubr.msk.bf16.vlgmr.msra.gmra.mrb[0].mxu1 %vm3896_vm1, %v3838_v52  ;;  %5561 = vrot.lane.b32.xlu0 %v7929_v3, %s5841_s29 }
 0x303   : > { %v5267_v58 = vpop.permute.xlu1 %5266  ;;  %v3589_v3 = vsel %vm1663_vm2, %v7813_v36, %v5278_v14  ;;  %v3590_v45 = vsel %vm1663_vm2, %v7809_v5, %v5279_v53  ;;  %v3613_v5 = vsel %vm1729_vm5, %v3581_v20, %v5138_v56  ;;  %v3614_v36 = vsel %vm1729_vm5, %v3582_v33, %v5139_v7 }
 0x304   : > { %v5282_v34 = vpop.permute.xlu0 %5281  ;;  %v5269_v27 = vunpack.i.h.bf16 %v5267_v58  ;;  %v5268_v30 = vunpack.i.l.bf16 %v5267_v58  ;;  %v3646_v0 = vsel %vm1795_vm7, %v3614_v36, %v5249_v9  ;;  %v3645_v17 = vsel %vm1795_vm7, %v3613_v5, %v5248_v15  ;;  %v8101_v15 = vld [vmem:[#allocation3 + $0x128] sm:$0xff] }
 0x305   : > { %v5284_v39 = vunpack.i.h.bf16 %v5282_v34  ;;  %v5283_v23 = vunpack.i.l.bf16 %v5282_v34  ;;  %5556 = vrot.lane.b32.xlu1 %v7885_v54, %s5841_s29  ;;  %v5229_v53 = vunpack.i.h.bf16 %v7998_v59  ;;  %v5228_v14 = vunpack.i.l.bf16 %v7998_v59 }
 0x306   : > { %5571 = vrot.lane.b32.xlu0 %v7917_v1, %s5842_s30  ;;  %v3678_v16 = vsel %vm1861_vm9, %v3646_v0, %v5269_v27  ;;  %v3677_v54 = vsel %vm1861_vm9, %v3645_v17, %v5268_v30  ;;  %v5234_v56 = vunpack.i.h.bf16 %v8010_v47  ;;  %v5233_v58 = vunpack.i.l.bf16 %v8010_v47  ;;  %v8113_v27 = vld [vmem:[#allocation3 + $0x120] sm:$0xff] }
 0x307   : > { %v8062_v43 = vsel %vm1729_vm5, %v3589_v3, %v5283_v23  ;;  %v8065_v21 = vsel %vm1729_vm5, %v3590_v45, %v5284_v39  ;;  %v5272_v41 = vpop.permute.xlu1 %5271  ;;  %v5239_v34 = vunpack.i.h.bf16 %v8024_v37  ;;  %v5244_v39 = vunpack.i.h.bf16 %v8038_v49 }
 0x308   : > { %v8071_v2 = vpop.permute.xlu0 %5291  ;;  %v5274_v29 = vunpack.i.h.bf16 %v5272_v41  ;;  %v5273_v61 = vunpack.i.l.bf16 %v5272_v41  ;;  %v5243_v23 = vunpack.i.l.bf16 %v8038_v49  ;;  %v5585_v30 = vpack.i.bf16 %v8101_v15, %v8113_v27 }
 0x309   : > { %5566 = vrot.lane.b32.xlu1 %v7867_v62, %s5842_s30  ;;  %v5238_v62 = vunpack.i.l.bf16 %v8024_v37  ;;  %v5209_v5 = vunpack.i.h.bf16 %v7959_v46  ;;  %v5208_v36 = vunpack.i.l.bf16 %v7959_v46  ;;  %v5213_v17 = vunpack.i.l.bf16 %v7939_v6 }
 0x30a   : > { %5581 = vrot.lane.b32.xlu0 %v7931_v28, %s5843_s5  ;;  %v3710_v25 = vsel %vm3705_vm13, %v3677_v54, %v5273_v61  ;;  %v3711_v52 = vsel %vm3705_vm13, %v3678_v16, %v5274_v29  ;;  %v8142_v54 = vld [vmem:[#allocation3 + $0x140] sm:$0xff] }
 0x30b   : > { %v3743_v19 = vsel %vm3738_vm14, %v3710_v25, %v5223_v55  ;;  %v3744_v13 = vsel %vm3738_vm14, %v3711_v52, %v5224_v18  ;;  %v8089_v24 = vpop.permute.xlu1 %5286  ;;  %v3583_v49 = vsel %vm1663_vm2, %v7780_v8, %v5238_v62  ;;  %v5219_v25 = vunpack.i.h.bf16 %v7961_v4 }
 0x30c   : > { %v8091_v7 = vpop.permute.xlu0 %5296  ;;  %v3776_v59 = vsel %vm3771_vm15, %v3743_v19, %v5228_v14  ;;  %v3777_v9 = vsel %vm3771_vm15, %v3744_v13, %v5229_v53  ;;  %v3615_v20 = vsel %vm1729_vm5, %v3583_v49, %v5243_v23  ;;  %v5218_v52 = vunpack.i.l.bf16 %v7961_v4  ;;  %v8150_v14 = vld [vmem:[#allocation3 + $0x138] sm:$0xff] }
 0x30d   : > { %5576 = vrot.lane.b32.xlu1 %v7876_v44, %s5843_s5  ;;  %v3809_v47 = vsel %vm3804_vm0, %v3776_v59, %v5233_v58  ;;  %v3810_v37 = vsel %vm3804_vm0, %v3777_v9, %v5234_v56  ;;  %v3584_v44 = vsel %vm1663_vm2, %v7772_v48, %v5239_v34  ;;  %v3647_v48 = vsel %vm1795_vm7, %v3615_v20, %v5208_v36 }
 0x30e   : > { %5591 = vrot.lane.b32.xlu0 %v7917_v1, %s5840_s28  ;;  %v3839_v45 = vpack.c.bf16 %v3810_v37, %v3809_v47  ;;  %v3616_v33 = vsel %vm1729_vm5, %v3584_v44, %v5244_v39  ;;  %v3679_v46 = vsel %vm1861_vm9, %v3647_v48, %v5213_v17  ;;  %v5615_v4 = vpack.i.bf16 %v8142_v54, %v8150_v14 }
 0x30f   : > { %v8109_v3 = vpop.permute.xlu1 %5301  ;;  %v3648_v0 = vsel %vm1795_vm7, %v3616_v33, %v5209_v5  ;;  %v3712_v19 = vsel %vm3705_vm13, %v3679_v46, %v5218_v52  ;;  %v5199_v20 = vunpack.i.h.bf16 %v7913_v40  ;;  %v5204_v33 = vunpack.i.h.bf16 %v7927_v51 }
 0x310   : > { %v8111_v1 = vpop.permute.xlu0 %5326  ;;  %4397 = vmatprep.mubr.msk.bf16.mxu1 %vm3896_vm1, %v3839_v45  ;;  %v5203_v5 = vunpack.i.l.bf16 %v7927_v51 }
 0x311   : > { %5586 = vrot.lane.b32.xlu1 %v5585_v30, %s5838_s11  ;;  %v5329_v48 = vunpack.i.h.bf16 %v8111_v1 }
 0x312   : > { %5601 = vrot.lane.b32.xlu0 %v7931_v28, %s5844_s6  ;;  %v5214_v28 = vunpack.i.h.bf16 %v7939_v6 }
 0x313   : > { %v8129_v41 = vpop.permute.xlu1 %5306 }
 0x314   : > { %v5332_v8 = vpop.permute.xlu0 %5331  ;;  %v3680_v18 = vsel %vm1861_vm9, %v3648_v0, %v5214_v28  ;;  %v5328_v0 = vunpack.i.l.bf16 %v8111_v1  ;;  %v3586_v1 = vsel %vm1663_vm2, %v7756_v57, %v5199_v20 }
 0x315   : > { %5596 = vrot.lane.b32.xlu1 %v7903_v31, %s5840_s28  ;;  %v5334_v55 = vunpack.i.h.bf16 %v5332_v8  ;;  %v5333_v16 = vunpack.i.l.bf16 %v5332_v8  ;;  %v3713_v13 = vsel %vm3705_vm13, %v3680_v18, %v5219_v25 }
 0x316   : > { %5611 = vrot.lane.b32.xlu0 %v5585_v30, %s5841_s29 }
 0x317   : > { %v8138_v29 = vpop.permute.xlu1 %5311  ;;  %v3746_v34 = vsel %vm3738_vm14, %v3713_v13, %v5334_v55  ;;  %v3745_v62 = vsel %vm3738_vm14, %v3712_v19, %v5333_v16 }
 0x318   : > { %v5337_v61 = vpop.permute.xlu0 %5336 }
 0x319   : > { %v5339_v53 = vunpack.i.h.bf16 %v5337_v61  ;;  %v5338_v6 = vunpack.i.l.bf16 %v5337_v61  ;;  %5606 = vrot.lane.b32.xlu1 %v7915_v63, %s5844_s6  ;;  %v8179_v61 = vld [vmem:[#allocation3 + $0x158] sm:$0xff] }
 0x31a   : > { %5621 = vrot.lane.b32.xlu0 %v7903_v31, %s5842_s30 }
 0x31b   : > { %v8154_v58 = vpop.permute.xlu1 %5316  ;;  %v3778_v9 = vsel %vm3771_vm15, %v3745_v62, %v5338_v6  ;;  %v3779_v39 = vsel %vm3771_vm15, %v3746_v34, %v5339_v53 }
 0x31c   : > { %v5342_v56 = vpop.permute.xlu0 %5341 }
 0x31d   : > { %v5344_v31 = vunpack.i.h.bf16 %v5342_v56  ;;  %v5343_v59 = vunpack.i.l.bf16 %v5342_v56  ;;  %5616 = vrot.lane.b32.xlu1 %v5615_v4, %s5841_s29  ;;  %v5304_v56 = vunpack.i.h.bf16 %v8109_v3 }
 0x31e   : > { %5631 = vrot.lane.b32.xlu0 %v7915_v63, %s5843_s5  ;;  %v5198_v63 = vunpack.i.l.bf16 %v7913_v40 }
 0x31f   : > { %v3811_v23 = vsel %vm3804_vm0, %v3778_v9, %v5343_v59  ;;  %v3812_v47 = vsel %vm3804_vm0, %v3779_v39, %v5344_v31  ;;  %v8167_v45 = vpop.permute.xlu1 %5321  ;;  %v5309_v9 = vunpack.i.h.bf16 %v8129_v41  ;;  %v5308_v39 = vunpack.i.l.bf16 %v8129_v41 }
 0x320   : > { %v3840_v37 = vpack.c.bf16 %v3812_v47, %v3811_v23  ;;  %v5357_v30 = vpop.permute.xlu0 %5356  ;;  %v3585_v51 = vsel %vm1663_vm2, %v7766_v35, %v5198_v63  ;;  %v5324_v63 = vunpack.i.h.bf16 %v8167_v45 }
 0x321   : > { %v5359_v49 = vunpack.i.h.bf16 %v5357_v30  ;;  %v5358_v44 = vunpack.i.l.bf16 %v5357_v30  ;;  %5626 = vrot.lane.b32.xlu1 %v7983_v38, %s5842_s30  ;;  %v5313_v30 = vunpack.i.l.bf16 %v8138_v29 }
 0x322   : > { %4398 = vmatmul.mubr.msk.bf16.gmra.mrb[4].mxu1 %vm3896_vm1, %v3840_v37  ;;  %5641 = vrot.lane.b32.xlu0 %v5615_v4, %s5838_s11  ;;  %v5303_v4 = vunpack.i.l.bf16 %v8109_v3 }
 0x323   : > { %v5347_v36 = vpop.permute.xlu1 %5346  ;;  %v3593_v40 = vsel %vm1663_vm2, %v7844_v42, %v5358_v44  ;;  %v3594_v46 = vsel %vm1663_vm2, %v7840_v50, %v5359_v49  ;;  %v8199_v50 = vld [vmem:[#allocation3 + $0x150] sm:$0xff]  ;;  %v3617_v42 = vsel %vm1729_vm5, %v3585_v51, %v5203_v5  ;;  %v5319_v49 = vunpack.i.h.bf16 %v8154_v58 }
 0x324   : > { %v5362_v8 = vpop.permute.xlu0 %5361  ;;  %v5349_v18 = vunpack.i.h.bf16 %v5347_v36  ;;  %v5348_v55 = vunpack.i.l.bf16 %v5347_v36  ;;  %v5645_v57 = vpack.i.bf16 %v8179_v61, %v8199_v50  ;;  %v3649_v6 = vsel %vm1795_vm7, %v3617_v42, %v5328_v0 }
 0x325   : > { %v5364_v28 = vunpack.i.h.bf16 %v5362_v8  ;;  %v5363_v17 = vunpack.i.l.bf16 %v5362_v8  ;;  %5636 = vrot.lane.b32.xlu1 %v8000_v22, %s5843_s5  ;;  %v5318_v44 = vunpack.i.l.bf16 %v8154_v58  ;;  %v3588_v0 = vsel %vm1663_vm2, %v7817_v60, %v5319_v49 }
 0x326   : > { %5651 = vrot.lane.b32.xlu0 %v7983_v38, %s5840_s28  ;;  %v3618_v38 = vsel %vm1729_vm5, %v3586_v1, %v5204_v33  ;;  %v3681_v62 = vsel %vm1861_vm9, %v3649_v6, %v5348_v55  ;;  %v5323_v33 = vunpack.i.l.bf16 %v8167_v45  ;;  %v8250_v45 = vld [vmem:[#allocation3 + $0x170] sm:$0xff]  ;;  %v5294_v1 = vunpack.i.h.bf16 %v8071_v2 }
 0x327   : > { %v8192_v16 = vsel %vm1729_vm5, %v3593_v40, %v5363_v17  ;;  %v8195_v25 = vsel %vm1729_vm5, %v3594_v46, %v5364_v28  ;;  %v5352_v52 = vpop.permute.xlu1 %5351  ;;  %v3650_v53 = vsel %vm1795_vm7, %v3618_v38, %v5329_v48  ;;  %v3587_v48 = vsel %vm1663_vm2, %v7821_v26, %v5318_v44 }
 0x328   : > { %v8203_v35 = vpop.permute.xlu0 %5371  ;;  %v5354_v19 = vunpack.i.h.bf16 %v5352_v52  ;;  %v5353_v13 = vunpack.i.l.bf16 %v5352_v52  ;;  %v3682_v34 = vsel %vm1861_vm9, %v3650_v53, %v5349_v18  ;;  %v3619_v28 = vsel %vm1729_vm5, %v3587_v48, %v5323_v33  ;;  %v8260_v18 = vld [vmem:[#allocation3 + $0x168] sm:$0xff] }
 0x329   : > { %5646 = vrot.lane.b32.xlu1 %v5645_v57, %s5838_s11  ;;  %v3620_v17 = vsel %vm1729_vm5, %v3588_v0, %v5324_v63  ;;  %v5289_v40 = vunpack.i.h.bf16 %v8089_v24  ;;  %v5288_v26 = vunpack.i.l.bf16 %v8089_v24  ;;  %v5293_v42 = vunpack.i.l.bf16 %v8071_v2  ;;  %v2422_v48 = vld [vmem:[#allocation3 + $0x181] sm:$0xff]  ;;  %v2284_v0 = vld [vmem:[#allocation3 + $0xf0] sm:$0xff] }
 0x32a   : > { %5661 = vrot.lane.b32.xlu0 %v8000_v22, %s5844_s6  ;;  %v3714_v31 = vsel %vm3705_vm13, %v3681_v62, %v5353_v13  ;;  %v3715_v59 = vsel %vm3705_vm13, %v3682_v34, %v5354_v19  ;;  %v5314_v22 = vunpack.i.h.bf16 %v8138_v29  ;;  %v5299_v19 = vunpack.i.h.bf16 %v8091_v7 }
 0x32b   : > { %v3747_v23 = vsel %vm3738_vm14, %v3714_v31, %v5303_v4  ;;  %v3748_v3 = vsel %vm3738_vm14, %v3715_v59, %v5304_v56  ;;  %v8222_v47 = vpop.permute.xlu1 %5366  ;;  %v3651_v55 = vsel %vm1795_vm7, %v3619_v28, %v5288_v26  ;;  %v3652_v51 = vsel %vm1795_vm7, %v3620_v17, %v5289_v40  ;;  %v2285_v28 = vld [vmem:[#allocation3 + $0xf8] sm:$0xff] }
 0x32c   : > { %v8224_v37 = vpop.permute.xlu0 %5376  ;;  %v3780_v41 = vsel %vm3771_vm15, %v3747_v23, %v5308_v39  ;;  %v3781_v20 = vsel %vm3771_vm15, %v3748_v3, %v5309_v9  ;;  %v3683_v52 = vsel %vm1861_vm9, %v3651_v55, %v5293_v42  ;;  %v5298_v13 = vunpack.i.l.bf16 %v8091_v7  ;;  %v2391_v3 = vld [vmem:[#allocation3 + $0x188] sm:$0xff] }
 0x32d   : > { %5656 = vrot.lane.b32.xlu1 %v7941_v32, %s5840_s28  ;;  %v3813_v5 = vsel %vm3804_vm0, %v3780_v41, %v5313_v30  ;;  %v3814_v29 = vsel %vm3804_vm0, %v3781_v20, %v5314_v22  ;;  %v2390_v20 = vld [vmem:[#allocation3 + $0x180] sm:$0xff] }
 0x32e   : > { %5671 = vrot.lane.b32.xlu0 %v5645_v57, %s5841_s29  ;;  %v3841_v8 = vpack.c.bf16 %v3814_v29, %v3813_v5  ;;  %v3684_v57 = vsel %vm1861_vm9, %v3652_v51, %v5294_v1  ;;  %v3716_v2 = vsel %vm3705_vm13, %v3683_v52, %v5298_v13  ;;  %v5705_v63 = vpack.i.bf16 %v2391_v3, %v2390_v20  ;;  %v2454_v55 = vld [vmem:[#allocation3 + $0x182] sm:$0xff]  ;;  %v2455_v51 = vld [vmem:[#allocation3 + $0x18a] sm:$0xff]  ;;  %v2487_v52 = vld [vmem:[#allocation3 + $0x198] sm:$0xff] }
 0x32f   : > { %v8239_v36 = vpop.permute.xlu1 %5381  ;;  %v3717_v4 = vsel %vm3705_vm13, %v3684_v57, %v5299_v19  ;;  %v2488_v57 = vld [vmem:[#allocation3 + $0x1a0] sm:$0xff] }
 0x330   : > { %v8241_v58 = vpop.permute.xlu0 %5401  ;;  %4401 = vmatprep.mubr.msk.bf16.mxu1 %vm3896_vm1, %v3841_v8 }
 0x331   : > { %5666 = vrot.lane.b32.xlu1 %v7955_v10, %s5844_s6 }
 0x332   : > { %5681 = vrot.lane.b32.xlu0 %v7941_v32, %s5842_s30  ;;  %v5675_v32 = vpack.i.bf16 %v8250_v45, %v8260_v18 }
 0x333   : > { %v8258_v46 = vpop.permute.xlu1 %5386 }
 0x334   : > { %v5407_v60 = vpop.permute.xlu0 %5406 }
 0x335   : > { %5676 = vrot.lane.b32.xlu1 %v5675_v32, %s5841_s29  ;;  %v5409_v53 = vunpack.i.h.bf16 %v5407_v60  ;;  %v5408_v6 = vunpack.i.l.bf16 %v5407_v60 }
 0x336   : > { %5691 = vrot.lane.b32.xlu0 %v7955_v10, %s5843_s5 }
 0x337   : > { %v8271_v38 = vpop.permute.xlu1 %5391  ;;  %v3750_v31 = vsel %vm3738_vm14, %v3717_v4, %v5409_v53  ;;  %v3749_v59 = vsel %vm3738_vm14, %v3716_v2, %v5408_v6  ;;  %v5725_v53 = vpack.i.bf16 %v2455_v51, %v2454_v55  ;;  %v5735_v6 = vpack.i.bf16 %v2488_v57, %v2487_v52 }
 0x338   : > { %v5412_v24 = vpop.permute.xlu0 %5411  ;;  %v5389_v57 = vunpack.i.h.bf16 %v8258_v46 }
 0x339   : > { %v5414_v10 = vunpack.i.h.bf16 %v5412_v24  ;;  %v5413_v56 = vunpack.i.l.bf16 %v5412_v24  ;;  %5686 = vrot.lane.b32.xlu1 %v8012_v11, %s5842_s30 }
 0x33a   : > { %5701 = vrot.lane.b32.xlu0 %v5675_v32, %s5838_s11 }
 0x33b   : > { %v8282_v62 = vpop.permute.xlu1 %5396  ;;  %v3782_v39 = vsel %vm3771_vm15, %v3749_v59, %v5413_v56  ;;  %v3783_v23 = vsel %vm3771_vm15, %v3750_v31, %v5414_v10  ;;  %v2519_v10 = vld [vmem:[#allocation3 + $0x199] sm:$0xff]  ;;  %v2520_v56 = vld [vmem:[#allocation3 + $0x1a1] sm:$0xff] }
 0x33c   : > { %v5417_v34 = vpop.permute.xlu0 %5416  ;;  %v5745_v2 = vpack.i.bf16 %v2520_v56, %v2519_v10  ;;  %v2551_v31 = vld [vmem:[#allocation3 + $0x19a] sm:$0xff]  ;;  %v2552_v59 = vld [vmem:[#allocation3 + $0x1a2] sm:$0xff]  ;;  %v5398_v55 = vunpack.i.l.bf16 %v8282_v62  ;;  %v2279_v10 = vld [vmem:[#allocation3 + $0xb0] sm:$0xff] }
 0x33d   : > { %v5419_v9 = vunpack.i.h.bf16 %v5417_v34  ;;  %v5418_v7 = vunpack.i.l.bf16 %v5417_v34  ;;  %5696 = vrot.lane.b32.xlu1 %v8026_v12, %s5843_s5 }
 0x33e   : > { %5711 = vrot.lane.b32.xlu0 %v8012_v11, %s5840_s28  ;;  %v2423_v11 = vld [vmem:[#allocation3 + $0x189] sm:$0xff] }
 0x33f   : > { %v3815_v22 = vsel %vm3804_vm0, %v3782_v39, %v5418_v7  ;;  %v3816_v30 = vsel %vm3804_vm0, %v3783_v23, %v5419_v9  ;;  %v8294_v44 = vpop.permute.xlu1 %5421  ;;  %v5715_v26 = vpack.i.bf16 %v2423_v11, %v2422_v48  ;;  %v5404_v9 = vunpack.i.h.bf16 %v8241_v58 }
 0x340   : > { %v3842_v49 = vpack.c.bf16 %v3816_v30, %v3815_v22  ;;  %v5432_v41 = vpop.permute.xlu0 %5431  ;;  %v5403_v7 = vunpack.i.l.bf16 %v8241_v58  ;;  %v5424_v3 = vunpack.i.h.bf16 %v8294_v44  ;;  %v5423_v22 = vunpack.i.l.bf16 %v8294_v44 }
 0x341   : > { %v5434_v33 = vunpack.i.h.bf16 %v5432_v41  ;;  %v5433_v5 = vunpack.i.l.bf16 %v5432_v41  ;;  %5706 = vrot.lane.b32.xlu1 %v5705_v63, %s5838_s11  ;;  %v5755_v30 = vpack.i.bf16 %v2552_v59, %v2551_v31  ;;  %v3654_v11 = vsel %vm1795_vm7, %v8065_v21, %v5404_v9 }
 0x342   : > { %4402 = vmatmul.mubr.msk.bf16.gmra.mrb[8].mxu1 %vm3896_vm1, %v3842_v49  ;;  %5721 = vrot.lane.b32.xlu0 %v8026_v12, %s5844_s6  ;;  %v3653_v58 = vsel %vm1795_vm7, %v8062_v43, %v5403_v7  ;;  %v3686_v48 = vsel %vm1861_vm9, %v3654_v11, %v5424_v3 }
 0x343   : > { %v5427_v29 = vpop.permute.xlu1 %5426  ;;  %v3597_v60 = vsel %vm1663_vm2, %v2284_v0, %v5433_v5  ;;  %v3598_v32 = vsel %vm1663_vm2, %v2285_v28, %v5434_v33 }
 0x344   : > { %v5437_v8 = vpop.permute.xlu0 %5436  ;;  %v5429_v49 = vunpack.i.h.bf16 %v5427_v29  ;;  %v5428_v41 = vunpack.i.l.bf16 %v5427_v29  ;;  %v3685_v29 = vsel %vm1861_vm9, %v3653_v58, %v5423_v22  ;;  %v5369_v22 = vunpack.i.h.bf16 %v8222_v47 }
 0x345   : > { %v5439_v17 = vunpack.i.h.bf16 %v5437_v8  ;;  %v5438_v40 = vunpack.i.l.bf16 %v5437_v8  ;;  %5716 = vrot.lane.b32.xlu1 %v5715_v26, %s5840_s28 }
 0x346   : > { %5731 = vrot.lane.b32.xlu0 %v5705_v63, %s5841_s29  ;;  %v3718_v43 = vsel %vm3705_vm13, %v3685_v29, %v5428_v41  ;;  %v3719_v21 = vsel %vm3705_vm13, %v3686_v48, %v5429_v49  ;;  %v5373_v48 = vunpack.i.l.bf16 %v8203_v35 }
 0x347   : > { %v8304_v12 = vsel %vm1729_vm5, %v3597_v60, %v5438_v40  ;;  %v8307_v1 = vsel %vm1729_vm5, %v3598_v32, %v5439_v17  ;;  %v8310_v42 = vpop.permute.xlu1 %5441  ;;  %v5383_v40 = vunpack.i.l.bf16 %v8239_v36  ;;  %v5393_v60 = vunpack.i.l.bf16 %v8271_v38 }
 0x348   : > { %v8312_v24 = vpop.permute.xlu0 %5456  ;;  %v5399_v32 = vunpack.i.h.bf16 %v8282_v62 }
 0x349   : > { %5726 = vrot.lane.b32.xlu1 %v5725_v53, %s5844_s6  ;;  %v3751_v51 = vsel %vm3738_vm14, %v3718_v43, %v5383_v40 }
 0x34a   : > { %5741 = vrot.lane.b32.xlu0 %v5715_v26, %s5842_s30  ;;  %v5394_v26 = vunpack.i.h.bf16 %v8271_v38 }
 0x34b   : > { %v8318_v13 = vpop.permute.xlu1 %5446 }
 0x34c   : > { %v8316_v19 = vpop.permute.xlu0 %5461  ;;  %v3592_v38 = vsel %vm1663_vm2, %v2279_v10, %v5394_v26 }
 0x34d   : > { %5736 = vrot.lane.b32.xlu1 %v5735_v6, %s5841_s29  ;;  %v2278_v6 = vld [vmem:[#allocation3 + $0xa8] sm:$0xff]  ;;  %v5464_v40 = vunpack.i.h.bf16 %v8316_v19  ;;  %s4254_s29 = sshll.u32 %s188_s9, 8 }
 0x34e   : > { %5751 = vrot.lane.b32.xlu0 %v5725_v53, %s5843_s5  ;;  %v5388_v53 = vunpack.i.l.bf16 %v8258_v46  ;;  %v3624_v46 = vsel %vm1729_vm5, %v3592_v38, %v5399_v32 }
 0x34f   : > { %v8322_v4 = vpop.permute.xlu1 %5451  ;;  %v3656_v58 = vsel %vm1795_vm7, %v3624_v46, %v5369_v22 }
 0x350   : > { %v5467_v34 = vpop.permute.xlu0 %5466  ;;  %v3784_v62 = vsel %vm3771_vm15, %v3751_v51, %v5388_v53 }
 0x351   : > { %v5469_v39 = vunpack.i.h.bf16 %v5467_v34  ;;  %v5468_v23 = vunpack.i.l.bf16 %v5467_v34  ;;  %5746 = vrot.lane.b32.xlu1 %v5745_v2, %s5842_s30  ;;  %v3591_v2 = vsel %vm1663_vm2, %v2278_v6, %v5393_v60  ;;  %v5379_v60 = vunpack.i.h.bf16 %v8224_v37  ;;  %s8578_s30 = scalar_lea.vmem [#allocation4], %s4254_s29 }
 0x352   : > { %s4188_s6 = sshll.u32 %s8578_s30, 4  ;;  %s8675_s6 = int_to_ptr.vmem [resolvable:$true] %s4188_s6 }
 0x353   : > { %v8329_v63 = vpop.permute.xlu1 %5476  ;;  %v3601_v8 = vsel %vm1663_vm2, %v8113_v27, %v5468_v23  ;;  %v3602_v44 = vsel %vm1663_vm2, %v8101_v15, %v5469_v39  ;;  %v5384_v15 = vunpack.i.h.bf16 %v8239_v36  ;;  %v3623_v39 = vsel %vm1729_vm5, %v3591_v2, %v5398_v55  ;;  %s5768_s14 = scalar_lea.vmem %s8675_s6, 4096  ;;  %p5775_p0 = scmp.lt.s32.totalorder %s8675_s6, %s5773_s22 }
 0x354   : > { %v5472_v20 = vpop.permute.xlu0 %5471  ;;  %p5769_p11 = scmp.ne.s32.totalorder %s8675_s6, %s5768_s14  ;;  %p5776_p1 = scmp.lt.s32.totalorder %s5774_s23, %s5768_s14 }
 0x355   : > { %v5474_v33 = vunpack.i.h.bf16 %v5472_v20  ;;  %v5473_v5 = vunpack.i.l.bf16 %v5472_v20  ;;  %5756 = vrot.lane.b32.xlu1 %v5755_v30, %s5843_s5  ;;  %v3752_v52 = vsel %vm3738_vm14, %v3719_v21, %v5384_v15  ;;  %v5368_v30 = vunpack.i.l.bf16 %v8222_v47  ;;  %s4304_s5 = sshll.u32 %s5893_s19, 12  ;;  %s8683_s19 = scalar_lea.sflag [#allocation5], %s188_s9 }
 0x356   : > { %v3785_v59 = vsel %vm3771_vm15, %v3752_v52, %v5389_v57  ;;  %v5374_v47 = vunpack.i.h.bf16 %v8203_v35  ;;  %v5378_v35 = vunpack.i.l.bf16 %v8224_v37  ;;  %s8671_s13 = scalar_lea.hbm %s8729_s4, %s4304_s5  ;;  %p5770_p12 = pnand %p5769_p11, %p5910_p5 }
 0x357   : > { %v8342_v0 = vsel %vm1729_vm5, %v3601_v8, %v5473_v5  ;;  %v8345_v28 = vsel %vm1729_vm5, %v3602_v44, %v5474_v33  ;;  %v8352_v17 = vpop.permute.xlu1 %5481  ;;  %v3655_v11 = vsel %vm1795_vm7, %v3623_v39, %v5368_v30  ;;  %p5777_p2 = por %p5776_p1, %p5775_p0 }
 0x358   : > { %v8350_v27 = vpop.permute.xlu0 %5486  ;;  %v3687_v15 = vsel %vm1861_vm9, %v3655_v11, %v5373_v48  ;;  %v5448_v11 = vunpack.i.l.bf16 %v8318_v13  ;;  %p5771_p13 = pneg %p5770_p12 }
 0x359   : > { %v3720_v57 = vsel %vm3705_vm13, %v3687_v15, %v5378_v35 }
 0x35a   : > { %p5778_p3 = pnand %p5777_p2, %p5771_p13 }
 0x35b   : > { %v5507_v56 = vpop.permute.xlu1 %5506 }
 0x35c   : > { %v5492_v36 = vpop.permute.xlu0 %5491  ;;  %v5509_v34 = vunpack.i.h.bf16 %v5507_v56  ;;  %v5508_v31 = vunpack.i.l.bf16 %v5507_v56 }
 0x35d   : > { %v5494_v9 = vunpack.i.h.bf16 %v5492_v36  ;;  %v5493_v7 = vunpack.i.l.bf16 %v5492_v36 }
 0x35e   : > { %v3818_v23 = vsel %vm3804_vm0, %v3785_v59, %v5509_v34  ;;  %v3817_v3 = vsel %vm3804_vm0, %v3784_v62, %v5508_v31 }
 0x35f   : > { %v3843_v49 = vpack.c.bf16 %v3818_v23, %v3817_v3  ;;  %v8374_v41 = vpop.permute.xlu1 %5516  ;;  %v3605_v8 = vsel %vm1663_vm2, %v8199_v50, %v5493_v7  ;;  %v3606_v44 = vsel %vm1663_vm2, %v8179_v61, %v5494_v9  ;;  %v3688_v50 = vsel %vm1861_vm9, %v3656_v58, %v5374_v47 }
 0x360   : > { %v5497_v20 = vpop.permute.xlu0 %5496  ;;  %v5463_v61 = vunpack.i.l.bf16 %v8316_v19  ;;  %v3721_v53 = vsel %vm3705_vm13, %v3688_v50, %v5379_v60  ;;  %v5453_v47 = vunpack.i.l.bf16 %v8322_v4 }
 0x361   : > { %v5499_v33 = vunpack.i.h.bf16 %v5497_v20  ;;  %v5498_v5 = vunpack.i.l.bf16 %v5497_v20  ;;  %4405 = vmatprep.mubr.msk.bf16.mxu1 %vm3896_vm1, %v3843_v49  ;;  %v3754_v10 = vsel %vm3738_vm14, %v3721_v53, %v5464_v40  ;;  %v5458_v40 = vunpack.i.l.bf16 %v8312_v24 }
 0x362   : > { %v3753_v56 = vsel %vm3738_vm14, %v3720_v57, %v5463_v61  ;;  %v2283_v61 = vld [vmem:[#allocation3 + $0xe0] sm:$0xff] }
 0x363   : > { %v8386_v29 = vsel %vm1729_vm5, %v3605_v8, %v5498_v5  ;;  %v8389_v43 = vsel %vm1729_vm5, %v3606_v44, %v5499_v33  ;;  %v5527_v26 = vpop.permute.xlu1 %5526  ;;  %v5449_v5 = vunpack.i.h.bf16 %v8318_v13  ;;  %v5454_v44 = vunpack.i.h.bf16 %v8322_v4 }
 0x364   : > { %v5502_v21 = vpop.permute.xlu0 %5501  ;;  %v5529_v51 = vunpack.i.h.bf16 %v5527_v26  ;;  %v5528_v52 = vunpack.i.l.bf16 %v5527_v26  ;;  %v5459_v13 = vunpack.i.h.bf16 %v8312_v24  ;;  %v3657_v53 = vsel %vm1795_vm7, %v8192_v16, %v5458_v40 }
 0x365   : > { %v5504_v32 = vunpack.i.h.bf16 %v5502_v21  ;;  %v5503_v55 = vunpack.i.l.bf16 %v5502_v21  ;;  %v3596_v26 = vsel %vm1663_vm2, %v2283_v61, %v5449_v5 }
 0x366   : > { %v3603_v62 = vsel %vm1663_vm2, %v8150_v14, %v5528_v52  ;;  %v3604_v59 = vsel %vm1663_vm2, %v8142_v54, %v5529_v51  ;;  %v3628_v60 = vsel %vm1729_vm5, %v3596_v26, %v5454_v44  ;;  %v5444_v51 = vunpack.i.h.bf16 %v8310_v42 }
 0x367   : > { %v5532_v2 = vpop.permute.xlu1 %5531  ;;  %v3787_v38 = vsel %vm3771_vm15, %v3754_v10, %v5504_v32  ;;  %v3786_v37 = vsel %vm3771_vm15, %v3753_v56, %v5503_v55  ;;  %v5443_v52 = vunpack.i.l.bf16 %v8310_v42  ;;  %v3658_v24 = vsel %vm1795_vm7, %v8195_v25, %v5459_v13 }
 0x368   : > { %v5512_v6 = vpop.permute.xlu0 %5511  ;;  %v5534_v34 = vunpack.i.h.bf16 %v5532_v2  ;;  %v5533_v31 = vunpack.i.l.bf16 %v5532_v2  ;;  %v5519_v56 = vunpack.i.h.bf16 %v8374_v41  ;;  %v3660_v2 = vsel %vm1795_vm7, %v3628_v60, %v5444_v51 }
 0x369   : > { %v5514_v36 = vunpack.i.h.bf16 %v5512_v6  ;;  %v5513_v19 = vunpack.i.l.bf16 %v5512_v6 }
 0x36a   : > { %v8410_v46 = vsel %vm1729_vm5, %v3603_v62, %v5533_v31  ;;  %v8413_v23 = vsel %vm1729_vm5, %v3604_v59, %v5534_v34 }
 0x36b   : > { %v3819_v9 = vsel %vm3804_vm0, %v3786_v37, %v5513_v19  ;;  %v3820_v7 = vsel %vm3804_vm0, %v3787_v38, %v5514_v36  ;;  %v5537_v22 = vpop.permute.xlu1 %5536  ;;  %v5518_v36 = vunpack.i.l.bf16 %v8374_v41 }
 0x36c   : > { %v3844_v39 = vpack.c.bf16 %v3820_v7, %v3819_v9  ;;  %v5522_v3 = vpop.permute.xlu0 %5521  ;;  %v5539_v30 = vunpack.i.h.bf16 %v5537_v22  ;;  %v5538_v14 = vunpack.i.l.bf16 %v5537_v22 }
 0x36d   : > { %v5524_v35 = vunpack.i.h.bf16 %v5522_v3  ;;  %v5523_v32 = vunpack.i.l.bf16 %v5522_v3 }
 0x36e   : > { %4406 = vmatmul.mubr.msk.bf16.gmra.mrb[12].mxu1 %vm3896_vm1, %v3844_v39  ;;  %v3607_v58 = vsel %vm1663_vm2, %v8260_v18, %v5538_v14  ;;  %v3608_v8 = vsel %vm1663_vm2, %v8250_v45, %v5539_v30  ;;  %v2282_v18 = vld [vmem:[#allocation3 + $0xd8] sm:$0xff] }
 0x36f   : > { %v5542_v20 = vpop.permute.xlu1 %5541  ;;  %v3595_v45 = vsel %vm1663_vm2, %v2282_v18, %v5448_v11  ;;  %v3692_v38 = vsel %vm1861_vm9, %v3660_v2, %v5524_v35 }
 0x370   : > { %v5552_v49 = vpop.permute.xlu0 %5551  ;;  %v5544_v54 = vunpack.i.h.bf16 %v5542_v20  ;;  %v5543_v33 = vunpack.i.l.bf16 %v5542_v20  ;;  %v3627_v4 = vsel %vm1729_vm5, %v3595_v45, %v5453_v47  ;;  %v3690_v20 = vsel %vm1861_vm9, %v3658_v24, %v5519_v56 }
 0x371   : > { %v5554_v6 = vunpack.i.h.bf16 %v5552_v49  ;;  %v5553_v10 = vunpack.i.l.bf16 %v5552_v49  ;;  %v3659_v19 = vsel %vm1795_vm7, %v3627_v4, %v5443_v52 }
 0x372   : > { %v8425_v48 = vsel %vm1729_vm5, %v3607_v58, %v5543_v33  ;;  %v8428_v21 = vsel %vm1729_vm5, %v3608_v8, %v5544_v54  ;;  %v3691_v42 = vsel %vm1861_vm9, %v3659_v19, %v5523_v32  ;;  %v3689_v54 = vsel %vm1861_vm9, %v3657_v53, %v5518_v36 }
 0x373   : > { %v5547_v50 = vpop.permute.xlu1 %5546  ;;  %v3724_v7 = vsel %vm3705_vm13, %v3691_v42, %v5553_v10  ;;  %v3725_v41 = vsel %vm3705_vm13, %v3692_v38, %v5554_v6  ;;  %v5489_v53 = vunpack.i.h.bf16 %v8350_v27  ;;  %v5488_v6 = vunpack.i.l.bf16 %v8350_v27 }
 0x374   : > { %v5562_v15 = vpop.permute.xlu0 %5561  ;;  %v5549_v31 = vunpack.i.h.bf16 %v5547_v50  ;;  %v5548_v62 = vunpack.i.l.bf16 %v5547_v50 }
 0x375   : > { %v5564_v37 = vunpack.i.h.bf16 %v5562_v15  ;;  %v5563_v34 = vunpack.i.l.bf16 %v5562_v15 }
 0x376   : > { %v3723_v58 = vsel %vm3705_vm13, %v3690_v20, %v5549_v31  ;;  %v3722_v8 = vsel %vm3705_vm13, %v3689_v54, %v5548_v62 }
 0x377   : > { %v5557_v57 = vpop.permute.xlu1 %5556  ;;  %v3757_v33 = vsel %vm3738_vm14, %v3724_v7, %v5563_v34  ;;  %v3758_v5 = vsel %vm3738_vm14, %v3725_v41, %v5564_v37  ;;  %v3662_v34 = vsel %vm1795_vm7, %v8307_v1, %v5489_v53 }
 0x378   : > { %v5572_v55 = vpop.permute.xlu0 %5571  ;;  %v5559_v39 = vunpack.i.h.bf16 %v5557_v57  ;;  %v5558_v3 = vunpack.i.l.bf16 %v5557_v57 }
 0x379   : > { %v5574_v16 = vunpack.i.h.bf16 %v5572_v55  ;;  %v5573_v59 = vunpack.i.l.bf16 %v5572_v55 }
 0x37a   : > { %v3755_v50 = vsel %vm3738_vm14, %v3722_v8, %v5558_v3  ;;  %v3756_v13 = vsel %vm3738_vm14, %v3723_v58, %v5559_v39  ;;  %v2286_v58 = vld [vmem:[#allocation3 + $0x108] sm:$0xff]  ;;  %v2287_v8 = vld [vmem:[#allocation3 + $0x110] sm:$0xff] }
 0x37b   : > { %v5567_v9 = vpop.permute.xlu1 %5566  ;;  %v3790_v44 = vsel %vm3771_vm15, %v3757_v33, %v5573_v59  ;;  %v3791_v47 = vsel %vm3771_vm15, %v3758_v5, %v5574_v16  ;;  %v5479_v59 = vunpack.i.h.bf16 %v8329_v63 }
 0x37c   : > { %v5582_v25 = vpop.permute.xlu0 %5581  ;;  %v5569_v14 = vunpack.i.h.bf16 %v5567_v9  ;;  %v5568_v49 = vunpack.i.l.bf16 %v5567_v9  ;;  %v5478_v9 = vunpack.i.l.bf16 %v8329_v63 }
 0x37d   : > { %v5584_v22 = vunpack.i.h.bf16 %v5582_v25  ;;  %v5583_v30 = vunpack.i.l.bf16 %v5582_v25  ;;  %v3661_v25 = vsel %vm1795_vm7, %v8304_v12, %v5488_v6 }
 0x37e   : > { %v3788_v26 = vsel %vm3771_vm15, %v3755_v50, %v5568_v49  ;;  %v3789_v4 = vsel %vm3771_vm15, %v3756_v13, %v5569_v14  ;;  %v5484_v14 = vunpack.i.h.bf16 %v8352_v17  ;;  %v5483_v49 = vunpack.i.l.bf16 %v8352_v17 }
 0x37f   : > { %v5577_v15 = vpop.permute.xlu1 %5576  ;;  %v3823_v61 = vsel %vm3804_vm0, %v3790_v44, %v5583_v30  ;;  %v3824_v45 = vsel %vm3804_vm0, %v3791_v47, %v5584_v22  ;;  %v3599_v13 = vsel %vm1663_vm2, %v2286_v58, %v5478_v9  ;;  %v3600_v17 = vsel %vm1663_vm2, %v2287_v8, %v5479_v59 }
 0x380   : > { %v5592_v11 = vpop.permute.xlu0 %5591  ;;  %v5579_v40 = vunpack.i.h.bf16 %v5577_v15  ;;  %v5578_v18 = vunpack.i.l.bf16 %v5577_v15  ;;  %v3846_v52 = vpack.c.bf16 %v3824_v45, %v3823_v61  ;;  %v3631_v45 = vsel %vm1729_vm5, %v3599_v13, %v5483_v49 }
 0x381   : > { %v5594_v10 = vunpack.i.h.bf16 %v5592_v11  ;;  %v5593_v56 = vunpack.i.l.bf16 %v5592_v11 }
 0x382   : > { %v3821_v60 = vsel %vm3804_vm0, %v3788_v26, %v5578_v18  ;;  %v3822_v35 = vsel %vm3804_vm0, %v3789_v4, %v5579_v40  ;;  %v3632_v26 = vsel %vm1729_vm5, %v3600_v17, %v5484_v14 }
 0x383   : > { %v3845_v55 = vpack.c.bf16 %v3822_v35, %v3821_v60  ;;  %v5587_v51 = vpop.permute.xlu1 %5586  ;;  %v3694_v16 = vsel %vm1861_vm9, %v3662_v34, %v5594_v10  ;;  %v3693_v27 = vsel %vm1861_vm9, %v3661_v25, %v5593_v56 }
 0x384   : > { %v5602_v32 = vpop.permute.xlu0 %5601  ;;  %v5589_v54 = vunpack.i.h.bf16 %v5587_v51  ;;  %v5588_v33 = vunpack.i.l.bf16 %v5587_v51 }
 0x385   : > { %4409 = vmatprep.mubr.msk.bf16.mxu1 %vm3896_vm1, %v3845_v55  ;;  %v5604_v36 = vunpack.i.h.bf16 %v5602_v32  ;;  %v5603_v19 = vunpack.i.l.bf16 %v5602_v32 }
 0x386   : > { %4410 = vmatmul.mubr.msk.bf16.gmra.mrb[16].mxu1 %vm3896_vm1, %v3846_v52  ;;  %v3664_v35 = vsel %vm1795_vm7, %v3632_v26, %v5589_v54  ;;  %v3663_v32 = vsel %vm1795_vm7, %v3631_v45, %v5588_v33 }
 0x387   : > { %v5597_v24 = vpop.permute.xlu1 %5596  ;;  %v3726_v7 = vsel %vm3705_vm13, %v3693_v27, %v5603_v19  ;;  %v3727_v41 = vsel %vm3705_vm13, %v3694_v16, %v5604_v36 }
 0x388   : > { %v5612_v57 = vpop.permute.xlu0 %5611  ;;  %v5599_v44 = vunpack.i.h.bf16 %v5597_v24  ;;  %v5598_v47 = vunpack.i.l.bf16 %v5597_v24 }
 0x389   : > { %v5614_v38 = vunpack.i.h.bf16 %v5612_v57  ;;  %v5613_v42 = vunpack.i.l.bf16 %v5612_v57 }
 0x38a   : > { %v3695_v52 = vsel %vm1861_vm9, %v3663_v32, %v5598_v47  ;;  %v3696_v57 = vsel %vm1861_vm9, %v3664_v35, %v5599_v44 }
 0x38b   : > { %v5607_v37 = vpop.permute.xlu1 %5606  ;;  %v3759_v1 = vsel %vm3738_vm14, %v3726_v7, %v5613_v42  ;;  %v3760_v3 = vsel %vm3738_vm14, %v3727_v41, %v5614_v38 }
 0x38c   : > { %v5622_v2 = vpop.permute.xlu0 %5621  ;;  %v5609_v40 = vunpack.i.h.bf16 %v5607_v37  ;;  %v5608_v18 = vunpack.i.l.bf16 %v5607_v37 }
 0x38d   : > { %v5624_v31 = vunpack.i.h.bf16 %v5622_v2  ;;  %v5623_v62 = vunpack.i.l.bf16 %v5622_v2 }
 0x38e   : > { %v3728_v53 = vsel %vm3705_vm13, %v3695_v52, %v5608_v18  ;;  %v3729_v6 = vsel %vm3705_vm13, %v3696_v57, %v5609_v40 }
 0x38f   : > { %v5617_v30 = vpop.permute.xlu1 %5616  ;;  %v3792_v20 = vsel %vm3771_vm15, %v3759_v1, %v5623_v62  ;;  %v3793_v63 = vsel %vm3771_vm15, %v3760_v3, %v5624_v31 }
 0x390   : > { %v5632_v39 = vpop.permute.xlu0 %5631  ;;  %v5619_v4 = vunpack.i.h.bf16 %v5617_v30  ;;  %v5618_v60 = vunpack.i.l.bf16 %v5617_v30 }
 0x391   : > { %v5634_v12 = vunpack.i.h.bf16 %v5632_v39  ;;  %v5633_v22 = vunpack.i.l.bf16 %v5632_v39 }
 0x392   : > { %v3761_v56 = vsel %vm3738_vm14, %v3728_v53, %v5618_v60  ;;  %v3762_v36 = vsel %vm3738_vm14, %v3729_v6, %v5619_v4 }
 0x393   : > { %v3825_v5 = vsel %vm3804_vm0, %v3792_v20, %v5633_v22  ;;  %v3826_v11 = vsel %vm3804_vm0, %v3793_v63, %v5634_v12  ;;  %v5627_v61 = vpop.permute.xlu1 %5626 }
 0x394   : > { %v3847_v15 = vpack.c.bf16 %v3826_v11, %v3825_v5  ;;  %v5642_v50 = vpop.permute.xlu0 %5641  ;;  %v5629_v55 = vunpack.i.h.bf16 %v5627_v61  ;;  %v5628_v51 = vunpack.i.l.bf16 %v5627_v61 }
 0x395   : > { %v5644_v59 = vunpack.i.h.bf16 %v5642_v50  ;;  %v5643_v9 = vunpack.i.l.bf16 %v5642_v50 }
 0x396   : > { %4413 = vmatprep.mubr.msk.bf16.mxu1 %vm3896_vm1, %v3847_v15  ;;  %v3794_v38 = vsel %vm3771_vm15, %v3761_v56, %v5628_v51  ;;  %v3795_v42 = vsel %vm3771_vm15, %v3762_v36, %v5629_v55 }
 0x397   : > { %v5637_v10 = vpop.permute.xlu1 %5636  ;;  %v3666_v14 = vsel %vm1795_vm7, %v8345_v28, %v5644_v59  ;;  %v3665_v49 = vsel %vm1795_vm7, %v8342_v0, %v5643_v9 }
 0x398   : > { %v5652_v24 = vpop.permute.xlu0 %5651  ;;  %v5639_v19 = vunpack.i.h.bf16 %v5637_v10  ;;  %v5638_v2 = vunpack.i.l.bf16 %v5637_v10 }
 0x399   : > { %v5654_v7 = vunpack.i.h.bf16 %v5652_v24  ;;  %v5653_v41 = vunpack.i.l.bf16 %v5652_v24 }
 0x39a   : > { %v3827_v37 = vsel %vm3804_vm0, %v3794_v38, %v5638_v2  ;;  %v3828_v34 = vsel %vm3804_vm0, %v3795_v42, %v5639_v19 }
 0x39b   : > { %v3848_v31 = vpack.c.bf16 %v3828_v34, %v3827_v37  ;;  %v5647_v62 = vpop.permute.xlu1 %5646  ;;  %v3697_v54 = vsel %vm1861_vm9, %v3665_v49, %v5653_v41  ;;  %v3698_v33 = vsel %vm1861_vm9, %v3666_v14, %v5654_v7 }
 0x39c   : > { %v5662_v25 = vpop.permute.xlu0 %5661  ;;  %v5649_v13 = vunpack.i.h.bf16 %v5647_v62  ;;  %v5648_v17 = vunpack.i.l.bf16 %v5647_v62 }
 0x39d   : > { %4414 = vmatmul.mubr.msk.bf16.gmra.mrb[20].mxu1 %vm3896_vm1, %v3848_v31  ;;  %v5664_v39 = vunpack.i.h.bf16 %v5662_v25  ;;  %v5663_v1 = vunpack.i.l.bf16 %v5662_v25 }
 0x39e   : > { %v3668_v52 = vsel %vm1795_vm7, %v8413_v23, %v5649_v13  ;;  %v3667_v57 = vsel %vm1795_vm7, %v8410_v46, %v5648_v17 }
 0x39f   : > { %v5657_v27 = vpop.permute.xlu1 %5656  ;;  %v3730_v5 = vsel %vm3705_vm13, %v3697_v54, %v5663_v1  ;;  %v3731_v11 = vsel %vm3705_vm13, %v3698_v33, %v5664_v39 }
 0x3a0   : > { %v5672_v16 = vpop.permute.xlu0 %5671  ;;  %v5659_v61 = vunpack.i.h.bf16 %v5657_v27  ;;  %v5658_v45 = vunpack.i.l.bf16 %v5657_v27 }
 0x3a1   : > { %v5674_v12 = vunpack.i.h.bf16 %v5672_v16  ;;  %v5673_v22 = vunpack.i.l.bf16 %v5672_v16 }
 0x3a2   : > { %v3699_v6 = vsel %vm1861_vm9, %v3667_v57, %v5658_v45  ;;  %v3700_v10 = vsel %vm1861_vm9, %v3668_v52, %v5659_v61 }
 0x3a3   : > { %v5667_v30 = vpop.permute.xlu1 %5666  ;;  %v3763_v8 = vsel %vm3738_vm14, %v3730_v5, %v5673_v22  ;;  %v3764_v44 = vsel %vm3738_vm14, %v3731_v11, %v5674_v12 }
 0x3a4   : > { %v5682_v3 = vpop.permute.xlu0 %5681  ;;  %v5669_v60 = vunpack.i.h.bf16 %v5667_v30  ;;  %v5668_v35 = vunpack.i.l.bf16 %v5667_v30 }
 0x3a5   : > { %v5684_v20 = vunpack.i.h.bf16 %v5682_v3  ;;  %v5683_v63 = vunpack.i.l.bf16 %v5682_v3 }
 0x3a6   : > { %v3732_v36 = vsel %vm3705_vm13, %v3699_v6, %v5668_v35  ;;  %v3733_v19 = vsel %vm3705_vm13, %v3700_v10, %v5669_v60 }
 0x3a7   : > { %v5677_v15 = vpop.permute.xlu1 %5676  ;;  %v3796_v0 = vsel %vm3771_vm15, %v3763_v8, %v5683_v63  ;;  %v3797_v50 = vsel %vm3771_vm15, %v3764_v44, %v5684_v20 }
 0x3a8   : > { %v5692_v58 = vpop.permute.xlu0 %5691  ;;  %v5679_v55 = vunpack.i.h.bf16 %v5677_v15  ;;  %v5678_v51 = vunpack.i.l.bf16 %v5677_v15 }
 0x3a9   : > { %v5694_v47 = vunpack.i.h.bf16 %v5692_v58  ;;  %v5693_v28 = vunpack.i.l.bf16 %v5692_v58 }
 0x3aa   : > { %v3765_v38 = vsel %vm3738_vm14, %v3732_v36, %v5678_v51  ;;  %v3766_v42 = vsel %vm3738_vm14, %v3733_v19, %v5679_v55 }
 0x3ab   : > { %v3829_v40 = vsel %vm3804_vm0, %v3796_v0, %v5693_v28  ;;  %v3830_v18 = vsel %vm3804_vm0, %v3797_v50, %v5694_v47  ;;  %v5687_v32 = vpop.permute.xlu1 %5686 }
 0x3ac   : > { %v3849_v26 = vpack.c.bf16 %v3830_v18, %v3829_v40  ;;  %v5702_v4 = vpop.permute.xlu0 %5701  ;;  %v5689_v24 = vunpack.i.h.bf16 %v5687_v32  ;;  %v5688_v53 = vunpack.i.l.bf16 %v5687_v32 }
 0x3ad   : > { %v5704_v7 = vunpack.i.h.bf16 %v5702_v4  ;;  %v5703_v41 = vunpack.i.l.bf16 %v5702_v4 }
 0x3ae   : > { %4417 = vmatprep.mubr.msk.bf16.mxu1 %vm3896_vm1, %v3849_v26  ;;  %v3798_v46 = vsel %vm3771_vm15, %v3765_v38, %v5688_v53  ;;  %v3799_v34 = vsel %vm3771_vm15, %v3766_v42, %v5689_v24 }
 0x3af   : > { %v5697_v2 = vpop.permute.xlu1 %5696  ;;  %v3670_v20 = vsel %vm1795_vm7, %v8389_v43, %v5704_v7  ;;  %v3669_v63 = vsel %vm1795_vm7, %v8386_v29, %v5703_v41 }
 0x3b0   : > { %v5712_v56 = vpop.permute.xlu0 %5711  ;;  %v5699_v23 = vunpack.i.h.bf16 %v5697_v2  ;;  %v5698_v37 = vunpack.i.l.bf16 %v5697_v2 }
 0x3b1   : > { %v5714_v39 = vunpack.i.h.bf16 %v5712_v56  ;;  %v5713_v1 = vunpack.i.l.bf16 %v5712_v56 }
 0x3b2   : > { %v3831_v25 = vsel %vm3804_vm0, %v3798_v46, %v5698_v37  ;;  %v3832_v31 = vsel %vm3804_vm0, %v3799_v34, %v5699_v23  ;;  %v8570_v34 = vld [vmem:[%s8728_s3] ss:$0 sm:$0xff] }
 0x3b3   : > { %v3850_v16 = vpack.c.bf16 %v3832_v31, %v3831_v25  ;;  %v5707_v27 = vpop.permute.xlu1 %5706  ;;  %v3701_v5 = vsel %vm1861_vm9, %v3669_v63, %v5713_v1  ;;  %v3702_v11 = vsel %vm1861_vm9, %v3670_v20, %v5714_v39 }
 0x3b4   : > { %v5722_v62 = vpop.permute.xlu0 %5721  ;;  %v5709_v13 = vunpack.i.h.bf16 %v5707_v27  ;;  %v5708_v17 = vunpack.i.l.bf16 %v5707_v27 }
 0x3b5   : > { %4418 = vmatmul.mubr.msk.bf16.gmra.mrb[24].mxu1 %vm3896_vm1, %v3850_v16  ;;  %v5724_v3 = vunpack.i.h.bf16 %v5722_v62  ;;  %v5723_v12 = vunpack.i.l.bf16 %v5722_v62 }
 0x3b6   : > { %v3671_v51 = vsel %vm1795_vm7, %v8425_v48, %v5708_v17  ;;  %v3672_v52 = vsel %vm1795_vm7, %v8428_v21, %v5709_v13 }
 0x3b7   : > { %v5717_v9 = vpop.permute.xlu1 %5716  ;;  %v3734_v58 = vsel %vm3705_vm13, %v3701_v5, %v5723_v12  ;;  %v3735_v8 = vsel %vm3705_vm13, %v3702_v11, %v5724_v3 }
 0x3b8   : > { %v5732_v59 = vpop.permute.xlu0 %5731  ;;  %v5719_v61 = vunpack.i.h.bf16 %v5717_v9  ;;  %v5718_v45 = vunpack.i.l.bf16 %v5717_v9 }
 0x3b9   : > { %v5734_v30 = vunpack.i.h.bf16 %v5732_v59  ;;  %v5733_v14 = vunpack.i.l.bf16 %v5732_v59 }
 0x3ba   : > { %v3703_v53 = vsel %vm1861_vm9, %v3671_v51, %v5718_v45  ;;  %v3704_v6 = vsel %vm1861_vm9, %v3672_v52, %v5719_v61 }
 0x3bb   : > { %v5727_v49 = vpop.permute.xlu1 %5726  ;;  %v3767_v47 = vsel %vm3738_vm14, %v3734_v58, %v5733_v14  ;;  %v3768_v28 = vsel %vm3738_vm14, %v3735_v8, %v5734_v30 }
 0x3bc   : > { %v5742_v22 = vpop.permute.xlu0 %5741  ;;  %v5729_v4 = vunpack.i.h.bf16 %v5727_v49  ;;  %v5728_v60 = vunpack.i.l.bf16 %v5727_v49 }
 0x3bd   : > { %v5744_v54 = vunpack.i.h.bf16 %v5742_v22  ;;  %v5743_v33 = vunpack.i.l.bf16 %v5742_v22 }
 0x3be   : > { %v3736_v10 = vsel %vm3705_vm13, %v3703_v53, %v5728_v60  ;;  %v3737_v56 = vsel %vm3705_vm13, %v3704_v6, %v5729_v4 }
 0x3bf   : > { %v5737_v0 = vpop.permute.xlu1 %5736  ;;  %v3800_v29 = vsel %vm3771_vm15, %v3767_v47, %v5743_v33  ;;  %v3801_v50 = vsel %vm3771_vm15, %v3768_v28, %v5744_v54 }
 0x3c0   : > { %v5752_v44 = vpop.permute.xlu0 %5751  ;;  %v5739_v32 = vunpack.i.h.bf16 %v5737_v0  ;;  %v5738_v55 = vunpack.i.l.bf16 %v5737_v0 }
 0x3c1   : > { %v5754_v15 = vunpack.i.h.bf16 %v5752_v44  ;;  %v5753_v43 = vunpack.i.l.bf16 %v5752_v44 }
 0x3c2   : > { %v3769_v19 = vsel %vm3738_vm14, %v3736_v10, %v5738_v55  ;;  %v3770_v48 = vsel %vm3738_vm14, %v3737_v56, %v5739_v32 }
 0x3c3   : > { %v3833_v40 = vsel %vm3804_vm0, %v3800_v29, %v5753_v43  ;;  %v3834_v18 = vsel %vm3804_vm0, %v3801_v50, %v5754_v15  ;;  %v5747_v35 = vpop.permute.xlu1 %5746 }
 0x3c4   : > { %v3851_v26 = vpack.c.bf16 %v3834_v18, %v3833_v40  ;;  %v5749_v57 = vunpack.i.h.bf16 %v5747_v35  ;;  %v5748_v24 = vunpack.i.l.bf16 %v5747_v35 }
 0x3c6   : > { %4421 = vmatprep.mubr.msk.bf16.mxu1 %vm3896_vm1, %v3851_v26  ;;  %v3802_v21 = vsel %vm3771_vm15, %v3769_v19, %v5748_v24  ;;  %v3803_v42 = vsel %vm3771_vm15, %v3770_v48, %v5749_v57 }
 0x3c7   : > { %v5757_v36 = vpop.permute.xlu1 %5756 }
 0x3c8   : > { %v5759_v2 = vunpack.i.h.bf16 %v5757_v36  ;;  %v5758_v38 = vunpack.i.l.bf16 %v5757_v36 }
 0x3ca   : > { %v3835_v23 = vsel %vm3804_vm0, %v3802_v21, %v5758_v38  ;;  %v3836_v37 = vsel %vm3804_vm0, %v3803_v42, %v5759_v2 }
 0x3cb   : > { %v3852_v46 = vpack.c.bf16 %v3836_v37, %v3835_v23 }
 0x3cd   : > { %4422 = vmatmul.mubr.msk.bf16.gmra.mrb[28].mxu1 %vm3896_vm1, %v3852_v46 }
 0x3d5   : > { %v4395_v25 = vpop.f32.mrb[0].mxu1 }
 0x3d6   : > { %v3992_v31 = vadd.f32 %v4395_v25, %v8570_v34  ;;  %v3983_v62 = vpop.f32.mrb[1].mxu1 }
 0x3d7   : > { %v3984_v16 = vadd.f32 %v8570_v34, %v3983_v62  ;;  %v4396_v27 = vpop.f32.mrb[2].mxu1 }
 0x3d8   : > { %v4112_v59 = vmax.f32 %v3992_v31, 0.0  ;;  %v3995_v9 = vadd.f32 %v4396_v27, %v8570_v34  ;;  %v3986_v7 = vpop.f32.mrb[3].mxu1 }
 0x3d9   : > { %v4110_v41 = vmax.f32 %v3984_v16, 0.0  ;;  %v3987_v39 = vadd.f32 %v8570_v34, %v3986_v7 }
 0x3da   : > { %4144 = vst.msk [vmem:[%s8578_s30 + $0x10] sm:$0xff] %vm1729_vm5, %v4112_v59  ;;  %v4113_v1 = vmax.f32 %v3995_v9, 0.0 }
 0x3db   : > { %4142 = vst.msk [vmem:[%s8578_s30] sm:$0xff] %vm1729_vm5, %v4110_v41  ;;  %v4111_v3 = vmax.f32 %v3987_v39, 0.0 }
 0x3dc   : > { %4145 = vst.msk [vmem:[%s8578_s30 + $0x18] sm:$0xff] %vm1729_vm5, %v4113_v1 }
 0x3dd   : > { %4143 = vst.msk [vmem:[%s8578_s30 + $0x8] sm:$0xff] %vm1729_vm5, %v4111_v3 }
 0x3f5   : > { %v4399_v12 = vpop.f32.mrb[4].mxu1 }
 0x3f6   : > { %v4008_v22 = vadd.f32 %v4399_v12, %v8570_v34  ;;  %v3999_v30 = vpop.f32.mrb[5].mxu1 }
 0x3f7   : > { %v4000_v14 = vadd.f32 %v8570_v34, %v3999_v30  ;;  %v4400_v49 = vpop.f32.mrb[6].mxu1 }
 0x3f8   : > { %v4116_v20 = vmax.f32 %v4008_v22, 0.0  ;;  %v4011_v63 = vadd.f32 %v4400_v49, %v8570_v34  ;;  %v4002_v54 = vpop.f32.mrb[7].mxu1 }
 0x3f9   : > { %v4114_v33 = vmax.f32 %v4000_v14, 0.0  ;;  %v4003_v5 = vadd.f32 %v8570_v34, %v4002_v54 }
 0x3fa   : > { %4148 = vst.msk [vmem:[%s8578_s30 + $0x30] sm:$0xff] %vm1729_vm5, %v4116_v20  ;;  %v4117_v11 = vmax.f32 %v4011_v63, 0.0 }
 0x3fb   : > { %4146 = vst.msk [vmem:[%s8578_s30 + $0x20] sm:$0xff] %vm1729_vm5, %v4114_v33  ;;  %v4115_v58 = vmax.f32 %v4003_v5, 0.0 }
 0x3fc   : > { %4149 = vst.msk [vmem:[%s8578_s30 + $0x38] sm:$0xff] %vm1729_vm5, %v4117_v11 }
 0x3fd   : > { %4147 = vst.msk [vmem:[%s8578_s30 + $0x28] sm:$0xff] %vm1729_vm5, %v4115_v58 }
 0x415   : > { %v4403_v8 = vpop.f32.mrb[8].mxu1 }
 0x416   : > { %v4024_v44 = vadd.f32 %v4403_v8, %v8570_v34  ;;  %v4015_v47 = vpop.f32.mrb[9].mxu1 }
 0x417   : > { %v4016_v28 = vadd.f32 %v8570_v34, %v4015_v47  ;;  %v4404_v15 = vpop.f32.mrb[10].mxu1 }
 0x418   : > { %v4120_v43 = vmax.f32 %v4024_v44, 0.0  ;;  %v4027_v0 = vadd.f32 %v4404_v15, %v8570_v34  ;;  %v4018_v29 = vpop.f32.mrb[11].mxu1 }
 0x419   : > { %v4118_v50 = vmax.f32 %v4016_v28, 0.0  ;;  %v4019_v13 = vadd.f32 %v8570_v34, %v4018_v29 }
 0x41a   : > { %4152 = vst.msk [vmem:[%s8578_s30 + $0x50] sm:$0xff] %vm1729_vm5, %v4120_v43  ;;  %v4121_v17 = vmax.f32 %v4027_v0, 0.0 }
 0x41b   : > { %4150 = vst.msk [vmem:[%s8578_s30 + $0x40] sm:$0xff] %vm1729_vm5, %v4118_v50  ;;  %v4119_v40 = vmax.f32 %v4019_v13, 0.0 }
 0x41c   : > { %4153 = vst.msk [vmem:[%s8578_s30 + $0x58] sm:$0xff] %vm1729_vm5, %v4121_v17 }
 0x41d   : > { %4151 = vst.msk [vmem:[%s8578_s30 + $0x48] sm:$0xff] %vm1729_vm5, %v4119_v40 }
 0x441   : > { %v4407_v18 = vpop.f32.mrb[12].mxu1 }
 0x442   : > { %v4040_v61 = vadd.f32 %v4407_v18, %v8570_v34  ;;  %v4031_v45 = vpop.f32.mrb[13].mxu1 }
 0x443   : > { %v4032_v26 = vadd.f32 %v8570_v34, %v4031_v45  ;;  %v4408_v4 = vpop.f32.mrb[14].mxu1 }
 0x444   : > { %v4124_v60 = vmax.f32 %v4040_v61, 0.0  ;;  %v4043_v35 = vadd.f32 %v4408_v4, %v8570_v34  ;;  %v4034_v32 = vpop.f32.mrb[15].mxu1 }
 0x445   : > { %v4122_v55 = vmax.f32 %v4032_v26, 0.0  ;;  %v4035_v51 = vadd.f32 %v8570_v34, %v4034_v32 }
 0x446   : > { %4156 = vst.msk [vmem:[%s8578_s30 + $0x70] sm:$0xff] %vm1729_vm5, %v4124_v60  ;;  %v4125_v52 = vmax.f32 %v4043_v35, 0.0 }
 0x447   : > { %4154 = vst.msk [vmem:[%s8578_s30 + $0x60] sm:$0xff] %vm1729_vm5, %v4122_v55  ;;  %v4123_v57 = vmax.f32 %v4035_v51, 0.0 }
 0x448   : > { %4157 = vst.msk [vmem:[%s8578_s30 + $0x78] sm:$0xff] %vm1729_vm5, %v4125_v52 }
 0x449   : > { %4155 = vst.msk [vmem:[%s8578_s30 + $0x68] sm:$0xff] %vm1729_vm5, %v4123_v57 }
 0x459   : > { %v4411_v24 = vpop.f32.mrb[16].mxu1 }
 0x45a   : > { %v4056_v53 = vadd.f32 %v4411_v24, %v8570_v34  ;;  %v4047_v6 = vpop.f32.mrb[17].mxu1 }
 0x45b   : > { %v4048_v10 = vadd.f32 %v8570_v34, %v4047_v6  ;;  %v4412_v56 = vpop.f32.mrb[18].mxu1 }
 0x45c   : > { %v4128_v36 = vmax.f32 %v4056_v53, 0.0  ;;  %v4059_v19 = vadd.f32 %v4412_v56, %v8570_v34  ;;  %v4050_v48 = vpop.f32.mrb[19].mxu1 }
 0x45d   : > { %v4126_v2 = vmax.f32 %v4048_v10, 0.0  ;;  %v4051_v38 = vadd.f32 %v8570_v34, %v4050_v48 }
 0x45e   : > { %4160 = vst.msk [vmem:[%s8578_s30 + $0x90] sm:$0xff] %vm1729_vm5, %v4128_v36  ;;  %v4129_v21 = vmax.f32 %v4059_v19, 0.0 }
 0x45f   : > { %4158 = vst.msk [vmem:[%s8578_s30 + $0x80] sm:$0xff] %vm1729_vm5, %v4126_v2  ;;  %v4127_v42 = vmax.f32 %v4051_v38, 0.0 }
 0x460   : > { %4161 = vst.msk [vmem:[%s8578_s30 + $0x98] sm:$0xff] %vm1729_vm5, %v4129_v21 }
 0x461   : > { %4159 = vst.msk [vmem:[%s8578_s30 + $0x88] sm:$0xff] %vm1729_vm5, %v4127_v42 }
 0x470   : > { %v4415_v23 = vpop.f32.mrb[20].mxu1 }
 0x471   : > { %v4072_v37 = vadd.f32 %v4415_v23, %v8570_v34  ;;  %v4063_v46 = vpop.f32.mrb[21].mxu1 }
 0x472   : > { %v4064_v25 = vadd.f32 %v8570_v34, %v4063_v46  ;;  %v4416_v31 = vpop.f32.mrb[22].mxu1 }
 0x473   : > { %v4132_v62 = vmax.f32 %v4072_v37, 0.0  ;;  %v4075_v16 = vadd.f32 %v4416_v31, %v8570_v34  ;;  %v4066_v27 = vpop.f32.mrb[23].mxu1 }
 0x474   : > { %v4130_v59 = vmax.f32 %v4064_v25, 0.0  ;;  %v4067_v9 = vadd.f32 %v8570_v34, %v4066_v27 }
 0x475   : > { %4164 = vst.msk [vmem:[%s8578_s30 + $0xb0] sm:$0xff] %vm1729_vm5, %v4132_v62  ;;  %v4133_v7 = vmax.f32 %v4075_v16, 0.0 }
 0x476   : > { %4162 = vst.msk [vmem:[%s8578_s30 + $0xa0] sm:$0xff] %vm1729_vm5, %v4130_v59  ;;  %v4131_v41 = vmax.f32 %v4067_v9, 0.0 }
 0x477   : > { %4165 = vst.msk [vmem:[%s8578_s30 + $0xb8] sm:$0xff] %vm1729_vm5, %v4133_v7 }
 0x478   : > { %4163 = vst.msk [vmem:[%s8578_s30 + $0xa8] sm:$0xff] %vm1729_vm5, %v4131_v41 }
 0x488   : > { %v4419_v39 = vpop.f32.mrb[24].mxu1 }
 0x489   : > { %v4088_v1 = vadd.f32 %v4419_v39, %v8570_v34  ;;  %v4079_v3 = vpop.f32.mrb[25].mxu1 }
 0x48a   : > { %v4080_v12 = vadd.f32 %v8570_v34, %v4079_v3  ;;  %v4420_v22 = vpop.f32.mrb[26].mxu1 }
 0x48b   : > { %v4136_v30 = vmax.f32 %v4088_v1, 0.0  ;;  %v4091_v14 = vadd.f32 %v4420_v22, %v8570_v34  ;;  %v4082_v49 = vpop.f32.mrb[27].mxu1 }
 0x48c   : > { %v4134_v20 = vmax.f32 %v4080_v12, 0.0  ;;  %v4083_v63 = vadd.f32 %v8570_v34, %v4082_v49 }
 0x48d   : > { %4168 = vst.msk [vmem:[%s8578_s30 + $0xd0] sm:$0xff] %vm1729_vm5, %v4136_v30  ;;  %v4137_v54 = vmax.f32 %v4091_v14, 0.0 }
 0x48e   : > { %4166 = vst.msk [vmem:[%s8578_s30 + $0xc0] sm:$0xff] %vm1729_vm5, %v4134_v20  ;;  %v4135_v33 = vmax.f32 %v4083_v63, 0.0 }
 0x48f   : > { %4169 = vst.msk [vmem:[%s8578_s30 + $0xd8] sm:$0xff] %vm1729_vm5, %v4137_v54 }
 0x490   : > { %4167 = vst.msk [vmem:[%s8578_s30 + $0xc8] sm:$0xff] %vm1729_vm5, %v4135_v33 }
 0x4a0   : > { %v4423_v5 = vpop.f32.mrb[28].mxu1 }
 0x4a1   : > { %v4104_v11 = vadd.f32 %v4423_v5, %v8570_v34  ;;  %v4095_v58 = vpop.f32.mrb[29].mxu1 }
 0x4a2   : > { %v4096_v8 = vadd.f32 %v8570_v34, %v4095_v58  ;;  %v4424_v44 = vpop.f32.mrb[30].mxu1 }
 0x4a3   : > { %v4140_v47 = vmax.f32 %v4104_v11, 0.0  ;;  %v4107_v28 = vadd.f32 %v4424_v44, %v8570_v34  ;;  %v4098_v15 = vpop.f32.mrb[31].mxu1 }
 0x4a4   : > { %v4138_v43 = vmax.f32 %v4096_v8, 0.0  ;;  %v4099_v0 = vadd.f32 %v8570_v34, %v4098_v15 }
 0x4a5   : > { %4172 = vst.msk [vmem:[%s8578_s30 + $0xf0] sm:$0xff] %vm1729_vm5, %v4140_v47  ;;  %v4141_v29 = vmax.f32 %v4107_v28, 0.0 }
 0x4a6   : > { %4170 = vst.msk [vmem:[%s8578_s30 + $0xe0] sm:$0xff] %vm1729_vm5, %v4138_v43  ;;  %v4139_v50 = vmax.f32 %v4099_v0, 0.0 }
 0x4a7   : > { %4173 = vst.msk [vmem:[%s8578_s30 + $0xf8] sm:$0xff] %vm1729_vm5, %v4141_v29 }
 0x4a8   : > { %4171 = vst.msk [vmem:[%s8578_s30 + $0xe8] sm:$0xff] %vm1729_vm5, %v4139_v50 }
 0x4a9   : > { %5781 = shalt.err (!%p5778_p3)
}
 0x4aa   : > { %s5782_s27 = scalar_lea.hbm %s8671_s13, 4096  ;;  %s5786_s11 = scalar_lea.hbm %s8729_s4, 8192 }
 0x4ab   : > { %p5783_p4 = scmp.ne.s32.totalorder %s8671_s13, %s5782_s27  ;;  %p5787_p9 = scmp.lt.u32.totalorder %s8671_s13, %s8729_s4 }
 0x4ac   : > { %p5788_p10 = scmp.lt.u32.totalorder %s5786_s11, %s5782_s27  ;;  %p5790_p12 = scmp.lt.u32.totalorder %s5782_s27, %s8671_s13 }
 0x4ad   : > { %p5784_p7 = pnand %p5783_p4, %p5910_p5 }
 0x4ae   : > { %p5789_p11 = por %p5788_p10, %p5787_p9 }
 0x4af   : > { %p5785_p8 = pneg %p5784_p7 }
 0x4b0   : > { %p5791_p13 = por %p5790_p12, %p5789_p11 }
 0x4b2   : > { %p5792_p0 = pnand %p5791_p13, %p5785_p8 }
 0x4b4   : > { %5795 = shalt.err (!%p5792_p0)
}
 0x4b5   : > { %s5846_s30 = smov 128  }
 0x4b6   : > { %4427 = dma.vmem_to_hbm [thread:$0]  (%p5910_p5), %s8675_s6, 4096, %s8671_s13, %s8683_s19, %s5846_s30, %s5846_s30, %s5834_s7  }
 0x4b7 PF: > { %p4433_p1 = scmp.ge.s32.totalorder %s5830_s18, 2  ;;  %s4203_s5 = sand.u32 1, %s5818_s15  }
 0x4b8   : > { %s4204_s10 = scalar_lea.sflag [#allocation5], %s4203_s5 }
 0x4b9   : > { %p4430_p2 = pnand %p4433_p1, %p5914_p6 }
 0x4bb   : > { %5813 = dma.done.wait (!%p4430_p2), %s4204_s10, 4096  }
 0x4bc   : > { %5815 = vsyncadd (!%p4430_p2), %s4204_s10, 4294963200  ;;  %p14_p3 = scmp.ge.s32.totalorder %s5897_s21, 4   ;;  %s8949_s15 = smov %s5822_s16 }
 0x4bd   : > { %s8950_s16 = smov %s5826_s17  ;;  %s8951_s17 = smov %s5908_s24 }
 0x4be   : > { %s8952_s18 = smov %s5897_s21  ;;  %16 = sbr.rel (!%p14_p3) target bundleno = 3 (0x3), region = 75 }
 0x4c5   :  { %4209 = vsyncpa [#allocation5], 1 }
 0x4c6   :  { %4211 = vsyncpa [#allocation5 + $0x1], 1 }

</bundles_post_ra>
